<compile_context>
chip_gen: v6e
topology: v6e:2x2x1
jax: 0.10.0
libtpu: 0.0.40
codegen_flags: <defaults>
</compile_context>

<pallas_src>
import jax
import jax.numpy as jnp
from jax.experimental import pallas as pl
from jax.experimental.pallas import tpu as pltpu

# TODO(synk): len(constants.CLASS_MAPPINGS) is unknown; use 10 classes.
NUM_CLASSES = 10
NUM_CLASSES_PAD = 128          # lane-padded output width (sliced off in glue)
BN_EPS = 1e-5

# Fixed widths from the PyTorch module.
C1, C2, C3, C4, FC1 = 32, 64, 128, 256, 64
K12, K34 = 5, 3                # conv kernel sizes
PAD = 1                        # every conv uses padding=1


# ---------------------------------------------------------------------------
# Fused kernel
# ---------------------------------------------------------------------------
def _pool_selectors(l_in, l_out):
    """(l_out, l_in) 0/1 matrices picking even / odd rows for MaxPool1d(2)."""
    r = jax.lax.broadcasted_iota(jnp.int32, (l_out, l_in), 0)
    c = jax.lax.broadcasted_iota(jnp.int32, (l_out, l_in), 1)
    pe = (c == 2 * r).astype(jnp.float32)
    po = (c == 2 * r + 1).astype(jnp.float32)
    return pe, po


def _cnn1d_fused_kernel(x_ref, w1_ref, b1_ref, w2_ref, b2_ref,
                        w3_ref, b3_ref, w4_ref, b4_ref,
                        fc1w_ref, fc1b_ref, fc2w_ref, fc2b_ref,
                        o_ref, pad2_ref, pad3_ref, pad4_ref):
    B = x_ref.shape[0]
    lp1 = x_ref.shape[1]                       # L + 2*PAD (conv1 input, padded)
    l1 = lp1 - K12 + 1                         # conv1 output length
    l2 = l1 + 2 * PAD - K12 + 1                # conv2 output length
    l2p = l2 // 2                              # after MaxPool1d(2)
    l3 = l2p + 2 * PAD - K34 + 1               # conv3 output length
    l4 = l3 + 2 * PAD - K34 + 1                # conv4 output length
    l4p = l4 // 2                              # after MaxPool1d(2)

    # Pooling selection matrices (hoisted out of the batch loop).
    pe2, po2 = _pool_selectors(l2, l2p)
    pe4, po4 = _pool_selectors(l4, l4p)

    # Zero-pad rows of the scratch buffers once; data rows are rewritten per
    # batch, pad rows stay zero.
    pad2_ref[...] = jnp.zeros_like(pad2_ref)
    pad3_ref[...] = jnp.zeros_like(pad3_ref)
    pad4_ref[...] = jnp.zeros_like(pad4_ref)

    for b in range(B):
        # ---- conv1: Conv1d(1->32, k=5, pad=1) + ReLU -----------------------
        # C_in == 1, so each tap is a (l1,1)*(1,32) broadcast multiply-add.
        acc1 = jnp.zeros((l1, C1), jnp.float32)
        for kk in range(K12):
            xs = x_ref[b, kk:kk + l1, :]                    # (l1, 1)
            acc1 = acc1 + xs * w1_ref[kk:kk + 1, :]         # (l1, 1)*(1, 32)
        a1 = jnp.maximum(acc1 + b1_ref[...], 0.0)           # (l1, 32)

        # ---- conv2: Conv1d(32->64, k=5, pad=1) + BN + ReLU + MaxPool(2) ----
        pad2_ref[PAD:PAD + l1, :] = a1
        acc2 = jnp.zeros((l2, C2), jnp.float32)
        for kk in range(K12):
            acc2 = acc2 + jnp.dot(pad2_ref[kk:kk + l2, :], w2_ref[kk],
                                  preferred_element_type=jnp.float32)
        y2 = jnp.maximum(acc2 + b2_ref[...], 0.0)           # (l2, 64)
        a2 = jnp.maximum(
            jnp.dot(pe2, y2, preferred_element_type=jnp.float32),
            jnp.dot(po2, y2, preferred_element_type=jnp.float32))   # (l2p, 64)

        # ---- conv3: Conv1d(64->128, k=3, pad=1) + ReLU ---------------------
        pad3_ref[PAD:PAD + l2p, :] = a2
        acc3 = jnp.zeros((l3, C3), jnp.float32)
        for kk in range(K34):
            acc3 = acc3 + jnp.dot(pad3_ref[kk:kk + l3, :], w3_ref[kk],
                                  preferred_element_type=jnp.float32)
        a3 = jnp.maximum(acc3 + b3_ref[...], 0.0)           # (l3, 128)

        # ---- conv4: Conv1d(128->256, k=3, pad=1) + BN + ReLU + MaxPool(2) --
        pad4_ref[PAD:PAD + l3, :] = a3
        acc4 = jnp.zeros((l4, C4), jnp.float32)
        for kk in range(K34):
            acc4 = acc4 + jnp.dot(pad4_ref[kk:kk + l4, :], w4_ref[kk],
                                  preferred_element_type=jnp.float32)
        y4 = jnp.maximum(acc4 + b4_ref[...], 0.0)           # (l4, 256)
        a4 = jnp.maximum(
            jnp.dot(pe4, y4, preferred_element_type=jnp.float32),
            jnp.dot(po4, y4, preferred_element_type=jnp.float32))   # (l4p, 256)

        # ---- AdaptiveAvgPool1d(1) + Flatten --------------------------------
        g = jnp.sum(a4, axis=0, keepdims=True) * (1.0 / l4p)        # (1, 256)

        # ---- dense: Dropout(id) -> Linear(256,64) -> Dropout(id) -> Linear --
        h = jnp.dot(g, fc1w_ref[...], preferred_element_type=jnp.float32)
        h = h + fc1b_ref[...]                                        # (1, 64)
        out_row = jnp.dot(h, fc2w_ref[...], preferred_element_type=jnp.float32)
        out_row = out_row + fc2b_ref[...]                            # (1, 128)

        o_ref[b:b + 1, :] = out_row.astype(o_ref.dtype)


# ---------------------------------------------------------------------------
# Glue: single pallas_call wrapping the whole network
# ---------------------------------------------------------------------------
def _full_spec(shape):
    return pl.BlockSpec(shape, lambda: (0,) * len(shape))


@jax.jit
def cnn1d_forward(x_ncl, kp):
    """x_ncl: PyTorch-style (B, 1, L) input.  Returns (B, NUM_CLASSES) logits."""
    B, _, L = x_ncl.shape
    x = jnp.transpose(x_ncl, (0, 2, 1)).astype(jnp.float32)        # (B, L, 1)
    x_pad = jnp.pad(x, ((0, 0), (PAD, PAD), (0, 0)))               # (B, L+2, 1)

    l1 = L + 2 * PAD - K12 + 1
    l2 = l1 + 2 * PAD - K12 + 1
    l2p = l2 // 2
    l3 = l2p + 2 * PAD - K34 + 1

    args = (x_pad, kp["w1"], kp["b1"], kp["w2"], kp["b2"],
            kp["w3"], kp["b3"], kp["w4"], kp["b4"],
            kp["fc1_w"], kp["fc1_b"], kp["fc2_w"], kp["fc2_b"])

    out = pl.pallas_call(
        _cnn1d_fused_kernel,
        out_shape=jax.ShapeDtypeStruct((B, NUM_CLASSES_PAD), jnp.float32),
        in_specs=[_full_spec(a.shape) for a in args],
        out_specs=_full_spec((B, NUM_CLASSES_PAD)),
        scratch_shapes=[
            pltpu.VMEM((l1 + 2 * PAD, C1), jnp.float32),    # conv2 padded input
            pltpu.VMEM((l2p + 2 * PAD, C2), jnp.float32),   # conv3 padded input
            pltpu.VMEM((l3 + 2 * PAD, C3), jnp.float32),    # conv4 padded input
        ],
    )(*args)
    return out[:, :NUM_CLASSES]


# ---------------------------------------------------------------------------
# Parameters: PyTorch-shaped init, then BN/bias folding into kernel layout
# ---------------------------------------------------------------------------
def make_params(key):
    keys = jax.random.split(key, 14)

    def conv_w(k_, cout, cin, ksz):          # PyTorch Conv1d weight (C_out, C_in, K)
        return 0.1 * jax.random.normal(k_, (cout, cin, ksz), jnp.float32)

    def bn_stats(k_, c):
        kg, kb, km, kv = jax.random.split(k_, 4)
        gamma = 1.0 + 0.1 * jax.random.normal(kg, (c,), jnp.float32)
        beta = 0.1 * jax.random.normal(kb, (c,), jnp.float32)
        mean = 0.1 * jax.random.normal(km, (c,), jnp.float32)
        var = 1.0 + 0.1 * jax.random.uniform(kv, (c,), jnp.float32)
        return gamma, beta, mean, var

    def to_kcico(w):                          # (C_out, C_in, K) -> (K, C_in, C_out)
        return jnp.transpose(w, (2, 1, 0))

    def fold_bn(w_kcico, b, gamma, beta, mean, var):
        scale = gamma / jnp.sqrt(var + BN_EPS)              # per C_out
        return w_kcico * scale[None, None, :], (b - mean) * scale + beta

    w1 = conv_w(keys[0], C1, 1, K12)
    b1 = 0.1 * jax.random.normal(keys[1], (C1,), jnp.float32)
    w2 = conv_w(keys[2], C2, C1, K12)
    b2 = 0.1 * jax.random.normal(keys[3], (C2,), jnp.float32)
    g2, be2, m2, v2 = bn_stats(keys[4], C2)
    w3 = conv_w(keys[5], C3, C2, K34)
    b3 = 0.1 * jax.random.normal(keys[6], (C3,), jnp.float32)
    w4 = conv_w(keys[7], C4, C3, K34)
    b4 = 0.1 * jax.random.normal(keys[8], (C4,), jnp.float32)
    g4, be4, m4, v4 = bn_stats(keys[9], C4)
    fc1_w = 0.05 * jax.random.normal(keys[10], (FC1, C4), jnp.float32)   # (out, in)
    fc1_b = 0.1 * jax.random.normal(keys[11], (FC1,), jnp.float32)
    fc2_w = 0.05 * jax.random.normal(keys[12], (NUM_CLASSES, FC1), jnp.float32)
    fc2_b = 0.1 * jax.random.normal(keys[13], (NUM_CLASSES,), jnp.float32)

    p = {}
    p["w1"] = to_kcico(w1).reshape(K12, C1)                 # (5, 32), C_in == 1
    p["b1"] = b1.reshape(1, C1)
    w2f, b2f = fold_bn(to_kcico(w2), b2, g2, be2, m2, v2)   # BN folded
    p["w2"], p["b2"] = w2f, b2f.reshape(1, C2)
    p["w3"] = to_kcico(w3)
    p["b3"] = b3.reshape(1, C3)
    w4f, b4f = fold_bn(to_kcico(w4), b4, g4, be4, m4, v4)   # BN folded
    p["w4"], p["b4"] = w4f, b4f.reshape(1, C4)
    p["fc1_w"] = fc1_w.T                                    # (256, 64)
    p["fc1_b"] = fc1_b.reshape(1, FC1)
    ncpad = NUM_CLASSES_PAD - NUM_CLASSES
    p["fc2_w"] = jnp.pad(fc2_w.T, ((0, 0), (0, ncpad)))     # (64, 128) lane-padded
    p["fc2_b"] = jnp.pad(fc2_b, (0, ncpad)).reshape(1, NUM_CLASSES_PAD)
    return p


if __name__ == "__main__":
    key = jax.random.PRNGKey(0)
    k_in, k_par = jax.random.split(key)
    # PyTorch-style NCL input: (batch=2, channels=1, length=64)
    x = jax.random.normal(k_in, (2, 1, 64), jnp.float32)
    params = make_params(k_par)

    out = cnn1d_forward(x, params)
    out = jax.block_until_ready(out)
    assert out.shape == (2, NUM_CLASSES), out.shape
    assert bool(jnp.all(jnp.isfinite(out)))
    print("KERNEL_OK")
</pallas_src>

<mosaic_0001>
module attributes {stable_mosaic.version = 11 : i64} {
  func.func @_cnn1d_fused_kernel(%arg0: memref<2x66x1xf32, #tpu.memory_space<vmem>>, %arg1: memref<5x32xf32, #tpu.memory_space<vmem>>, %arg2: memref<1x32xf32, #tpu.memory_space<vmem>>, %arg3: memref<5x32x64xf32, #tpu.memory_space<vmem>>, %arg4: memref<1x64xf32, #tpu.memory_space<vmem>>, %arg5: memref<3x64x128xf32, #tpu.memory_space<vmem>>, %arg6: memref<1x128xf32, #tpu.memory_space<vmem>>, %arg7: memref<3x128x256xf32, #tpu.memory_space<vmem>>, %arg8: memref<1x256xf32, #tpu.memory_space<vmem>>, %arg9: memref<256x64xf32, #tpu.memory_space<vmem>>, %arg10: memref<1x64xf32, #tpu.memory_space<vmem>>, %arg11: memref<64x128xf32, #tpu.memory_space<vmem>>, %arg12: memref<1x128xf32, #tpu.memory_space<vmem>>, %arg13: memref<2x128xf32, #tpu.memory_space<vmem>>, %arg14: memref<64x32xf32, #tpu.memory_space<vmem>>, %arg15: memref<32x64xf32, #tpu.memory_space<vmem>>, %arg16: memref<32x128xf32, #tpu.memory_space<vmem>>) attributes {dimension_semantics = [], scalar_prefetch = 0 : i64, scratch_operands = 3 : i64, tpu.core_type = #tpu.core_type<tc>} {
    %0 = tpu.iota {dimensions = array<i32: 0>} : vector<30x60xi32>
    %1 = tpu.iota {dimensions = array<i32: 1>} : vector<30x60xi32>
    %c2_i32 = arith.constant 2 : i32
    %2 = vector.broadcast %c2_i32 : i32 to vector<30x60xi32>
    %3 = arith.muli %2, %0 : vector<30x60xi32>
    %4 = arith.cmpi eq, %1, %3 : vector<30x60xi32>
    %5 = arith.extui %4 : vector<30x60xi1> to vector<30x60xi32>
    %6 = arith.sitofp %5 : vector<30x60xi32> to vector<30x60xf32>
    %c2_i32_0 = arith.constant 2 : i32
    %7 = vector.broadcast %c2_i32_0 : i32 to vector<30x60xi32>
    %8 = arith.muli %7, %0 : vector<30x60xi32>
    %c1_i32 = arith.constant 1 : i32
    %9 = vector.broadcast %c1_i32 : i32 to vector<30x60xi32>
    %10 = arith.addi %8, %9 : vector<30x60xi32>
    %11 = arith.cmpi eq, %1, %10 : vector<30x60xi32>
    %12 = arith.extui %11 : vector<30x60xi1> to vector<30x60xi32>
    %13 = arith.sitofp %12 : vector<30x60xi32> to vector<30x60xf32>
    %14 = tpu.iota {dimensions = array<i32: 0>} : vector<15x30xi32>
    %15 = tpu.iota {dimensions = array<i32: 1>} : vector<15x30xi32>
    %c2_i32_1 = arith.constant 2 : i32
    %16 = vector.broadcast %c2_i32_1 : i32 to vector<15x30xi32>
    %17 = arith.muli %16, %14 : vector<15x30xi32>
    %18 = arith.cmpi eq, %15, %17 : vector<15x30xi32>
    %19 = arith.extui %18 : vector<15x30xi1> to vector<15x30xi32>
    %20 = arith.sitofp %19 : vector<15x30xi32> to vector<15x30xf32>
    %c2_i32_2 = arith.constant 2 : i32
    %21 = vector.broadcast %c2_i32_2 : i32 to vector<15x30xi32>
    %22 = arith.muli %21, %14 : vector<15x30xi32>
    %c1_i32_3 = arith.constant 1 : i32
    %23 = vector.broadcast %c1_i32_3 : i32 to vector<15x30xi32>
    %24 = arith.addi %22, %23 : vector<15x30xi32>
    %25 = arith.cmpi eq, %15, %24 : vector<15x30xi32>
    %26 = arith.extui %25 : vector<15x30xi1> to vector<15x30xi32>
    %27 = arith.sitofp %26 : vector<15x30xi32> to vector<15x30xf32>
    %cst = arith.constant 0.000000e+00 : f32
    %28 = vector.broadcast %cst : f32 to vector<64x32xf32>
    %c0 = arith.constant 0 : index
    %c0_4 = arith.constant 0 : index
    %29 = vector.load %arg14[%c0, %c0_4] : memref<64x32xf32, #tpu.memory_space<vmem>>, vector<64x32xf32>
    tpu.vector_store %arg14[%c0, %c0_4], %28 {strides = array<i32>} : memref<64x32xf32, #tpu.memory_space<vmem>>, vector<64x32xf32>,
    %cst_5 = arith.constant 0.000000e+00 : f32
    %30 = vector.broadcast %cst_5 : f32 to vector<32x64xf32>
    %c0_6 = arith.constant 0 : index
    %c0_7 = arith.constant 0 : index
    %31 = vector.load %arg15[%c0_6, %c0_7] : memref<32x64xf32, #tpu.memory_space<vmem>>, vector<32x64xf32>
    tpu.vector_store %arg15[%c0_6, %c0_7], %30 {strides = array<i32>} : memref<32x64xf32, #tpu.memory_space<vmem>>, vector<32x64xf32>,
    %cst_8 = arith.constant 0.000000e+00 : f32
    %32 = vector.broadcast %cst_8 : f32 to vector<32x128xf32>
    %c0_9 = arith.constant 0 : index
    %c0_10 = arith.constant 0 : index
    %33 = vector.load %arg16[%c0_9, %c0_10] : memref<32x128xf32, #tpu.memory_space<vmem>>, vector<32x128xf32>
    tpu.vector_store %arg16[%c0_9, %c0_10], %32 {strides = array<i32>} : memref<32x128xf32, #tpu.memory_space<vmem>>, vector<32x128xf32>,
    %cst_11 = arith.constant 0.000000e+00 : f32
    %34 = vector.broadcast %cst_11 : f32 to vector<62x32xf32>
    %c0_12 = arith.constant 0 : index
    %c0_13 = arith.constant 0 : index
    %c0_14 = arith.constant 0 : index
    %35 = vector.load %arg0[%c0_12, %c0_13, %c0_14] : memref<2x66x1xf32, #tpu.memory_space<vmem>>, vector<1x62x1xf32>
    %36 = vector.shape_cast %35 : vector<1x62x1xf32> to vector<62x1xf32>
    %c0_15 = arith.constant 0 : index
    %c0_16 = arith.constant 0 : index
    %37 = vector.load %arg1[%c0_15, %c0_16] : memref<5x32xf32, #tpu.memory_space<vmem>>, vector<1x32xf32>
    %38 = vector.broadcast %36 : vector<62x1xf32> to vector<62x32xf32>
    %39 = vector.broadcast %37 : vector<1x32xf32> to vector<62x32xf32>
    %40 = arith.mulf %38, %39 : vector<62x32xf32>
    %41 = arith.addf %34, %40 : vector<62x32xf32>
    %c0_17 = arith.constant 0 : index
    %c1 = arith.constant 1 : index
    %c0_18 = arith.constant 0 : index
    %42 = vector.load %arg0[%c0_17, %c1, %c0_18] : memref<2x66x1xf32, #tpu.memory_space<vmem>>, vector<1x62x1xf32>
    %43 = vector.shape_cast %42 : vector<1x62x1xf32> to vector<62x1xf32>
    %c1_19 = arith.constant 1 : index
    %c0_20 = arith.constant 0 : index
    %44 = vector.load %arg1[%c1_19, %c0_20] : memref<5x32xf32, #tpu.memory_space<vmem>>, vector<1x32xf32>
    %45 = vector.broadcast %43 : vector<62x1xf32> to vector<62x32xf32>
    %46 = vector.broadcast %44 : vector<1x32xf32> to vector<62x32xf32>
    %47 = arith.mulf %45, %46 : vector<62x32xf32>
    %48 = arith.addf %41, %47 : vector<62x32xf32>
    %c0_21 = arith.constant 0 : index
    %c2 = arith.constant 2 : index
    %c0_22 = arith.constant 0 : index
    %49 = vector.load %arg0[%c0_21, %c2, %c0_22] : memref<2x66x1xf32, #tpu.memory_space<vmem>>, vector<1x62x1xf32>
    %50 = vector.shape_cast %49 : vector<1x62x1xf32> to vector<62x1xf32>
    %c2_23 = arith.constant 2 : index
    %c0_24 = arith.constant 0 : index
    %51 = vector.load %arg1[%c2_23, %c0_24] : memref<5x32xf32, #tpu.memory_space<vmem>>, vector<1x32xf32>
    %52 = vector.broadcast %50 : vector<62x1xf32> to vector<62x32xf32>
    %53 = vector.broadcast %51 : vector<1x32xf32> to vector<62x32xf32>
    %54 = arith.mulf %52, %53 : vector<62x32xf32>
    %55 = arith.addf %48, %54 : vector<62x32xf32>
    %c0_25 = arith.constant 0 : index
    %c3 = arith.constant 3 : index
    %c0_26 = arith.constant 0 : index
    %56 = vector.load %arg0[%c0_25, %c3, %c0_26] : memref<2x66x1xf32, #tpu.memory_space<vmem>>, vector<1x62x1xf32>
    %57 = vector.shape_cast %56 : vector<1x62x1xf32> to vector<62x1xf32>
    %c3_27 = arith.constant 3 : index
    %c0_28 = arith.constant 0 : index
    %58 = vector.load %arg1[%c3_27, %c0_28] : memref<5x32xf32, #tpu.memory_space<vmem>>, vector<1x32xf32>
    %59 = vector.broadcast %57 : vector<62x1xf32> to vector<62x32xf32>
    %60 = vector.broadcast %58 : vector<1x32xf32> to vector<62x32xf32>
    %61 = arith.mulf %59, %60 : vector<62x32xf32>
    %62 = arith.addf %55, %61 : vector<62x32xf32>
    %c0_29 = arith.constant 0 : index
    %c4 = arith.constant 4 : index
    %c0_30 = arith.constant 0 : index
    %63 = vector.load %arg0[%c0_29, %c4, %c0_30] : memref<2x66x1xf32, #tpu.memory_space<vmem>>, vector<1x62x1xf32>
    %64 = vector.shape_cast %63 : vector<1x62x1xf32> to vector<62x1xf32>
    %c4_31 = arith.constant 4 : index
    %c0_32 = arith.constant 0 : index
    %65 = vector.load %arg1[%c4_31, %c0_32] : memref<5x32xf32, #tpu.memory_space<vmem>>, vector<1x32xf32>
    %66 = vector.broadcast %64 : vector<62x1xf32> to vector<62x32xf32>
    %67 = vector.broadcast %65 : vector<1x32xf32> to vector<62x32xf32>
    %68 = arith.mulf %66, %67 : vector<62x32xf32>
    %69 = arith.addf %62, %68 : vector<62x32xf32>
    %c0_33 = arith.constant 0 : index
    %c0_34 = arith.constant 0 : index
    %70 = vector.load %arg2[%c0_33, %c0_34] : memref<1x32xf32, #tpu.memory_space<vmem>>, vector<1x32xf32>
    %71 = vector.broadcast %70 : vector<1x32xf32> to vector<62x32xf32>
    %72 = arith.addf %69, %71 : vector<62x32xf32>
    %cst_35 = arith.constant 0.000000e+00 : f32
    %73 = vector.broadcast %cst_35 : f32 to vector<62x32xf32>
    %74 = arith.maximumf %72, %73 : vector<62x32xf32>
    %c1_36 = arith.constant 1 : index
    %c0_37 = arith.constant 0 : index
    %75 = vector.load %arg14[%c1_36, %c0_37] : memref<64x32xf32, #tpu.memory_space<vmem>>, vector<62x32xf32>
    tpu.vector_store %arg14[%c1_36, %c0_37], %74 {strides = array<i32>} : memref<64x32xf32, #tpu.memory_space<vmem>>, vector<62x32xf32>,
    %cst_38 = arith.constant 0.000000e+00 : f32
    %76 = vector.broadcast %cst_38 : f32 to vector<60x64xf32>
    %c0_39 = arith.constant 0 : index
    %c0_40 = arith.constant 0 : index
    %77 = vector.load %arg14[%c0_39, %c0_40] : memref<64x32xf32, #tpu.memory_space<vmem>>, vector<60x32xf32>
    %c0_41 = arith.constant 0 : index
    %c0_42 = arith.constant 0 : index
    %c0_43 = arith.constant 0 : index
    %78 = vector.load %arg3[%c0_41, %c0_42, %c0_43] : memref<5x32x64xf32, #tpu.memory_space<vmem>>, vector<1x32x64xf32>
    %79 = vector.shape_cast %78 : vector<1x32x64xf32> to vector<32x64xf32>
    %cst_44 = arith.constant dense<0.000000e+00> : vector<60x64xf32>
    %80 = tpu.matmul %77, %79, %cst_44 {dimension_numbers = #tpu.dot_dimension_numbers<[1], [0], [0], [1], [0, 0, 1, 1], [], []>} : vector<60x32xf32>, vector<32x64xf32>, vector<60x64xf32> -> vector<60x64xf32>
    %81 = arith.addf %76, %80 : vector<60x64xf32>
    %c1_45 = arith.constant 1 : index
    %c0_46 = arith.constant 0 : index
    %82 = vector.load %arg14[%c1_45, %c0_46] : memref<64x32xf32, #tpu.memory_space<vmem>>, vector<60x32xf32>
    %c1_47 = arith.constant 1 : index
    %c0_48 = arith.constant 0 : index
    %c0_49 = arith.constant 0 : index
    %83 = vector.load %arg3[%c1_47, %c0_48, %c0_49] : memref<5x32x64xf32, #tpu.memory_space<vmem>>, vector<1x32x64xf32>
    %84 = vector.shape_cast %83 : vector<1x32x64xf32> to vector<32x64xf32>
    %cst_50 = arith.constant dense<0.000000e+00> : vector<60x64xf32>
    %85 = tpu.matmul %82, %84, %cst_50 {dimension_numbers = #tpu.dot_dimension_numbers<[1], [0], [0], [1], [0, 0, 1, 1], [], []>} : vector<60x32xf32>, vector<32x64xf32>, vector<60x64xf32> -> vector<60x64xf32>
    %86 = arith.addf %81, %85 : vector<60x64xf32>
    %c2_51 = arith.constant 2 : index
    %c0_52 = arith.constant 0 : index
    %87 = vector.load %arg14[%c2_51, %c0_52] : memref<64x32xf32, #tpu.memory_space<vmem>>, vector<60x32xf32>
    %c2_53 = arith.constant 2 : index
    %c0_54 = arith.constant 0 : index
    %c0_55 = arith.constant 0 : index
    %88 = vector.load %arg3[%c2_53, %c0_54, %c0_55] : memref<5x32x64xf32, #tpu.memory_space<vmem>>, vector<1x32x64xf32>
    %89 = vector.shape_cast %88 : vector<1x32x64xf32> to vector<32x64xf32>
    %cst_56 = arith.constant dense<0.000000e+00> : vector<60x64xf32>
    %90 = tpu.matmul %87, %89, %cst_56 {dimension_numbers = #tpu.dot_dimension_numbers<[1], [0], [0], [1], [0, 0, 1, 1], [], []>} : vector<60x32xf32>, vector<32x64xf32>, vector<60x64xf32> -> vector<60x64xf32>
    %91 = arith.addf %86, %90 : vector<60x64xf32>
    %c3_57 = arith.constant 3 : index
    %c0_58 = arith.constant 0 : index
    %92 = vector.load %arg14[%c3_57, %c0_58] : memref<64x32xf32, #tpu.memory_space<vmem>>, vector<60x32xf32>
    %c3_59 = arith.constant 3 : index
    %c0_60 = arith.constant 0 : index
    %c0_61 = arith.constant 0 : index
    %93 = vector.load %arg3[%c3_59, %c0_60, %c0_61] : memref<5x32x64xf32, #tpu.memory_space<vmem>>, vector<1x32x64xf32>
    %94 = vector.shape_cast %93 : vector<1x32x64xf32> to vector<32x64xf32>
    %cst_62 = arith.constant dense<0.000000e+00> : vector<60x64xf32>
    %95 = tpu.matmul %92, %94, %cst_62 {dimension_numbers = #tpu.dot_dimension_numbers<[1], [0], [0], [1], [0, 0, 1, 1], [], []>} : vector<60x32xf32>, vector<32x64xf32>, vector<60x64xf32> -> vector<60x64xf32>
    %96 = arith.addf %91, %95 : vector<60x64xf32>
    %c4_63 = arith.constant 4 : index
    %c0_64 = arith.constant 0 : index
    %97 = vector.load %arg14[%c4_63, %c0_64] : memref<64x32xf32, #tpu.memory_space<vmem>>, vector<60x32xf32>
    %c4_65 = arith.constant 4 : index
    %c0_66 = arith.constant 0 : index
    %c0_67 = arith.constant 0 : index
    %98 = vector.load %arg3[%c4_65, %c0_66, %c0_67] : memref<5x32x64xf32, #tpu.memory_space<vmem>>, vector<1x32x64xf32>
    %99 = vector.shape_cast %98 : vector<1x32x64xf32> to vector<32x64xf32>
    %cst_68 = arith.constant dense<0.000000e+00> : vector<60x64xf32>
    %100 = tpu.matmul %97, %99, %cst_68 {dimension_numbers = #tpu.dot_dimension_numbers<[1], [0], [0], [1], [0, 0, 1, 1], [], []>} : vector<60x32xf32>, vector<32x64xf32>, vector<60x64xf32> -> vector<60x64xf32>
    %101 = arith.addf %96, %100 : vector<60x64xf32>
    %c0_69 = arith.constant 0 : index
    %c0_70 = arith.constant 0 : index
    %102 = vector.load %arg4[%c0_69, %c0_70] : memref<1x64xf32, #tpu.memory_space<vmem>>, vector<1x64xf32>
    %103 = vector.broadcast %102 : vector<1x64xf32> to vector<60x64xf32>
    %104 = arith.addf %101, %103 : vector<60x64xf32>
    %cst_71 = arith.constant 0.000000e+00 : f32
    %105 = vector.broadcast %cst_71 : f32 to vector<60x64xf32>
    %106 = arith.maximumf %104, %105 : vector<60x64xf32>
    %cst_72 = arith.constant dense<0.000000e+00> : vector<30x64xf32>
    %107 = tpu.matmul %6, %106, %cst_72 {dimension_numbers = #tpu.dot_dimension_numbers<[1], [0], [0], [1], [0, 0, 1, 1], [], []>} : vector<30x60xf32>, vector<60x64xf32>, vector<30x64xf32> -> vector<30x64xf32>
    %cst_73 = arith.constant dense<0.000000e+00> : vector<30x64xf32>
    %108 = tpu.matmul %13, %106, %cst_73 {dimension_numbers = #tpu.dot_dimension_numbers<[1], [0], [0], [1], [0, 0, 1, 1], [], []>} : vector<30x60xf32>, vector<60x64xf32>, vector<30x64xf32> -> vector<30x64xf32>
    %109 = arith.maximumf %107, %108 : vector<30x64xf32>
    %c1_74 = arith.constant 1 : index
    %c0_75 = arith.constant 0 : index
    %110 = vector.load %arg15[%c1_74, %c0_75] : memref<32x64xf32, #tpu.memory_space<vmem>>, vector<30x64xf32>
    tpu.vector_store %arg15[%c1_74, %c0_75], %109 {strides = array<i32>} : memref<32x64xf32, #tpu.memory_space<vmem>>, vector<30x64xf32>,
    %cst_76 = arith.constant 0.000000e+00 : f32
    %111 = vector.broadcast %cst_76 : f32 to vector<30x128xf32>
    %c0_77 = arith.constant 0 : index
    %c0_78 = arith.constant 0 : index
    %112 = vector.load %arg15[%c0_77, %c0_78] : memref<32x64xf32, #tpu.memory_space<vmem>>, vector<30x64xf32>
    %c0_79 = arith.constant 0 : index
    %c0_80 = arith.constant 0 : index
    %c0_81 = arith.constant 0 : index
    %113 = vector.load %arg5[%c0_79, %c0_80, %c0_81] : memref<3x64x128xf32, #tpu.memory_space<vmem>>, vector<1x64x128xf32>
    %114 = vector.shape_cast %113 : vector<1x64x128xf32> to vector<64x128xf32>
    %cst_82 = arith.constant dense<0.000000e+00> : vector<30x128xf32>
    %115 = tpu.matmul %112, %114, %cst_82 {dimension_numbers = #tpu.dot_dimension_numbers<[1], [0], [0], [1], [0, 0, 1, 1], [], []>} : vector<30x64xf32>, vector<64x128xf32>, vector<30x128xf32> -> vector<30x128xf32>
    %116 = arith.addf %111, %115 : vector<30x128xf32>
    %c1_83 = arith.constant 1 : index
    %c0_84 = arith.constant 0 : index
    %117 = vector.load %arg15[%c1_83, %c0_84] : memref<32x64xf32, #tpu.memory_space<vmem>>, vector<30x64xf32>
    %c1_85 = arith.constant 1 : index
    %c0_86 = arith.constant 0 : index
    %c0_87 = arith.constant 0 : index
    %118 = vector.load %arg5[%c1_85, %c0_86, %c0_87] : memref<3x64x128xf32, #tpu.memory_space<vmem>>, vector<1x64x128xf32>
    %119 = vector.shape_cast %118 : vector<1x64x128xf32> to vector<64x128xf32>
    %cst_88 = arith.constant dense<0.000000e+00> : vector<30x128xf32>
    %120 = tpu.matmul %117, %119, %cst_88 {dimension_numbers = #tpu.dot_dimension_numbers<[1], [0], [0], [1], [0, 0, 1, 1], [], []>} : vector<30x64xf32>, vector<64x128xf32>, vector<30x128xf32> -> vector<30x128xf32>
    %121 = arith.addf %116, %120 : vector<30x128xf32>
    %c2_89 = arith.constant 2 : index
    %c0_90 = arith.constant 0 : index
    %122 = vector.load %arg15[%c2_89, %c0_90] : memref<32x64xf32, #tpu.memory_space<vmem>>, vector<30x64xf32>
    %c2_91 = arith.constant 2 : index
    %c0_92 = arith.constant 0 : index
    %c0_93 = arith.constant 0 : index
    %123 = vector.load %arg5[%c2_91, %c0_92, %c0_93] : memref<3x64x128xf32, #tpu.memory_space<vmem>>, vector<1x64x128xf32>
    %124 = vector.shape_cast %123 : vector<1x64x128xf32> to vector<64x128xf32>
    %cst_94 = arith.constant dense<0.000000e+00> : vector<30x128xf32>
    %125 = tpu.matmul %122, %124, %cst_94 {dimension_numbers = #tpu.dot_dimension_numbers<[1], [0], [0], [1], [0, 0, 1, 1], [], []>} : vector<30x64xf32>, vector<64x128xf32>, vector<30x128xf32> -> vector<30x128xf32>
    %126 = arith.addf %121, %125 : vector<30x128xf32>
    %c0_95 = arith.constant 0 : index
    %c0_96 = arith.constant 0 : index
    %127 = vector.load %arg6[%c0_95, %c0_96] : memref<1x128xf32, #tpu.memory_space<vmem>>, vector<1x128xf32>
    %128 = vector.broadcast %127 : vector<1x128xf32> to vector<30x128xf32>
    %129 = arith.addf %126, %128 : vector<30x128xf32>
    %cst_97 = arith.constant 0.000000e+00 : f32
    %130 = vector.broadcast %cst_97 : f32 to vector<30x128xf32>
    %131 = arith.maximumf %129, %130 : vector<30x128xf32>
    %c1_98 = arith.constant 1 : index
    %c0_99 = arith.constant 0 : index
    %132 = vector.load %arg16[%c1_98, %c0_99] : memref<32x128xf32, #tpu.memory_space<vmem>>, vector<30x128xf32>
    tpu.vector_store %arg16[%c1_98, %c0_99], %131 {strides = array<i32>} : memref<32x128xf32, #tpu.memory_space<vmem>>, vector<30x128xf32>,
    %cst_100 = arith.constant 0.000000e+00 : f32
    %133 = vector.broadcast %cst_100 : f32 to vector<30x256xf32>
    %c0_101 = arith.constant 0 : index
    %c0_102 = arith.constant 0 : index
    %134 = vector.load %arg16[%c0_101, %c0_102] : memref<32x128xf32, #tpu.memory_space<vmem>>, vector<30x128xf32>
    %c0_103 = arith.constant 0 : index
    %c0_104 = arith.constant 0 : index
    %c0_105 = arith.constant 0 : index
    %135 = vector.load %arg7[%c0_103, %c0_104, %c0_105] : memref<3x128x256xf32, #tpu.memory_space<vmem>>, vector<1x128x256xf32>
    %136 = vector.shape_cast %135 : vector<1x128x256xf32> to vector<128x256xf32>
    %cst_106 = arith.constant dense<0.000000e+00> : vector<30x256xf32>
    %137 = tpu.matmul %134, %136, %cst_106 {dimension_numbers = #tpu.dot_dimension_numbers<[1], [0], [0], [1], [0, 0, 1, 1], [], []>} : vector<30x128xf32>, vector<128x256xf32>, vector<30x256xf32> -> vector<30x256xf32>
    %138 = arith.addf %133, %137 : vector<30x256xf32>
    %c1_107 = arith.constant 1 : index
    %c0_108 = arith.constant 0 : index
    %139 = vector.load %arg16[%c1_107, %c0_108] : memref<32x128xf32, #tpu.memory_space<vmem>>, vector<30x128xf32>
    %c1_109 = arith.constant 1 : index
    %c0_110 = arith.constant 0 : index
    %c0_111 = arith.constant 0 : index
    %140 = vector.load %arg7[%c1_109, %c0_110, %c0_111] : memref<3x128x256xf32, #tpu.memory_space<vmem>>, vector<1x128x256xf32>
    %141 = vector.shape_cast %140 : vector<1x128x256xf32> to vector<128x256xf32>
    %cst_112 = arith.constant dense<0.000000e+00> : vector<30x256xf32>
    %142 = tpu.matmul %139, %141, %cst_112 {dimension_numbers = #tpu.dot_dimension_numbers<[1], [0], [0], [1], [0, 0, 1, 1], [], []>} : vector<30x128xf32>, vector<128x256xf32>, vector<30x256xf32> -> vector<30x256xf32>
    %143 = arith.addf %138, %142 : vector<30x256xf32>
    %c2_113 = arith.constant 2 : index
    %c0_114 = arith.constant 0 : index
    %144 = vector.load %arg16[%c2_113, %c0_114] : memref<32x128xf32, #tpu.memory_space<vmem>>, vector<30x128xf32>
    %c2_115 = arith.constant 2 : index
    %c0_116 = arith.constant 0 : index
    %c0_117 = arith.constant 0 : index
    %145 = vector.load %arg7[%c2_115, %c0_116, %c0_117] : memref<3x128x256xf32, #tpu.memory_space<vmem>>, vector<1x128x256xf32>
    %146 = vector.shape_cast %145 : vector<1x128x256xf32> to vector<128x256xf32>
    %cst_118 = arith.constant dense<0.000000e+00> : vector<30x256xf32>
    %147 = tpu.matmul %144, %146, %cst_118 {dimension_numbers = #tpu.dot_dimension_numbers<[1], [0], [0], [1], [0, 0, 1, 1], [], []>} : vector<30x128xf32>, vector<128x256xf32>, vector<30x256xf32> -> vector<30x256xf32>
    %148 = arith.addf %143, %147 : vector<30x256xf32>
    %c0_119 = arith.constant 0 : index
    %c0_120 = arith.constant 0 : index
    %149 = vector.load %arg8[%c0_119, %c0_120] : memref<1x256xf32, #tpu.memory_space<vmem>>, vector<1x256xf32>
    %150 = vector.broadcast %149 : vector<1x256xf32> to vector<30x256xf32>
    %151 = arith.addf %148, %150 : vector<30x256xf32>
    %cst_121 = arith.constant 0.000000e+00 : f32
    %152 = vector.broadcast %cst_121 : f32 to vector<30x256xf32>
    %153 = arith.maximumf %151, %152 : vector<30x256xf32>
    %cst_122 = arith.constant dense<0.000000e+00> : vector<15x256xf32>
    %154 = tpu.matmul %20, %153, %cst_122 {dimension_numbers = #tpu.dot_dimension_numbers<[1], [0], [0], [1], [0, 0, 1, 1], [], []>} : vector<15x30xf32>, vector<30x256xf32>, vector<15x256xf32> -> vector<15x256xf32>
    %cst_123 = arith.constant dense<0.000000e+00> : vector<15x256xf32>
    %155 = tpu.matmul %27, %153, %cst_123 {dimension_numbers = #tpu.dot_dimension_numbers<[1], [0], [0], [1], [0, 0, 1, 1], [], []>} : vector<15x30xf32>, vector<30x256xf32>, vector<15x256xf32> -> vector<15x256xf32>
    %156 = arith.maximumf %154, %155 : vector<15x256xf32>
    %cst_124 = arith.constant dense<0.000000e+00> : vector<256xf32>
    %157 = vector.multi_reduction <add>, %156, %cst_124 [0] : vector<15x256xf32> to vector<256xf32>
    %158 = vector.shape_cast %157 : vector<256xf32> to vector<1x256xf32>
    %cst_125 = arith.constant 0.0666666701 : f32
    %159 = vector.broadcast %cst_125 : f32 to vector<1x256xf32>
    %160 = arith.mulf %158, %159 : vector<1x256xf32>
    %c0_126 = arith.constant 0 : index
    %c0_127 = arith.constant 0 : index
    %161 = vector.load %arg9[%c0_126, %c0_127] : memref<256x64xf32, #tpu.memory_space<vmem>>, vector<256x64xf32>
    %cst_128 = arith.constant dense<0.000000e+00> : vector<1x64xf32>
    %162 = tpu.matmul %160, %161, %cst_128 {dimension_numbers = #tpu.dot_dimension_numbers<[1], [0], [0], [1], [0, 0, 1, 1], [], []>} : vector<1x256xf32>, vector<256x64xf32>, vector<1x64xf32> -> vector<1x64xf32>
    %c0_129 = arith.constant 0 : index
    %c0_130 = arith.constant 0 : index
    %163 = vector.load %arg10[%c0_129, %c0_130] : memref<1x64xf32, #tpu.memory_space<vmem>>, vector<1x64xf32>
    %164 = arith.addf %162, %163 : vector<1x64xf32>
    %c0_131 = arith.constant 0 : index
    %c0_132 = arith.constant 0 : index
    %165 = vector.load %arg11[%c0_131, %c0_132] : memref<64x128xf32, #tpu.memory_space<vmem>>, vector<64x128xf32>
    %cst_133 = arith.constant dense<0.000000e+00> : vector<1x128xf32>
    %166 = tpu.matmul %164, %165, %cst_133 {dimension_numbers = #tpu.dot_dimension_numbers<[1], [0], [0], [1], [0, 0, 1, 1], [], []>} : vector<1x64xf32>, vector<64x128xf32>, vector<1x128xf32> -> vector<1x128xf32>
    %c0_134 = arith.constant 0 : index
    %c0_135 = arith.constant 0 : index
    %167 = vector.load %arg12[%c0_134, %c0_135] : memref<1x128xf32, #tpu.memory_space<vmem>>, vector<1x128xf32>
    %168 = arith.addf %166, %167 : vector<1x128xf32>
    %c0_136 = arith.constant 0 : index
    %c0_137 = arith.constant 0 : index
    %169 = vector.load %arg13[%c0_136, %c0_137] : memref<2x128xf32, #tpu.memory_space<vmem>>, vector<1x128xf32>
    tpu.vector_store %arg13[%c0_136, %c0_137], %168 {strides = array<i32>} : memref<2x128xf32, #tpu.memory_space<vmem>>, vector<1x128xf32>,
    %cst_138 = arith.constant 0.000000e+00 : f32
    %170 = vector.broadcast %cst_138 : f32 to vector<62x32xf32>
    %c1_139 = arith.constant 1 : index
    %c0_140 = arith.constant 0 : index
    %c0_141 = arith.constant 0 : index
    %171 = vector.load %arg0[%c1_139, %c0_140, %c0_141] : memref<2x66x1xf32, #tpu.memory_space<vmem>>, vector<1x62x1xf32>
    %172 = vector.shape_cast %171 : vector<1x62x1xf32> to vector<62x1xf32>
    %c0_142 = arith.constant 0 : index
    %c0_143 = arith.constant 0 : index
    %173 = vector.load %arg1[%c0_142, %c0_143] : memref<5x32xf32, #tpu.memory_space<vmem>>, vector<1x32xf32>
    %174 = vector.broadcast %172 : vector<62x1xf32> to vector<62x32xf32>
    %175 = vector.broadcast %173 : vector<1x32xf32> to vector<62x32xf32>
    %176 = arith.mulf %174, %175 : vector<62x32xf32>
    %177 = arith.addf %170, %176 : vector<62x32xf32>
    %c1_144 = arith.constant 1 : index
    %c1_145 = arith.constant 1 : index
    %c0_146 = arith.constant 0 : index
    %178 = vector.load %arg0[%c1_144, %c1_145, %c0_146] : memref<2x66x1xf32, #tpu.memory_space<vmem>>, vector<1x62x1xf32>
    %179 = vector.shape_cast %178 : vector<1x62x1xf32> to vector<62x1xf32>
    %c1_147 = arith.constant 1 : index
    %c0_148 = arith.constant 0 : index
    %180 = vector.load %arg1[%c1_147, %c0_148] : memref<5x32xf32, #tpu.memory_space<vmem>>, vector<1x32xf32>
    %181 = vector.broadcast %179 : vector<62x1xf32> to vector<62x32xf32>
    %182 = vector.broadcast %180 : vector<1x32xf32> to vector<62x32xf32>
    %183 = arith.mulf %181, %182 : vector<62x32xf32>
    %184 = arith.addf %177, %183 : vector<62x32xf32>
    %c1_149 = arith.constant 1 : index
    %c2_150 = arith.constant 2 : index
    %c0_151 = arith.constant 0 : index
    %185 = vector.load %arg0[%c1_149, %c2_150, %c0_151] : memref<2x66x1xf32, #tpu.memory_space<vmem>>, vector<1x62x1xf32>
    %186 = vector.shape_cast %185 : vector<1x62x1xf32> to vector<62x1xf32>
    %c2_152 = arith.constant 2 : index
    %c0_153 = arith.constant 0 : index
    %187 = vector.load %arg1[%c2_152, %c0_153] : memref<5x32xf32, #tpu.memory_space<vmem>>, vector<1x32xf32>
    %188 = vector.broadcast %186 : vector<62x1xf32> to vector<62x32xf32>
    %189 = vector.broadcast %187 : vector<1x32xf32> to vector<62x32xf32>
    %190 = arith.mulf %188, %189 : vector<62x32xf32>
    %191 = arith.addf %184, %190 : vector<62x32xf32>
    %c1_154 = arith.constant 1 : index
    %c3_155 = arith.constant 3 : index
    %c0_156 = arith.constant 0 : index
    %192 = vector.load %arg0[%c1_154, %c3_155, %c0_156] : memref<2x66x1xf32, #tpu.memory_space<vmem>>, vector<1x62x1xf32>
    %193 = vector.shape_cast %192 : vector<1x62x1xf32> to vector<62x1xf32>
    %c3_157 = arith.constant 3 : index
    %c0_158 = arith.constant 0 : index
    %194 = vector.load %arg1[%c3_157, %c0_158] : memref<5x32xf32, #tpu.memory_space<vmem>>, vector<1x32xf32>
    %195 = vector.broadcast %193 : vector<62x1xf32> to vector<62x32xf32>
    %196 = vector.broadcast %194 : vector<1x32xf32> to vector<62x32xf32>
    %197 = arith.mulf %195, %196 : vector<62x32xf32>
    %198 = arith.addf %191, %197 : vector<62x32xf32>
    %c1_159 = arith.constant 1 : index
    %c4_160 = arith.constant 4 : index
    %c0_161 = arith.constant 0 : index
    %199 = vector.load %arg0[%c1_159, %c4_160, %c0_161] : memref<2x66x1xf32, #tpu.memory_space<vmem>>, vector<1x62x1xf32>
    %200 = vector.shape_cast %199 : vector<1x62x1xf32> to vector<62x1xf32>
    %c4_162 = arith.constant 4 : index
    %c0_163 = arith.constant 0 : index
    %201 = vector.load %arg1[%c4_162, %c0_163] : memref<5x32xf32, #tpu.memory_space<vmem>>, vector<1x32xf32>
    %202 = vector.broadcast %200 : vector<62x1xf32> to vector<62x32xf32>
    %203 = vector.broadcast %201 : vector<1x32xf32> to vector<62x32xf32>
    %204 = arith.mulf %202, %203 : vector<62x32xf32>
    %205 = arith.addf %198, %204 : vector<62x32xf32>
    %c0_164 = arith.constant 0 : index
    %c0_165 = arith.constant 0 : index
    %206 = vector.load %arg2[%c0_164, %c0_165] : memref<1x32xf32, #tpu.memory_space<vmem>>, vector<1x32xf32>
    %207 = vector.broadcast %206 : vector<1x32xf32> to vector<62x32xf32>
    %208 = arith.addf %205, %207 : vector<62x32xf32>
    %cst_166 = arith.constant 0.000000e+00 : f32
    %209 = vector.broadcast %cst_166 : f32 to vector<62x32xf32>
    %210 = arith.maximumf %208, %209 : vector<62x32xf32>
    %c1_167 = arith.constant 1 : index
    %c0_168 = arith.constant 0 : index
    %211 = vector.load %arg14[%c1_167, %c0_168] : memref<64x32xf32, #tpu.memory_space<vmem>>, vector<62x32xf32>
    tpu.vector_store %arg14[%c1_167, %c0_168], %210 {strides = array<i32>} : memref<64x32xf32, #tpu.memory_space<vmem>>, vector<62x32xf32>,
    %cst_169 = arith.constant 0.000000e+00 : f32
    %212 = vector.broadcast %cst_169 : f32 to vector<60x64xf32>
    %c0_170 = arith.constant 0 : index
    %c0_171 = arith.constant 0 : index
    %213 = vector.load %arg14[%c0_170, %c0_171] : memref<64x32xf32, #tpu.memory_space<vmem>>, vector<60x32xf32>
    %c0_172 = arith.constant 0 : index
    %c0_173 = arith.constant 0 : index
    %c0_174 = arith.constant 0 : index
    %214 = vector.load %arg3[%c0_172, %c0_173, %c0_174] : memref<5x32x64xf32, #tpu.memory_space<vmem>>, vector<1x32x64xf32>
    %215 = vector.shape_cast %214 : vector<1x32x64xf32> to vector<32x64xf32>
    %cst_175 = arith.constant dense<0.000000e+00> : vector<60x64xf32>
    %216 = tpu.matmul %213, %215, %cst_175 {dimension_numbers = #tpu.dot_dimension_numbers<[1], [0], [0], [1], [0, 0, 1, 1], [], []>} : vector<60x32xf32>, vector<32x64xf32>, vector<60x64xf32> -> vector<60x64xf32>
    %217 = arith.addf %212, %216 : vector<60x64xf32>
    %c1_176 = arith.constant 1 : index
    %c0_177 = arith.constant 0 : index
    %218 = vector.load %arg14[%c1_176, %c0_177] : memref<64x32xf32, #tpu.memory_space<vmem>>, vector<60x32xf32>
    %c1_178 = arith.constant 1 : index
    %c0_179 = arith.constant 0 : index
    %c0_180 = arith.constant 0 : index
    %219 = vector.load %arg3[%c1_178, %c0_179, %c0_180] : memref<5x32x64xf32, #tpu.memory_space<vmem>>, vector<1x32x64xf32>
    %220 = vector.shape_cast %219 : vector<1x32x64xf32> to vector<32x64xf32>
    %cst_181 = arith.constant dense<0.000000e+00> : vector<60x64xf32>
    %221 = tpu.matmul %218, %220, %cst_181 {dimension_numbers = #tpu.dot_dimension_numbers<[1], [0], [0], [1], [0, 0, 1, 1], [], []>} : vector<60x32xf32>, vector<32x64xf32>, vector<60x64xf32> -> vector<60x64xf32>
    %222 = arith.addf %217, %221 : vector<60x64xf32>
    %c2_182 = arith.constant 2 : index
    %c0_183 = arith.constant 0 : index
    %223 = vector.load %arg14[%c2_182, %c0_183] : memref<64x32xf32, #tpu.memory_space<vmem>>, vector<60x32xf32>
    %c2_184 = arith.constant 2 : index
    %c0_185 = arith.constant 0 : index
    %c0_186 = arith.constant 0 : index
    %224 = vector.load %arg3[%c2_184, %c0_185, %c0_186] : memref<5x32x64xf32, #tpu.memory_space<vmem>>, vector<1x32x64xf32>
    %225 = vector.shape_cast %224 : vector<1x32x64xf32> to vector<32x64xf32>
    %cst_187 = arith.constant dense<0.000000e+00> : vector<60x64xf32>
    %226 = tpu.matmul %223, %225, %cst_187 {dimension_numbers = #tpu.dot_dimension_numbers<[1], [0], [0], [1], [0, 0, 1, 1], [], []>} : vector<60x32xf32>, vector<32x64xf32>, vector<60x64xf32> -> vector<60x64xf32>
    %227 = arith.addf %222, %226 : vector<60x64xf32>
    %c3_188 = arith.constant 3 : index
    %c0_189 = arith.constant 0 : index
    %228 = vector.load %arg14[%c3_188, %c0_189] : memref<64x32xf32, #tpu.memory_space<vmem>>, vector<60x32xf32>
    %c3_190 = arith.constant 3 : index
    %c0_191 = arith.constant 0 : index
    %c0_192 = arith.constant 0 : index
    %229 = vector.load %arg3[%c3_190, %c0_191, %c0_192] : memref<5x32x64xf32, #tpu.memory_space<vmem>>, vector<1x32x64xf32>
    %230 = vector.shape_cast %229 : vector<1x32x64xf32> to vector<32x64xf32>
    %cst_193 = arith.constant dense<0.000000e+00> : vector<60x64xf32>
    %231 = tpu.matmul %228, %230, %cst_193 {dimension_numbers = #tpu.dot_dimension_numbers<[1], [0], [0], [1], [0, 0, 1, 1], [], []>} : vector<60x32xf32>, vector<32x64xf32>, vector<60x64xf32> -> vector<60x64xf32>
    %232 = arith.addf %227, %231 : vector<60x64xf32>
    %c4_194 = arith.constant 4 : index
    %c0_195 = arith.constant 0 : index
    %233 = vector.load %arg14[%c4_194, %c0_195] : memref<64x32xf32, #tpu.memory_space<vmem>>, vector<60x32xf32>
    %c4_196 = arith.constant 4 : index
    %c0_197 = arith.constant 0 : index
    %c0_198 = arith.constant 0 : index
    %234 = vector.load %arg3[%c4_196, %c0_197, %c0_198] : memref<5x32x64xf32, #tpu.memory_space<vmem>>, vector<1x32x64xf32>
    %235 = vector.shape_cast %234 : vector<1x32x64xf32> to vector<32x64xf32>
    %cst_199 = arith.constant dense<0.000000e+00> : vector<60x64xf32>
    %236 = tpu.matmul %233, %235, %cst_199 {dimension_numbers = #tpu.dot_dimension_numbers<[1], [0], [0], [1], [0, 0, 1, 1], [], []>} : vector<60x32xf32>, vector<32x64xf32>, vector<60x64xf32> -> vector<60x64xf32>
    %237 = arith.addf %232, %236 : vector<60x64xf32>
    %c0_200 = arith.constant 0 : index
    %c0_201 = arith.constant 0 : index
    %238 = vector.load %arg4[%c0_200, %c0_201] : memref<1x64xf32, #tpu.memory_space<vmem>>, vector<1x64xf32>
    %239 = vector.broadcast %238 : vector<1x64xf32> to vector<60x64xf32>
    %240 = arith.addf %237, %239 : vector<60x64xf32>
    %cst_202 = arith.constant 0.000000e+00 : f32
    %241 = vector.broadcast %cst_202 : f32 to vector<60x64xf32>
    %242 = arith.maximumf %240, %241 : vector<60x64xf32>
    %cst_203 = arith.constant dense<0.000000e+00> : vector<30x64xf32>
    %243 = tpu.matmul %6, %242, %cst_203 {dimension_numbers = #tpu.dot_dimension_numbers<[1], [0], [0], [1], [0, 0, 1, 1], [], []>} : vector<30x60xf32>, vector<60x64xf32>, vector<30x64xf32> -> vector<30x64xf32>
    %cst_204 = arith.constant dense<0.000000e+00> : vector<30x64xf32>
    %244 = tpu.matmul %13, %242, %cst_204 {dimension_numbers = #tpu.dot_dimension_numbers<[1], [0], [0], [1], [0, 0, 1, 1], [], []>} : vector<30x60xf32>, vector<60x64xf32>, vector<30x64xf32> -> vector<30x64xf32>
    %245 = arith.maximumf %243, %244 : vector<30x64xf32>
    %c1_205 = arith.constant 1 : index
    %c0_206 = arith.constant 0 : index
    %246 = vector.load %arg15[%c1_205, %c0_206] : memref<32x64xf32, #tpu.memory_space<vmem>>, vector<30x64xf32>
    tpu.vector_store %arg15[%c1_205, %c0_206], %245 {strides = array<i32>} : memref<32x64xf32, #tpu.memory_space<vmem>>, vector<30x64xf32>,
    %cst_207 = arith.constant 0.000000e+00 : f32
    %247 = vector.broadcast %cst_207 : f32 to vector<30x128xf32>
    %c0_208 = arith.constant 0 : index
    %c0_209 = arith.constant 0 : index
    %248 = vector.load %arg15[%c0_208, %c0_209] : memref<32x64xf32, #tpu.memory_space<vmem>>, vector<30x64xf32>
    %c0_210 = arith.constant 0 : index
    %c0_211 = arith.constant 0 : index
    %c0_212 = arith.constant 0 : index
    %249 = vector.load %arg5[%c0_210, %c0_211, %c0_212] : memref<3x64x128xf32, #tpu.memory_space<vmem>>, vector<1x64x128xf32>
    %250 = vector.shape_cast %249 : vector<1x64x128xf32> to vector<64x128xf32>
    %cst_213 = arith.constant dense<0.000000e+00> : vector<30x128xf32>
    %251 = tpu.matmul %248, %250, %cst_213 {dimension_numbers = #tpu.dot_dimension_numbers<[1], [0], [0], [1], [0, 0, 1, 1], [], []>} : vector<30x64xf32>, vector<64x128xf32>, vector<30x128xf32> -> vector<30x128xf32>
    %252 = arith.addf %247, %251 : vector<30x128xf32>
    %c1_214 = arith.constant 1 : index
    %c0_215 = arith.constant 0 : index
    %253 = vector.load %arg15[%c1_214, %c0_215] : memref<32x64xf32, #tpu.memory_space<vmem>>, vector<30x64xf32>
    %c1_216 = arith.constant 1 : index
    %c0_217 = arith.constant 0 : index
    %c0_218 = arith.constant 0 : index
    %254 = vector.load %arg5[%c1_216, %c0_217, %c0_218] : memref<3x64x128xf32, #tpu.memory_space<vmem>>, vector<1x64x128xf32>
    %255 = vector.shape_cast %254 : vector<1x64x128xf32> to vector<64x128xf32>
    %cst_219 = arith.constant dense<0.000000e+00> : vector<30x128xf32>
    %256 = tpu.matmul %253, %255, %cst_219 {dimension_numbers = #tpu.dot_dimension_numbers<[1], [0], [0], [1], [0, 0, 1, 1], [], []>} : vector<30x64xf32>, vector<64x128xf32>, vector<30x128xf32> -> vector<30x128xf32>
    %257 = arith.addf %252, %256 : vector<30x128xf32>
    %c2_220 = arith.constant 2 : index
    %c0_221 = arith.constant 0 : index
    %258 = vector.load %arg15[%c2_220, %c0_221] : memref<32x64xf32, #tpu.memory_space<vmem>>, vector<30x64xf32>
    %c2_222 = arith.constant 2 : index
    %c0_223 = arith.constant 0 : index
    %c0_224 = arith.constant 0 : index
    %259 = vector.load %arg5[%c2_222, %c0_223, %c0_224] : memref<3x64x128xf32, #tpu.memory_space<vmem>>, vector<1x64x128xf32>
    %260 = vector.shape_cast %259 : vector<1x64x128xf32> to vector<64x128xf32>
    %cst_225 = arith.constant dense<0.000000e+00> : vector<30x128xf32>
    %261 = tpu.matmul %258, %260, %cst_225 {dimension_numbers = #tpu.dot_dimension_numbers<[1], [0], [0], [1], [0, 0, 1, 1], [], []>} : vector<30x64xf32>, vector<64x128xf32>, vector<30x128xf32> -> vector<30x128xf32>
    %262 = arith.addf %257, %261 : vector<30x128xf32>
    %c0_226 = arith.constant 0 : index
    %c0_227 = arith.constant 0 : index
    %263 = vector.load %arg6[%c0_226, %c0_227] : memref<1x128xf32, #tpu.memory_space<vmem>>, vector<1x128xf32>
    %264 = vector.broadcast %263 : vector<1x128xf32> to vector<30x128xf32>
    %265 = arith.addf %262, %264 : vector<30x128xf32>
    %cst_228 = arith.constant 0.000000e+00 : f32
    %266 = vector.broadcast %cst_228 : f32 to vector<30x128xf32>
    %267 = arith.maximumf %265, %266 : vector<30x128xf32>
    %c1_229 = arith.constant 1 : index
    %c0_230 = arith.constant 0 : index
    %268 = vector.load %arg16[%c1_229, %c0_230] : memref<32x128xf32, #tpu.memory_space<vmem>>, vector<30x128xf32>
    tpu.vector_store %arg16[%c1_229, %c0_230], %267 {strides = array<i32>} : memref<32x128xf32, #tpu.memory_space<vmem>>, vector<30x128xf32>,
    %cst_231 = arith.constant 0.000000e+00 : f32
    %269 = vector.broadcast %cst_231 : f32 to vector<30x256xf32>
    %c0_232 = arith.constant 0 : index
    %c0_233 = arith.constant 0 : index
    %270 = vector.load %arg16[%c0_232, %c0_233] : memref<32x128xf32, #tpu.memory_space<vmem>>, vector<30x128xf32>
    %c0_234 = arith.constant 0 : index
    %c0_235 = arith.constant 0 : index
    %c0_236 = arith.constant 0 : index
    %271 = vector.load %arg7[%c0_234, %c0_235, %c0_236] : memref<3x128x256xf32, #tpu.memory_space<vmem>>, vector<1x128x256xf32>
    %272 = vector.shape_cast %271 : vector<1x128x256xf32> to vector<128x256xf32>
    %cst_237 = arith.constant dense<0.000000e+00> : vector<30x256xf32>
    %273 = tpu.matmul %270, %272, %cst_237 {dimension_numbers = #tpu.dot_dimension_numbers<[1], [0], [0], [1], [0, 0, 1, 1], [], []>} : vector<30x128xf32>, vector<128x256xf32>, vector<30x256xf32> -> vector<30x256xf32>
    %274 = arith.addf %269, %273 : vector<30x256xf32>
    %c1_238 = arith.constant 1 : index
    %c0_239 = arith.constant 0 : index
    %275 = vector.load %arg16[%c1_238, %c0_239] : memref<32x128xf32, #tpu.memory_space<vmem>>, vector<30x128xf32>
    %c1_240 = arith.constant 1 : index
    %c0_241 = arith.constant 0 : index
    %c0_242 = arith.constant 0 : index
    %276 = vector.load %arg7[%c1_240, %c0_241, %c0_242] : memref<3x128x256xf32, #tpu.memory_space<vmem>>, vector<1x128x256xf32>
    %277 = vector.shape_cast %276 : vector<1x128x256xf32> to vector<128x256xf32>
    %cst_243 = arith.constant dense<0.000000e+00> : vector<30x256xf32>
    %278 = tpu.matmul %275, %277, %cst_243 {dimension_numbers = #tpu.dot_dimension_numbers<[1], [0], [0], [1], [0, 0, 1, 1], [], []>} : vector<30x128xf32>, vector<128x256xf32>, vector<30x256xf32> -> vector<30x256xf32>
    %279 = arith.addf %274, %278 : vector<30x256xf32>
    %c2_244 = arith.constant 2 : index
    %c0_245 = arith.constant 0 : index
    %280 = vector.load %arg16[%c2_244, %c0_245] : memref<32x128xf32, #tpu.memory_space<vmem>>, vector<30x128xf32>
    %c2_246 = arith.constant 2 : index
    %c0_247 = arith.constant 0 : index
    %c0_248 = arith.constant 0 : index
    %281 = vector.load %arg7[%c2_246, %c0_247, %c0_248] : memref<3x128x256xf32, #tpu.memory_space<vmem>>, vector<1x128x256xf32>
    %282 = vector.shape_cast %281 : vector<1x128x256xf32> to vector<128x256xf32>
    %cst_249 = arith.constant dense<0.000000e+00> : vector<30x256xf32>
    %283 = tpu.matmul %280, %282, %cst_249 {dimension_numbers = #tpu.dot_dimension_numbers<[1], [0], [0], [1], [0, 0, 1, 1], [], []>} : vector<30x128xf32>, vector<128x256xf32>, vector<30x256xf32> -> vector<30x256xf32>
    %284 = arith.addf %279, %283 : vector<30x256xf32>
    %c0_250 = arith.constant 0 : index
    %c0_251 = arith.constant 0 : index
    %285 = vector.load %arg8[%c0_250, %c0_251] : memref<1x256xf32, #tpu.memory_space<vmem>>, vector<1x256xf32>
    %286 = vector.broadcast %285 : vector<1x256xf32> to vector<30x256xf32>
    %287 = arith.addf %284, %286 : vector<30x256xf32>
    %cst_252 = arith.constant 0.000000e+00 : f32
    %288 = vector.broadcast %cst_252 : f32 to vector<30x256xf32>
    %289 = arith.maximumf %287, %288 : vector<30x256xf32>
    %cst_253 = arith.constant dense<0.000000e+00> : vector<15x256xf32>
    %290 = tpu.matmul %20, %289, %cst_253 {dimension_numbers = #tpu.dot_dimension_numbers<[1], [0], [0], [1], [0, 0, 1, 1], [], []>} : vector<15x30xf32>, vector<30x256xf32>, vector<15x256xf32> -> vector<15x256xf32>
    %cst_254 = arith.constant dense<0.000000e+00> : vector<15x256xf32>
    %291 = tpu.matmul %27, %289, %cst_254 {dimension_numbers = #tpu.dot_dimension_numbers<[1], [0], [0], [1], [0, 0, 1, 1], [], []>} : vector<15x30xf32>, vector<30x256xf32>, vector<15x256xf32> -> vector<15x256xf32>
    %292 = arith.maximumf %290, %291 : vector<15x256xf32>
    %cst_255 = arith.constant dense<0.000000e+00> : vector<256xf32>
    %293 = vector.multi_reduction <add>, %292, %cst_255 [0] : vector<15x256xf32> to vector<256xf32>
    %294 = vector.shape_cast %293 : vector<256xf32> to vector<1x256xf32>
    %cst_256 = arith.constant 0.0666666701 : f32
    %295 = vector.broadcast %cst_256 : f32 to vector<1x256xf32>
    %296 = arith.mulf %294, %295 : vector<1x256xf32>
    %c0_257 = arith.constant 0 : index
    %c0_258 = arith.constant 0 : index
    %297 = vector.load %arg9[%c0_257, %c0_258] : memref<256x64xf32, #tpu.memory_space<vmem>>, vector<256x64xf32>
    %cst_259 = arith.constant dense<0.000000e+00> : vector<1x64xf32>
    %298 = tpu.matmul %296, %297, %cst_259 {dimension_numbers = #tpu.dot_dimension_numbers<[1], [0], [0], [1], [0, 0, 1, 1], [], []>} : vector<1x256xf32>, vector<256x64xf32>, vector<1x64xf32> -> vector<1x64xf32>
    %c0_260 = arith.constant 0 : index
    %c0_261 = arith.constant 0 : index
    %299 = vector.load %arg10[%c0_260, %c0_261] : memref<1x64xf32, #tpu.memory_space<vmem>>, vector<1x64xf32>
    %300 = arith.addf %298, %299 : vector<1x64xf32>
    %c0_262 = arith.constant 0 : index
    %c0_263 = arith.constant 0 : index
    %301 = vector.load %arg11[%c0_262, %c0_263] : memref<64x128xf32, #tpu.memory_space<vmem>>, vector<64x128xf32>
    %cst_264 = arith.constant dense<0.000000e+00> : vector<1x128xf32>
    %302 = tpu.matmul %300, %301, %cst_264 {dimension_numbers = #tpu.dot_dimension_numbers<[1], [0], [0], [1], [0, 0, 1, 1], [], []>} : vector<1x64xf32>, vector<64x128xf32>, vector<1x128xf32> -> vector<1x128xf32>
    %c0_265 = arith.constant 0 : index
    %c0_266 = arith.constant 0 : index
    %303 = vector.load %arg12[%c0_265, %c0_266] : memref<1x128xf32, #tpu.memory_space<vmem>>, vector<1x128xf32>
    %304 = arith.addf %302, %303 : vector<1x128xf32>
    %c1_267 = arith.constant 1 : index
    %c0_268 = arith.constant 0 : index
    %305 = vector.load %arg13[%c1_267, %c0_268] : memref<2x128xf32, #tpu.memory_space<vmem>>, vector<1x128xf32>
    tpu.vector_store %arg13[%c1_267, %c0_268], %304 {strides = array<i32>} : memref<2x128xf32, #tpu.memory_space<vmem>>, vector<1x128xf32>,
    return
  }
}

</mosaic_0001>

<bundles_post_ra>
// kernel: cnn1d_forward.1
= control target key start
LH: loop header
LB: loop body
LE: loop exit
PB: predicated region body
PF: predicated region fallthrough
CT: control target
= control target key end

     0   :  { %18 = vsyncpa [#allocation6], 0  ;;  %s7954_s0 = inlined_call_operand.vmem [shape: f32[2,66,1], index: 0, kind: input, shape index: {}]   ;;  %s7955_s1 = inlined_call_operand.vmem [shape: f32[5,32], index: 1, kind: input, shape index: {}]   ;;  %s7956_s2 = inlined_call_operand.vmem [shape: f32[1,32], index: 2, kind: input, shape index: {}]   ;;  %s7957_s3 = inlined_call_operand.hbm [shape: f32[5,32,64], index: 3, kind: input, shape index: {}]   ;;  %s7958_s4 = inlined_call_operand.vmem [shape: f32[1,64], index: 4, kind: input, shape index: {}]   ;;  %s7959_s5 = inlined_call_operand.hbm [shape: f32[3,64,128], index: 5, kind: input, shape index: {}]   ;;  %s7960_s6 = inlined_call_operand.vmem [shape: f32[1,128], index: 6, kind: input, shape index: {}]   ;;  %s7961_s7 = inlined_call_operand.vmem [shape: f32[3,128,256], index: 7, kind: input, shape index: {}]   ;;  %s7962_s8 = inlined_call_operand.vmem [shape: f32[1,256], index: 8, kind: input, shape index: {}]   ;;  %s7963_s9 = inlined_call_operand.vmem [shape: f32[256,64], index: 9, kind: input, shape index: {}]   ;;  %s7964_s10 = inlined_call_operand.vmem [shape: f32[1,64], index: 10, kind: input, shape index: {}]   ;;  %s7965_s11 = inlined_call_operand.hbm [shape: f32[64,128], index: 11, kind: input, shape index: {}]   ;;  %s7966_s12 = inlined_call_operand.vmem [shape: f32[1,128], index: 12, kind: input, shape index: {}]   ;;  %s7967_s13 = inlined_call_operand.hbm [shape: f32[2,128], index: 13, kind: output, shape index: {}]  }
   0x1   :  { %19 = vsyncpa [#allocation9], 0 }
   0x2   :  { %20 = vsyncpa [#allocation7], 0  ;;  %s6309_s25 = smov [#allocation8]   ;;  %s6310_s27 = smov [#allocation5]  }
   0x3   :  { %s46_s26 = sshll.u32 %s6309_s25, 4  ;;  %s32_s28 = sshll.u32 %s6310_s27, 4  ;;  %s47_s26 = int_to_ptr.vmem [resolvable:$true] %s46_s26  ;;  %s33_s28 = int_to_ptr.vmem [resolvable:$true] %s32_s28 }
   0x4   :  { %s6231_s29 = scalar_lea.vmem %s47_s26, 3072  ;;  %p6236_p1 = scmp.lt.s32.totalorder %s47_s26, %s47_s26 }
   0x5   :  { %p6232_p0 = scmp.ne.s32.totalorder %s47_s26, %s6231_s29  ;;  %p6237_p2 = scmp.lt.s32.totalorder %s6231_s29, %s6231_s29 }
   0x7   :  { %p6238_p3 = por %p6237_p2, %p6236_p1 }
   0x9   :  { %p6239_p4 = pnand %p6238_p3, %p6232_p0 }
   0xb   :  { %6242 = shalt.err (!%p6239_p4)
}
   0xc   :  { %s6311_s30 = smov 128   ;;  %s6312_s14 = smov 8  }
   0xd   :  { %52 = dma.hbm_to_vmem [thread:$0]  %s7959_s5, 3072, %s47_s26, [#allocation9], %s6311_s30, %s6311_s30, %s6312_s14  }
   0xe   :  { %s6251_s17 = scalar_lea.vmem %s33_s28, 2560  ;;  %p6256_p6 = scmp.lt.s32.totalorder %s33_s28, %s33_s28 }
   0xf   :  { %p6252_p5 = scmp.ne.s32.totalorder %s33_s28, %s6251_s17  ;;  %p6257_p7 = scmp.lt.s32.totalorder %s6251_s17, %s6251_s17 }
  0x11   :  { %p6258_p8 = por %p6257_p7, %p6256_p6 }
  0x13   :  { %p6259_p9 = pnand %p6258_p8, %p6252_p5 }
  0x15   :  { %6262 = shalt.err (!%p6259_p9)
}
  0x16   :  { %38 = dma.hbm_to_vmem [thread:$0]  %s7957_s3, 2560, %s33_s28, [#allocation6], %s6311_s30, %s6311_s30, %s6312_s14  }
  0x17   :  { %s6313_s20 = smov [#allocation10]  }
  0x18   :  { %s68_s21 = sshll.u32 %s6313_s20, 4  ;;  %s69_s21 = int_to_ptr.vmem [resolvable:$true] %s68_s21 }
  0x19   :  { %s6271_s22 = scalar_lea.vmem %s69_s21, 1024  ;;  %p6276_p11 = scmp.lt.s32.totalorder %s69_s21, %s69_s21 }
  0x1a   :  { %p6272_p10 = scmp.ne.s32.totalorder %s69_s21, %s6271_s22  ;;  %p6277_p12 = scmp.lt.s32.totalorder %s6271_s22, %s6271_s22 }
  0x1c   :  { %p6278_p13 = por %p6277_p12, %p6276_p11 }
  0x1e   :  { %p6279_p0 = pnand %p6278_p13, %p6272_p10 }
  0x20   :  { %6282 = shalt.err (!%p6279_p0)
}
  0x21   :  { %74 = dma.hbm_to_vmem [thread:$0]  %s7965_s11, 1024, %s69_s21, [#allocation9], %s6311_s30, %s6311_s30, %s6312_s14  }
  0x22   :  { %6303 = dma.done.wait [#allocation6], 2560  }
  0x23   :  { %6304 = vsyncadd [#allocation6], 4294964736 }
  0x24   :  { %6305 = dma.done.wait [#allocation9], 4096  }
  0x25   :  { %6306 = vsyncadd [#allocation9], 4294963200  ;;  %v6314_v0 = vmov 0   ;;  %v148_v1 = vld [vmem:[%s7954_s0 + $0x28] sm:$0xff]  ;;  %v147_v2 = vld [vmem:[%s7954_s0 + $0x20] sm:$0xff]  ;;  %vm125_vm0 = vcmask 261120  }
  0x26   :  { %6221 = vset.pattern.permute.xlu1 %v6314_v0  ;;  %6220 = vset.pattern.permute.xlu0 %v6314_v0  ;;  %v217_v3 = vld [vmem:[%s7954_s0 + $0x29] sm:$0xff]  ;;  %v216_v4 = vld [vmem:[%s7954_s0 + $0x21] sm:$0xff]  ;;  %v218_v11 = vld [vmem:[%s7954_s0 + $0x31] sm:$0xff]  ;;  %v6315_v25 = vmov 0.0   ;;  %vm518_vm1 = vcmask 259072   ;;  %vm1276_vm2 = vcmask 490496  }
  0x27   :  { %179 = vperm.xlu1 %6221, %v148_v1   ;;  %174 = vperm.xlu0 %6220, %v147_v2   ;;  %v212_v5 = vld [vmem:[%s7954_s0 + $0x1] sm:$0xff]  ;;  %v286_v9 = vld [vmem:[%s7954_s0 + $0x2a] sm:$0xff]  ;;  %v219_v15 = vld [vmem:[%s7954_s0 + $0x39] sm:$0x3f]  ;;  %130 = vst.msk [vmem:[#allocation2 + $0x20] sm:$0xff] %vm125_vm0, %v6315_v25  ;;  %vm1289_vm5 = vcmask 1043456  }
  0x28   :  { %v143_v6 = vld [vmem:[%s7954_s0] sm:$0xff]  ;;  %v144_v7 = vld [vmem:[%s7954_s0 + $0x8] sm:$0xff]  ;;  %v149_v12 = vld [vmem:[%s7954_s0 + $0x30] sm:$0xff]  ;;  %131 = vst.msk [vmem:[#allocation2 + $0x28] sm:$0xff] %vm125_vm0, %v6315_v25  ;;  %vm134_vm12 = vcmask 523264   ;;  %vm1482_vm13 = vcmask 521216  }
  0x29   :  { %v285_v8 = vld [vmem:[%s7954_s0 + $0x22] sm:$0xff]  ;;  %v150_v16 = vld [vmem:[%s7954_s0 + $0x38] sm:$0x3f]  ;;  %v355_v17 = vld [vmem:[%s7954_s0 + $0x2b] sm:$0xff]  ;;  %126 = vst.msk [vmem:[#allocation2] sm:$0xff] %vm125_vm0, %v6315_v25  ;;  %vm2254_vm14 = vcmask 1045504  }
  0x2a   :  { %v213_v10 = vld [vmem:[%s7954_s0 + $0x9] sm:$0xff]  ;;  %v214_v19 = vld [vmem:[%s7954_s0 + $0x11] sm:$0xff]  ;;  %127 = vst.msk [vmem:[#allocation2 + $0x8] sm:$0xff] %vm125_vm0, %v6315_v25  ;;  %128 = vst.msk [vmem:[#allocation2 + $0x10] sm:$0xff] %vm125_vm0, %v6315_v25  ;;  %vm2249_vm15 = vcmask 244736   ;;  %s6317_s17 = smov [#allocation11]  }
  0x2b   :  { %248 = vperm.xlu1 %6221, %v217_v3   ;;  %243 = vperm.xlu0 %6220, %v216_v4   ;;  %v354_v13 = vld [vmem:[%s7954_s0 + $0x23] sm:$0xff]  ;;  %v145_v20 = vld [vmem:[%s7954_s0 + $0x10] sm:$0xff]  ;;  %v146_v23 = vld [vmem:[%s7954_s0 + $0x18] sm:$0xff]  ;;  %129 = vst.msk [vmem:[#allocation2 + $0x18] sm:$0xff] %vm125_vm0, %v6315_v25  ;;  %s5073_s18 = sshll.u32 %s6317_s17, 4  ;;  %s5074_s18 = int_to_ptr.vmem [resolvable:$true] %s5073_s18 }
  0x2c   :  { %v281_v14 = vld [vmem:[%s7954_s0 + $0x2] sm:$0xff]  ;;  %v282_v18 = vld [vmem:[%s7954_s0 + $0xa] sm:$0xff]  ;;  %v287_v22 = vld [vmem:[%s7954_s0 + $0x32] sm:$0xff]  ;;  %132 = vst.msk [vmem:[#allocation2 + $0x30] sm:$0xff] %vm125_vm0, %v6315_v25  ;;  %p6288_p2 = scmp.lt.s32.totalorder %s5074_s18, %s5074_s18 }
  0x2d   :  { %v350_v21 = vld [vmem:[%s7954_s0 + $0x3] sm:$0xff]  ;;  %133 = vst.msk [vmem:[#allocation2 + $0x38] sm:$0xff] %vm125_vm0, %v6315_v25  ;;  %139 = vst [vmem:[#allocation4] sm:$0xff] %v6315_v25  ;;  %v288_v26 = vld [vmem:[%s7954_s0 + $0x3a] sm:$0x3f] }
  0x2e   :  { %v423_v24 = vld [vmem:[%s7954_s0 + $0x24] sm:$0xff]  ;;  %140 = vst [vmem:[#allocation4 + $0x8] sm:$0xff] %v6315_v25  ;;  %141 = vst [vmem:[#allocation4 + $0x10] sm:$0xff] %v6315_v25  ;;  %v215_v27 = vld [vmem:[%s7954_s0 + $0x19] sm:$0xff] }
  0x2f   :  { %223 = vperm.xlu1 %6221, %v212_v5   ;;  %154 = vperm.xlu0 %6220, %v143_v6   ;;  %142 = vst [vmem:[#allocation4 + $0x18] sm:$0xff] %v6315_v25  ;;  %v424_v28 = vld [vmem:[%s7954_s0 + $0x2c] sm:$0xff]  ;;  %v544_v32 = vld [vmem:[#allocation5 + $0x38] sm:$0xff]  ;;  %v419_v34 = vld [vmem:[%s7954_s0 + $0x4] sm:$0xff] }
  0x30   :  { %v351_v29 = vld [vmem:[%s7954_s0 + $0xb] sm:$0xff]  ;;  %v356_v30 = vld [vmem:[%s7954_s0 + $0x33] sm:$0xff]  ;;  %6203 = vmatprep.subr.mxu1 %v544_v32  ;;  %5745 = vmatprep.subr.mxu0 %v544_v32  ;;  %v357_v38 = vld [vmem:[%s7954_s0 + $0x3b] sm:$0x3f] }
  0x31   :  { %v283_v31 = vld [vmem:[%s7954_s0 + $0x12] sm:$0xff]  ;;  %v284_v33 = vld [vmem:[%s7954_s0 + $0x1a] sm:$0xff]  ;;  %6207 = vmatpush3.msra.mxu1 %v544_v32  ;;  %5746 = vmatpush3.msra.mxu0 %v544_v32  ;;  %v542_v36 = vld [vmem:[#allocation5 + $0x28] sm:$0xff] }
  0x32   :  { %v543_v35 = vld [vmem:[#allocation5 + $0x30] sm:$0xff]  ;;  %v541_v39 = vld [vmem:[#allocation5 + $0x20] sm:$0xff]  ;;  %v5234_v47 = vld [vmem:[%s7954_s0 + $0x48] sm:$0xff] }
  0x33   :  { %159 = vperm.xlu1 %6221, %v144_v7   ;;  %312 = vperm.xlu0 %6220, %v285_v8   ;;  %v420_v37 = vld [vmem:[%s7954_s0 + $0xc] sm:$0xff]  ;;  %v425_v40 = vld [vmem:[%s7954_s0 + $0x34] sm:$0xff]  ;;  %v426_v42 = vld [vmem:[%s7954_s0 + $0x3c] sm:$0x3f] }
  0x34   :  { %6204 = vmatprep.subr.mxu1 %v543_v35  ;;  %5747 = vmatprep.subr.mxu0 %v543_v35  ;;  %v352_v41 = vld [vmem:[%s7954_s0 + $0x13] sm:$0xff]  ;;  %v353_v43 = vld [vmem:[%s7954_s0 + $0x1b] sm:$0xff]  ;;  %v5243_v46 = vld [vmem:[%s7954_s0 + $0x49] sm:$0xff] }
  0x35   :  { %6208 = vmatpush3.msra.mxu1 %v543_v35  ;;  %5748 = vmatpush3.msra.mxu0 %v543_v35  ;;  %v422_v44 = vld [vmem:[%s7954_s0 + $0x1c] sm:$0xff]  ;;  %v421_v45 = vld [vmem:[%s7954_s0 + $0x14] sm:$0xff]  ;;  %v5252_v53 = vld [vmem:[%s7954_s0 + $0x4a] sm:$0xff] }
  0x36   :  { %6205 = vmatprep.subr.mxu1 %v542_v36  ;;  %5749 = vmatprep.subr.mxu0 %v542_v36  ;;  %v6531_v48 = vld [vmem:[#allocation5 + $0x18] sm:$0xff]  ;;  %v5235_v50 = vld [vmem:[%s7954_s0 + $0x50] sm:$0xff]  ;;  %v5237_v56 = vld [vmem:[%s7954_s0 + $0x60] sm:$0xff] }
  0x37   :  { %317 = vperm.xlu1 %6221, %v286_v9   ;;  %228 = vperm.xlu0 %6220, %v213_v10   ;;  %v5244_v49 = vld [vmem:[%s7954_s0 + $0x51] sm:$0xff]  ;;  %v5245_v54 = vld [vmem:[%s7954_s0 + $0x59] sm:$0xff]  ;;  %v5246_v59 = vld [vmem:[%s7954_s0 + $0x61] sm:$0xff] }
  0x38   :  { %6209 = vmatpush3.msra.mxu1 %v542_v36  ;;  %5750 = vmatpush3.msra.mxu0 %v542_v36  ;;  %v6540_v51 = vld [vmem:[#allocation5 + $0x58] sm:$0xff]  ;;  %v5261_v57 = vld [vmem:[%s7954_s0 + $0x4b] sm:$0xff]  ;;  %v5255_v63 = vld [vmem:[%s7954_s0 + $0x62] sm:$0xff] }
  0x39   :  { %6206 = vmatprep.subr.mxu1 %v541_v39  ;;  %5751 = vmatprep.subr.mxu0 %v541_v39  ;;  %v5253_v52 = vld [vmem:[%s7954_s0 + $0x52] sm:$0xff]  ;;  %v5254_v61 = vld [vmem:[%s7954_s0 + $0x5a] sm:$0xff]  ;;  %v5247_v0 = vld [vmem:[%s7954_s0 + $0x69] sm:$0xff] }
  0x3a   :  { %6210 = vmatpush3.msra.mxu1 %v541_v39  ;;  %5752 = vmatpush3.msra.mxu0 %v541_v39  ;;  %v5236_v55 = vld [vmem:[%s7954_s0 + $0x58] sm:$0xff]  ;;  %v5270_v60 = vld [vmem:[%s7954_s0 + $0x4c] sm:$0xff]  ;;  %v5264_v4 = vld [vmem:[%s7954_s0 + $0x63] sm:$0xff] }
  0x3b   :  { %253 = vperm.xlu1 %6221, %v218_v11   ;;  %184 = vperm.xlu0 %6220, %v149_v12   ;;  %v5262_v58 = vld [vmem:[%s7954_s0 + $0x53] sm:$0xff]  ;;  %v5238_v1 = vld [vmem:[%s7954_s0 + $0x68] sm:$0xff]  ;;  %v5263_v3 = vld [vmem:[%s7954_s0 + $0x5b] sm:$0xff] }
  0x3c   :  { %5765 = vmatprep.subr.mxu1 %v6531_v48  ;;  %5785 = vmatprep.subr.mxu0 %v6540_v51  ;;  %v5271_v62 = vld [vmem:[%s7954_s0 + $0x54] sm:$0xff]  ;;  %v5272_v6 = vld [vmem:[%s7954_s0 + $0x5c] sm:$0xff]  ;;  %v5256_v7 = vld [vmem:[%s7954_s0 + $0x6a] sm:$0xff] }
  0x3d   :  { %v5239_v2 = vld [vmem:[%s7954_s0 + $0x70] sm:$0xff]  ;;  %v5273_v10 = vld [vmem:[%s7954_s0 + $0x64] sm:$0xff]  ;;  %v5267_v35 = vld [vmem:[%s7954_s0 + $0x7b] sm:$0xff] }
  0x3e   :  { %v5248_v5 = vld [vmem:[%s7954_s0 + $0x71] sm:$0xff]  ;;  %v5276_v39 = vld [vmem:[%s7954_s0 + $0x7c] sm:$0xff] }
  0x3f   :  { %381 = vperm.xlu1 %6221, %v354_v13   ;;  %292 = vperm.xlu0 %6220, %v281_v14   ;;  %v5257_v11 = vld [vmem:[%s7954_s0 + $0x72] sm:$0xff] }
  0x40   :  { %v5249_v14 = vld [vmem:[%s7954_s0 + $0x79] sm:$0xff] }
  0x43   :  { %258 = vperm.xlu1 %6221, %v219_v15   ;;  %189 = vperm.xlu0 %6220, %v150_v16   ;;  %v5240_v15 = vld [vmem:[%s7954_s0 + $0x78] sm:$0xff] }
  0x47   :  { %386 = vperm.xlu1 %6221, %v355_v17   ;;  %297 = vperm.xlu0 %6220, %v282_v18   ;;  %v5241_v18 = vld [vmem:[%s7954_s0 + $0x80] sm:$0x3f] }
  0x4b   :  { %233 = vperm.xlu1 %6221, %v214_v19   ;;  %164 = vperm.xlu0 %6220, %v145_v20   ;;  %v5265_v19 = vld [vmem:[%s7954_s0 + $0x6b] sm:$0xff] }
  0x4f   :  { %361 = vperm.xlu1 %6221, %v350_v21   ;;  %322 = vperm.xlu0 %6220, %v287_v22   ;;  %v5266_v22 = vld [vmem:[%s7954_s0 + $0x73] sm:$0xff] }
  0x53   :  { %169 = vperm.xlu1 %6221, %v146_v23   ;;  %450 = vperm.xlu0 %6220, %v423_v24   ;;  %v5250_v23 = vld [vmem:[%s7954_s0 + $0x81] sm:$0x3f] }
  0x57   :  { %327 = vperm.xlu1 %6221, %v288_v26   ;;  %238 = vperm.xlu0 %6220, %v215_v27   ;;  %v5274_v26 = vld [vmem:[%s7954_s0 + $0x6c] sm:$0xff]  ;;  %v5258_v27 = vld [vmem:[%s7954_s0 + $0x7a] sm:$0xff] }
  0x5b   :  { %455 = vperm.xlu1 %6221, %v424_v28   ;;  %366 = vperm.xlu0 %6220, %v351_v29  }
  0x5f   :  { %391 = vperm.xlu1 %6221, %v356_v30   ;;  %302 = vperm.xlu0 %6220, %v283_v31   ;;  %v5275_v30 = vld [vmem:[%s7954_s0 + $0x74] sm:$0xff]  ;;  %v5259_v31 = vld [vmem:[%s7954_s0 + $0x82] sm:$0x3f] }
  0x63   :  { %307 = vperm.xlu1 %6221, %v284_v33   ;;  %430 = vperm.xlu0 %6220, %v419_v34   ;;  %v5268_v34 = vld [vmem:[%s7954_s0 + $0x83] sm:$0x3f] }
  0x67   :  { %435 = vperm.xlu1 %6221, %v420_v37   ;;  %396 = vperm.xlu0 %6220, %v357_v38   ;;  %v5277_v38 = vld [vmem:[%s7954_s0 + $0x84] sm:$0x3f] }
  0x6b   :  { %460 = vperm.xlu1 %6221, %v425_v40   ;;  %371 = vperm.xlu0 %6220, %v352_v41  }
  0x6f   :  { %465 = vperm.xlu1 %6221, %v426_v42   ;;  %376 = vperm.xlu0 %6220, %v353_v43   ;;  %v6674_v42 = vld [vmem:[%s7955_s1 + $0x1] ss:$0 sm:$0xff]  ;;  %v6679_v43 = vld [vmem:[%s7955_s1] ss:$0 sm:$0xff] }
  0x73   :  { %445 = vperm.xlu1 %6221, %v422_v44   ;;  %440 = vperm.xlu0 %6220, %v421_v45   ;;  %v6684_v44 = vld [vmem:[%s7955_s1 + $0x2] ss:$0 sm:$0xff] }
  0x77   :  { %2709 = vperm.xlu1 %6221, %v5243_v46   ;;  %2640 = vperm.xlu0 %6220, %v5234_v47  }
  0x7b   :  { %2714 = vperm.xlu1 %6221, %v5244_v49   ;;  %2645 = vperm.xlu0 %6220, %v5235_v50   ;;  %v6694_v49 = vld [vmem:[%s7955_s1 + $0x3] ss:$0 sm:$0xff] }
  0x7f   :  { %2783 = vperm.xlu1 %6221, %v5253_v52   ;;  %2778 = vperm.xlu0 %6220, %v5252_v53  }
  0x83   :  { %2719 = vperm.xlu1 %6221, %v5245_v54   ;;  %2650 = vperm.xlu0 %6220, %v5236_v55  }
  0x87   :  { %2655 = vperm.xlu1 %6221, %v5237_v56   ;;  %2847 = vperm.xlu0 %6220, %v5261_v57   ;;  %v6702_v57 = vld [vmem:[%s7955_s1 + $0x4] ss:$0 sm:$0xff] }
  0x8b   :  { %2852 = vperm.xlu1 %6221, %v5262_v58   ;;  %2724 = vperm.xlu0 %6220, %v5246_v59  }
  0x8f   :  { %2916 = vperm.xlu1 %6221, %v5270_v60   ;;  %2788 = vperm.xlu0 %6220, %v5254_v61  }
  0x93   :  { %2921 = vperm.xlu1 %6221, %v5271_v62   ;;  %2793 = vperm.xlu0 %6220, %v5255_v63  }
  0x97   :  { %2729 = vperm.xlu1 %6221, %v5247_v0   ;;  %2660 = vperm.xlu0 %6220, %v5238_v1   ;;  %v6712_v0 = vld [vmem:[%s7956_s2] ss:$0 sm:$0xff] }
  0x9b   :  { %2665 = vperm.xlu1 %6221, %v5239_v2   ;;  %2857 = vperm.xlu0 %6220, %v5263_v3  }
  0x9f   :  { %2862 = vperm.xlu1 %6221, %v5264_v4   ;;  %2734 = vperm.xlu0 %6220, %v5248_v5  }
  0xa2   :  { %v6603_v8 = vpop.permute.xlu1 %179  ;;  %v175_v9 = vpop.permute.xlu0 %174 }
  0xa3   :  { %2926 = vperm.xlu1 %6221, %v5272_v6   ;;  %2798 = vperm.xlu0 %6220, %v5256_v7   ;;  %v200_v50 = vmul.f32 %v6679_v43, %v175_v9  ;;  %v201_v1 = vmul.f32 %v6679_v43, %v6603_v8 }
  0xa6   :  { %v6611_v12 = vpop.permute.xlu1 %248  ;;  %v244_v13 = vpop.permute.xlu0 %243 }
  0xa7   :  { %2931 = vperm.xlu1 %6221, %v5273_v10   ;;  %2803 = vperm.xlu0 %6220, %v5257_v11   ;;  %v269_v47 = vmul.f32 %v6674_v42, %v244_v13  ;;  %v270_v61 = vmul.f32 %v6674_v42, %v6611_v12 }
  0xa9   :  { %v277_v55 = vadd.f32 %v269_v47, %v200_v50  ;;  %v278_v6 = vadd.f32 %v270_v61, %v201_v1 }
  0xaa   :  { %v6619_v16 = vpop.permute.xlu1 %223  ;;  %v6621_v17 = vpop.permute.xlu0 %154 }
  0xab   :  { %2739 = vperm.xlu1 %6221, %v5249_v14   ;;  %2670 = vperm.xlu0 %6220, %v5240_v15   ;;  %v265_v14 = vmul.f32 %v6674_v42, %v6619_v16  ;;  %v196_v8 = vmul.f32 %v6679_v43, %v6621_v17 }
  0xae   :  { %v6629_v20 = vpop.permute.xlu1 %159  ;;  %v313_v21 = vpop.permute.xlu0 %312 }
  0xaf   :  { %2675 = vperm.xlu1 %6221, %v5241_v18   ;;  %2867 = vperm.xlu0 %6220, %v5265_v19   ;;  %v338_v52 = vmul.f32 %v6684_v44, %v313_v21  ;;  %v197_v17 = vmul.f32 %v6679_v43, %v6629_v20 }
  0xb1   :  { %v346_v58 = vadd.f32 %v338_v52, %v277_v55 }
  0xb2   :  { %v318_v24 = vpop.permute.xlu1 %317  ;;  %v6637_v25 = vpop.permute.xlu0 %228 }
  0xb3   :  { %2872 = vperm.xlu1 %6221, %v5266_v22   ;;  %2744 = vperm.xlu0 %6220, %v5250_v23   ;;  %v339_v2 = vmul.f32 %v6684_v44, %v318_v24  ;;  %v273_v24 = vadd.f32 %v265_v14, %v196_v8  ;;  %v529_v8 = vld [vmem:[#allocation5 + $0x8] sm:$0xff] }
  0xb5   :  { %v347_v10 = vadd.f32 %v339_v2, %v278_v6 }
  0xb6   :  { %v6645_v28 = vpop.permute.xlu1 %253  ;;  %v6647_v29 = vpop.permute.xlu0 %184 }
  0xb7   :  { %2936 = vperm.xlu1 %6221, %v5274_v26   ;;  %2808 = vperm.xlu0 %6220, %v5258_v27   ;;  %v266_v26 = vmul.f32 %v6674_v42, %v6637_v25 }
  0xba   :  { %v382_v32 = vpop.permute.xlu1 %381  ;;  %v293_v33 = vpop.permute.xlu0 %292 }
  0xbb   :  { %2941 = vperm.xlu1 %6221, %v5275_v30   ;;  %2813 = vperm.xlu0 %6220, %v5259_v31   ;;  %v407_v56 = vmul.f32 %v6694_v49, %v382_v32  ;;  %v334_v19 = vmul.f32 %v6684_v44, %v293_v33  ;;  %v271_v33 = vmul.f32 %v6674_v42, %v6645_v28 }
  0xbd   :  { %v415_v62 = vadd.f32 %v407_v56, %v346_v58  ;;  %v342_v30 = vadd.f32 %v334_v19, %v273_v24 }
  0xbe   :  { %v6661_v36 = vpop.permute.xlu1 %258  ;;  %v6663_v37 = vpop.permute.xlu0 %189 }
  0xbf   :  { %2882 = vperm.xlu1 %6221, %v5268_v34   ;;  %2877 = vperm.xlu0 %6220, %v5267_v35   ;;  %v202_v34 = vmul.f32 %v6679_v43, %v6647_v29  ;;  %v272_v29 = vmul.f32 %v6674_v42, %v6661_v36 }
  0xc1   :  { %v279_v52 = vadd.f32 %v271_v33, %v202_v34 }
  0xc2   :  { %v387_v40 = vpop.permute.xlu1 %386  ;;  %v298_v41 = vpop.permute.xlu0 %297 }
  0xc3   :  { %2951 = vperm.xlu1 %6221, %v5277_v38   ;;  %2946 = vperm.xlu0 %6220, %v5276_v39   ;;  %v408_v7 = vmul.f32 %v6694_v49, %v387_v40  ;;  %v335_v31 = vmul.f32 %v6684_v44, %v298_v41  ;;  %v274_v39 = vadd.f32 %v266_v26, %v197_v17 }
  0xc5   :  { %v416_v15 = vadd.f32 %v408_v7, %v347_v10  ;;  %v343_v41 = vadd.f32 %v335_v31, %v274_v39 }
  0xc6   :  { %v6686_v45 = vpop.permute.xlu1 %233  ;;  %v6688_v46 = vpop.permute.xlu0 %164 }
  0xc7   :  { %v267_v36 = vmul.f32 %v6674_v42, %v6686_v45 }
  0xca   :  { %v362_v53 = vpop.permute.xlu1 %361  ;;  %v323_v54 = vpop.permute.xlu0 %322 }
  0xcb   :  { %v403_v27 = vmul.f32 %v6694_v49, %v362_v53  ;;  %v340_v50 = vmul.f32 %v6684_v44, %v323_v54  ;;  %v203_v53 = vmul.f32 %v6679_v43, %v6663_v37  ;;  %v198_v37 = vmul.f32 %v6679_v43, %v6688_v46 }
  0xcd   :  { %v411_v40 = vadd.f32 %v403_v27, %v342_v30 }
  0xce   :  { %v6704_v59 = vpop.permute.xlu1 %169  ;;  %v451_v60 = vpop.permute.xlu0 %450 }
  0xcf   :  { %v476_v63 = vmul.f32 %v6702_v57, %v451_v60  ;;  %v199_v45 = vmul.f32 %v6679_v43, %v6704_v59 }
  0xd1   :  { %v484_v3 = vadd.f32 %v476_v63, %v415_v62  ;;  %v348_v63 = vadd.f32 %v340_v50, %v279_v52 }
  0xd2   :  { %v328_v4 = vpop.permute.xlu1 %327  ;;  %v239_v5 = vpop.permute.xlu0 %238 }
  0xd3   :  { %v499_v9 = vadd.f32 %v6712_v0, %v484_v3  ;;  %v341_v54 = vmul.f32 %v6684_v44, %v328_v4  ;;  %v280_v3 = vadd.f32 %v272_v29, %v203_v53  ;;  %v268_v6 = vmul.f32 %v6674_v42, %v239_v5 }
  0xd5   :  { %v507_v11 = vmax.f32 %v499_v9, 0.0 }
  0xd6   :  { %v456_v12 = vpop.permute.xlu1 %455  ;;  %v367_v13 = vpop.permute.xlu0 %366 }
  0xd7   :  { %515 = vst.msk [vmem:[#allocation2 + $0x21] sm:$0xff] %vm125_vm0, %v507_v11  ;;  %v477_v18 = vmul.f32 %v6702_v57, %v456_v12  ;;  %v404_v47 = vmul.f32 %v6694_v49, %v367_v13  ;;  %v530_v11 = vld [vmem:[#allocation5 + $0x10] sm:$0xff] }
  0xd9   :  { %v485_v21 = vadd.f32 %v477_v18, %v416_v15  ;;  %v412_v58 = vadd.f32 %v404_v47, %v343_v41  ;;  %v349_v15 = vadd.f32 %v341_v54, %v280_v3  ;;  %v812_v3 = vld [vmem:[#allocation5 + $0x40] sm:$0xff] }
  0xda   :  { %v392_v22 = vpop.permute.xlu1 %391  ;;  %v303_v23 = vpop.permute.xlu0 %302 }
  0xdb   :  { %v500_v16 = vadd.f32 %v6712_v0, %v485_v21  ;;  %v409_v60 = vmul.f32 %v6694_v49, %v392_v22  ;;  %v336_v46 = vmul.f32 %v6684_v44, %v303_v23  ;;  %v275_v21 = vadd.f32 %v267_v36, %v198_v37  ;;  %v1115_v36 = vld [vmem:[#allocation5 + $0x98] sm:$0xff] }
  0xdc   :  { %v276_v22 = vadd.f32 %v268_v6, %v199_v45 }
  0xdd   :  { %v508_v32 = vmax.f32 %v500_v16, 0.0  ;;  %v417_v12 = vadd.f32 %v409_v60, %v348_v63  ;;  %v528_v16 = vld [vmem:[#allocation5] sm:$0xff]  ;;  %v344_v30 = vadd.f32 %v336_v46, %v275_v21 }
  0xde   :  { %v308_v35 = vpop.permute.xlu1 %307  ;;  %v431_v38 = vpop.permute.xlu0 %430  ;;  %v536_v25 = vld [vmem:[#allocation2 + $0x21] sm:$0xff] }
  0xdf   :  { %516 = vst.msk [vmem:[#allocation2 + $0x29] sm:$0xff] %vm125_vm0, %v508_v32  ;;  %v472_v20 = vmul.f32 %v6702_v57, %v431_v38  ;;  %5759 = vmatprep.mubr.msk.f32.mxu1 %vm125_vm0, %v536_v25  ;;  %v337_v5 = vmul.f32 %v6684_v44, %v308_v35  ;;  %v6770_v32 = vld [vmem:[#allocation5 + $0x78] sm:$0xff] }
  0xe1   :  { %v480_v28 = vadd.f32 %v472_v20, %v411_v40  ;;  %v345_v31 = vadd.f32 %v337_v5, %v276_v22  ;;  %v963_v22 = vld [vmem:[#allocation5 + $0x68] sm:$0xff] }
  0xe2   :  { %v436_v55 = vpop.permute.xlu1 %435  ;;  %v397_v56 = vpop.permute.xlu0 %396 }
  0xe3   :  { %v495_v61 = vadd.f32 %v6712_v0, %v480_v28  ;;  %v473_v62 = vmul.f32 %v6702_v57, %v436_v55  ;;  %v410_v13 = vmul.f32 %v6694_v49, %v397_v56  ;;  %v814_v56 = vld [vmem:[#allocation5 + $0x50] sm:$0xff] }
  0xe5   :  { %v503_v1 = vmax.f32 %v495_v61, 0.0  ;;  %v481_v2 = vadd.f32 %v473_v62, %v412_v58  ;;  %v418_v59 = vadd.f32 %v410_v13, %v349_v15  ;;  %v813_v61 = vld [vmem:[#allocation5 + $0x48] sm:$0xff] }
  0xe6   :  { %v461_v7 = vpop.permute.xlu1 %460  ;;  %v372_v9 = vpop.permute.xlu0 %371  ;;  %v537_v10 = vld [vmem:[#allocation2 + $0x29] sm:$0xff] }
  0xe7   :  { %511 = vst.msk [vmem:[#allocation2 + $0x1] sm:$0xff] %vm125_vm0, %v503_v1  ;;  %v496_v4 = vadd.f32 %v6712_v0, %v481_v2  ;;  %v478_v14 = vmul.f32 %v6702_v57, %v461_v7  ;;  %5760 = vmatmul.mubr.msk.f32.vlgmr.msra.gmra.mxu1 %vm125_vm0, %v537_v10  ;;  %v405_v24 = vmul.f32 %v6694_v49, %v372_v9 }
  0xe8   :  { %5766 = vmatpush3.msra.mxu1 %v6531_v48 }
  0xe9   :  { %v504_v18 = vmax.f32 %v496_v4, 0.0  ;;  %v486_v19 = vadd.f32 %v478_v14, %v417_v12  ;;  %5767 = vmatprep.subr.mxu1 %v530_v11  ;;  %v413_v35 = vadd.f32 %v405_v24, %v344_v30  ;;  %v964_v14 = vld [vmem:[#allocation5 + $0x70] sm:$0xff] }
  0xea   :  { %v466_v26 = vpop.permute.xlu1 %465  ;;  %v377_v27 = vpop.permute.xlu0 %376  ;;  %5768 = vmatpush3.msra.mxu1 %v530_v11 }
  0xeb   :  { %512 = vst.msk [vmem:[#allocation2 + $0x9] sm:$0xff] %vm125_vm0, %v504_v18  ;;  %v501_v23 = vadd.f32 %v6712_v0, %v486_v19  ;;  %v479_v48 = vmul.f32 %v6702_v57, %v466_v26  ;;  %v406_v17 = vmul.f32 %v6694_v49, %v377_v27  ;;  %5769 = vmatprep.subr.mxu1 %v529_v8  ;;  %v1114_v26 = vld [vmem:[#allocation5 + $0x90] sm:$0xff] }
  0xec   :  { %5770 = vmatpush3.msra.mxu1 %v529_v8 }
  0xed   :  { %v509_v33 = vmax.f32 %v501_v23, 0.0  ;;  %v487_v34 = vadd.f32 %v479_v48, %v418_v59  ;;  %5771 = vmatprep.subr.mxu1 %v528_v16  ;;  %v414_v38 = vadd.f32 %v406_v17, %v345_v31  ;;  %v525_v17 = vld [vmem:[#allocation2 + $0x28] sm:$0xff] }
  0xee   :  { %v446_v25 = vpop.permute.xlu1 %445  ;;  %v441_v39 = vpop.permute.xlu0 %440  ;;  %v532_v40 = vld [vmem:[#allocation2 + $0x1] sm:$0xff]  ;;  %5772 = vmatpush3.msra.mxu1 %v528_v16 }
  0xef   :  { %517 = vst.msk [vmem:[#allocation2 + $0x31] sm:$0xff] %vm125_vm0, %v509_v33  ;;  %v502_v47 = vadd.f32 %v6712_v0, %v487_v34  ;;  %v475_v20 = vmul.f32 %v6702_v57, %v446_v25  ;;  %v474_v41 = vmul.f32 %v6702_v57, %v441_v39  ;;  %5753 = vmatprep.mubr.msk.f32.mxu0 %vm125_vm0, %v532_v40  ;;  %v520_v7 = vld [vmem:[#allocation2] sm:$0xff] }
  0xf0   :  { %5805 = vmatprep.subr.mxu1 %v6770_v32  ;;  %v962_v34 = vld [vmem:[#allocation5 + $0x60] sm:$0xff] }
  0xf1   :  { %v510_v50 = vmax.f32 %v502_v47, 0.0  ;;  %v483_v28 = vadd.f32 %v475_v20, %v414_v38  ;;  %v482_v52 = vadd.f32 %v474_v41, %v413_v35  ;;  %v807_v35 = vld [vmem:[#allocation2 + $0x22] sm:$0xff] }
  0xf2   :  { %v2710_v29 = vpop.permute.xlu1 %2709  ;;  %v2641_v53 = vpop.permute.xlu0 %2640  ;;  %v533_v55 = vld [vmem:[#allocation2 + $0x9] sm:$0xff] }
  0xf3   :  { %519 = vst.msk [vmem:[#allocation2 + $0x39] sm:$0x3f] %vm518_vm1, %v510_v50  ;;  %v498_v58 = vadd.f32 %v6712_v0, %v483_v28  ;;  %v497_v60 = vadd.f32 %v6712_v0, %v482_v52  ;;  %5754 = vmatmul.mubr.msk.f32.vlgmr.msra.gmra.mxu0 %vm125_vm0, %v533_v55  ;;  %v521_v9 = vld [vmem:[#allocation2 + $0x8] sm:$0xff]  ;;  %v2751_v15 = vmul.f32 %v6674_v42, %v2710_v29 }
  0xf4   :  { %5786 = vmatpush3.msra.mxu0 %v6540_v51  ;;  %v803_v45 = vld [vmem:[#allocation2 + $0x2] sm:$0xff]  ;;  %v2682_v18 = vmul.f32 %v6679_v43, %v2641_v53 }
  0xf5   :  { %v506_v62 = vmax.f32 %v498_v58, 0.0  ;;  %v505_v63 = vmax.f32 %v497_v60, 0.0  ;;  %5787 = vmatprep.subr.mxu0 %v814_v56  ;;  %v1113_v38 = vld [vmem:[#allocation5 + $0x88] sm:$0xff] }
  0xf6   :  { %v2715_v54 = vpop.permute.xlu1 %2714  ;;  %v2646_v1 = vpop.permute.xlu0 %2645  ;;  %v538_v2 = vld [vmem:[#allocation2 + $0x31] sm:$0xff]  ;;  %5788 = vmatpush3.msra.mxu0 %v814_v56  ;;  %v2759_v30 = vadd.f32 %v2751_v15, %v2682_v18  ;;  %v953_v53 = vld [vmem:[#allocation2 + $0x3] sm:$0xff] }
  0xf7   :  { %514 = vst.msk [vmem:[#allocation2 + $0x19] sm:$0xff] %vm125_vm0, %v506_v62  ;;  %513 = vst.msk [vmem:[#allocation2 + $0x11] sm:$0xff] %vm125_vm0, %v505_v63  ;;  %5762 = vmatprep.mubr.msk.f32.mxu1 %vm125_vm0, %v538_v2  ;;  %5789 = vmatprep.subr.mxu0 %v813_v61  ;;  %v2752_v16 = vmul.f32 %v6674_v42, %v2715_v54  ;;  %v2683_v59 = vmul.f32 %v6679_v43, %v2646_v1  ;;  %v808_v29 = vld [vmem:[#allocation2 + $0x2a] sm:$0xff]  ;;  %v1112_v56 = vld [vmem:[#allocation5 + $0x80] sm:$0xff] }
  0xf8   :  { %5790 = vmatpush3.msra.mxu0 %v813_v61  ;;  %v958_v18 = vld [vmem:[#allocation2 + $0x2b] sm:$0xff] }
  0xf9   :  { %5791 = vmatprep.subr.mxu0 %v812_v3  ;;  %v2760_v40 = vadd.f32 %v2752_v16, %v2683_v59 }
  0xfa   :  { %v2784_v51 = vpop.permute.xlu1 %2783  ;;  %v2779_v37 = vpop.permute.xlu0 %2778  ;;  %v539_v6 = vld [vmem:[#allocation2 + $0x39] sm:$0xf]  ;;  %5792 = vmatpush3.msra.mxu0 %v812_v3 }
  0xfb   :  { %5763 = vmatmul.mubr.msk.f32.gmra.mxu1 %vm125_vm0, %v539_v6  ;;  %5825 = vmatprep.subr.mxu0 %v1115_v36  ;;  %v2820_v27 = vmul.f32 %v6684_v44, %v2779_v37  ;;  %v2821_v25 = vmul.f32 %v6684_v44, %v2784_v51  ;;  %v527_v41 = vld [vmem:[#allocation2 + $0x38] sm:$0xf]  ;;  %v1103_v51 = vld [vmem:[#allocation2 + $0x4] sm:$0xff] }
  0xfc   :  { %5773 = vmatprep.mubr.msk.f32.mxu1 %vm125_vm0, %v520_v7  ;;  %v809_v55 = vld [vmem:[#allocation2 + $0x32] sm:$0xff]  ;;  %v810_v3 = vld [vmem:[#allocation2 + $0x3a] sm:$0xf] }
  0xfd   :  { %v2828_v39 = vadd.f32 %v2820_v27, %v2759_v30  ;;  %v2829_v58 = vadd.f32 %v2821_v25, %v2760_v40  ;;  %v960_v59 = vld [vmem:[#allocation2 + $0x3b] sm:$0xf]  ;;  %v1108_v30 = vld [vmem:[#allocation2 + $0x2c] sm:$0xff] }
  0xfe   :  { %v6788_v10 = vpop.permute.xlu1 %2719  ;;  %v6790_v11 = vpop.permute.xlu0 %2650  ;;  %v534_v12 = vld [vmem:[#allocation2 + $0x11] sm:$0xff]  ;;  %v535_v4 = vld [vmem:[#allocation2 + $0x19] sm:$0xff] }
  0xff   :  { %v522_v13 = vld [vmem:[#allocation2 + $0x10] sm:$0xff]  ;;  %5756 = vmatprep.mubr.msk.f32.mxu0 %vm125_vm0, %v534_v12  ;;  %5774 = vmatmul.mubr.msk.f32.vlgmr.msra.gmra.mxu1 %vm125_vm0, %v521_v9  ;;  %v523_v8 = vld [vmem:[#allocation2 + $0x18] sm:$0xff]  ;;  %v524_v19 = vld [vmem:[#allocation2 + $0x20] sm:$0xff] }
 0x100   :  { %5757 = vmatmul.mubr.msk.f32.gmra.mxu0 %vm125_vm0, %v535_v4  ;;  %5776 = vmatprep.mubr.msk.f32.mxu1 %vm125_vm0, %v522_v13  ;;  %v804_v21 = vld [vmem:[#allocation2 + $0xa] sm:$0xff]  ;;  %v805_v24 = vld [vmem:[#allocation2 + $0x12] sm:$0xff]  ;;  %v806_v33 = vld [vmem:[#allocation2 + $0x1a] sm:$0xff] }
 0x101   :  { %5793 = vmatprep.mubr.msk.f32.mxu0 %vm125_vm0, %v803_v45  ;;  %5806 = vmatpush3.msra.mxu1 %v6770_v32  ;;  %v526_v32 = vld [vmem:[#allocation2 + $0x30] sm:$0xff]  ;;  %v956_v12 = vld [vmem:[#allocation2 + $0x1b] sm:$0xff]  ;;  %v957_v13 = vld [vmem:[#allocation2 + $0x23] sm:$0xff] }
 0x102   :  { %v6798_v46 = vpop.permute.xlu1 %2655  ;;  %v2848_v5 = vpop.permute.xlu0 %2847  ;;  %5807 = vmatprep.subr.mxu1 %v964_v14  ;;  %v954_v63 = vld [vmem:[#allocation2 + $0xb] sm:$0xff]  ;;  %v1105_v45 = vld [vmem:[#allocation2 + $0x14] sm:$0xff] }
 0x103   :  { %5777 = vmatmul.mubr.msk.f32.gmra.mxu1 %vm125_vm0, %v523_v8  ;;  %v2889_v31 = vmul.f32 %v6694_v49, %v2848_v5 }
 0x104   :  { %5779 = vmatprep.mubr.msk.f32.mxu1 %vm125_vm0, %v524_v19  ;;  %5794 = vmatmul.mubr.msk.f32.vlgmr.msra.gmra.mxu0 %vm125_vm0, %v804_v21  ;;  %v2753_v19 = vmul.f32 %v6674_v42, %v6788_v10  ;;  %v2684_v21 = vmul.f32 %v6679_v43, %v6790_v11 }
 0x105   :  { %5796 = vmatprep.mubr.msk.f32.mxu0 %vm125_vm0, %v805_v24  ;;  %5808 = vmatpush3.msra.mxu1 %v964_v14  ;;  %v2897_v50 = vadd.f32 %v2889_v31, %v2828_v39  ;;  %v1104_v14 = vld [vmem:[#allocation2 + $0xc] sm:$0xff]  ;;  %v1106_v24 = vld [vmem:[#allocation2 + $0x1c] sm:$0xff]  ;;  %v1109_v31 = vld [vmem:[#allocation2 + $0x34] sm:$0xff] }
 0x106   :  { %v2853_v23 = vpop.permute.xlu1 %2852  ;;  %v6809_v48 = vpop.permute.xlu0 %2724  ;;  %5809 = vmatprep.subr.mxu1 %v963_v22  ;;  %5826 = vmatpush3.msra.mxu0 %v1115_v36  ;;  %v955_v36 = vld [vmem:[#allocation2 + $0x13] sm:$0xff] }
 0x107   :  { %5780 = vmatmul.mubr.msk.f32.gmra.mxu1 %vm125_vm0, %v525_v17  ;;  %5827 = vmatprep.subr.mxu0 %v1114_v26  ;;  %v2890_v28 = vmul.f32 %v6694_v49, %v2853_v23  ;;  %v2761_v23 = vadd.f32 %v2753_v19, %v2684_v21  ;;  %v2754_v11 = vmul.f32 %v6674_v42, %v6809_v48 }
 0x108   :  { %5782 = vmatprep.mubr.msk.f32.mxu1 %vm125_vm0, %v526_v32  ;;  %5797 = vmatmul.mubr.msk.f32.gmra.mxu0 %vm125_vm0, %v806_v33  ;;  %v2685_v32 = vmul.f32 %v6679_v43, %v6798_v46 }
 0x109   :  { %5799 = vmatprep.mubr.msk.f32.mxu0 %vm125_vm0, %v807_v35  ;;  %5810 = vmatpush3.msra.mxu1 %v963_v22  ;;  %v2898_v54 = vadd.f32 %v2890_v28, %v2829_v58  ;;  %v959_v22 = vld [vmem:[#allocation2 + $0x33] sm:$0xff] }
 0x10a   :  { %v2917_v47 = vpop.permute.xlu1 %2916  ;;  %v2789_v20 = vpop.permute.xlu0 %2788  ;;  %5811 = vmatprep.subr.mxu1 %v962_v34  ;;  %5828 = vmatpush3.msra.mxu0 %v1114_v26  ;;  %v1107_v26 = vld [vmem:[#allocation2 + $0x24] sm:$0xff]  ;;  %v2762_v25 = vadd.f32 %v2754_v11, %v2685_v32 }
 0x10b   :  { %v2958_v52 = vmul.f32 %v6702_v57, %v2917_v47  ;;  %5783 = vmatmul.mubr.msk.f32.gmra.mxu1 %vm125_vm0, %v527_v41  ;;  %5829 = vmatprep.subr.mxu0 %v1113_v38  ;;  %v2822_v27 = vmul.f32 %v6684_v44, %v2789_v20  ;;  %v1110_v47 = vld [vmem:[#allocation2 + $0x3c] sm:$0xf] }
 0x10c   :  { %5800 = vmatmul.mubr.msk.f32.gmra.mxu0 %vm125_vm0, %v808_v29  ;;  %5813 = vmatprep.mubr.msk.f32.mxu1 %vm125_vm0, %v953_v53 }
 0x10d   :  { %v2966_v60 = vadd.f32 %v2958_v52, %v2897_v50  ;;  %5802 = vmatprep.mubr.msk.f32.mxu0 %vm125_vm0, %v809_v55  ;;  %5812 = vmatpush3.msra.mxu1 %v962_v34  ;;  %v2830_v33 = vadd.f32 %v2822_v27, %v2761_v23 }
 0x10e   :  { %v2922_v61 = vpop.permute.xlu1 %2921  ;;  %v2794_v62 = vpop.permute.xlu0 %2793  ;;  %5830 = vmatpush3.msra.mxu0 %v1113_v38 }
 0x10f   :  { %v2981_v1 = vadd.f32 %v6712_v0, %v2966_v60  ;;  %v2959_v2 = vmul.f32 %v6702_v57, %v2922_v61  ;;  %5814 = vmatmul.mubr.msk.f32.vlgmr.msra.gmra.mxu1 %vm125_vm0, %v954_v63  ;;  %5831 = vmatprep.subr.mxu0 %v1112_v56  ;;  %v2823_v34 = vmul.f32 %v6684_v44, %v2794_v62 }
 0x110   :  { %5803 = vmatmul.mubr.msk.f32.gmra.mxu0 %vm125_vm0, %v810_v3  ;;  %5816 = vmatprep.mubr.msk.f32.mxu1 %vm125_vm0, %v955_v36 }
 0x111   :  { %v2989_v37 = vmax.f32 %v2981_v1, 0.0  ;;  %v2967_v6 = vadd.f32 %v2959_v2, %v2898_v54  ;;  %5833 = vmatprep.mubr.msk.f32.mxu0 %vm125_vm0, %v1103_v51  ;;  %5832 = vmatpush3.msra.mxu0 %v1112_v56  ;;  %v2831_v20 = vadd.f32 %v2823_v34, %v2762_v25 }
 0x112   :  { %v6829_v7 = vpop.permute.xlu1 %2729  ;;  %v6831_v9 = vpop.permute.xlu0 %2660 }
 0x113   :  { %v2982_v4 = vadd.f32 %v6712_v0, %v2967_v6  ;;  %2997 = vst.msk [vmem:[#allocation2 + $0x1] sm:$0xff] %vm125_vm0, %v2989_v37  ;;  %5817 = vmatmul.mubr.msk.f32.gmra.mxu1 %vm125_vm0, %v956_v12  ;;  %v2755_v54 = vmul.f32 %v6674_v42, %v6829_v7  ;;  %v2686_v1 = vmul.f32 %v6679_v43, %v6831_v9 }
 0x114   :  { %5819 = vmatprep.mubr.msk.f32.mxu1 %vm125_vm0, %v957_v13  ;;  %5834 = vmatmul.mubr.msk.f32.vlgmr.msra.gmra.mxu0 %vm125_vm0, %v1104_v14 }
 0x115   :  { %v2990_v5 = vmax.f32 %v2982_v4, 0.0  ;;  %5836 = vmatprep.mubr.msk.f32.mxu0 %vm125_vm0, %v1105_v45  ;;  %v2763_v51 = vadd.f32 %v2755_v54, %v2686_v1 }
 0x116   :  { %v2666_v8 = vpop.permute.xlu1 %2665  ;;  %v2858_v15 = vpop.permute.xlu0 %2857 }
 0x117   :  { %2998 = vst.msk [vmem:[#allocation2 + $0x9] sm:$0xff] %vm125_vm0, %v2990_v5  ;;  %5820 = vmatmul.mubr.msk.f32.gmra.mxu1 %vm125_vm0, %v958_v18  ;;  %v2891_v17 = vmul.f32 %v6694_v49, %v2858_v15  ;;  %v2687_v12 = vmul.f32 %v6679_v43, %v2666_v8 }
 0x118   :  { %5822 = vmatprep.mubr.msk.f32.mxu1 %vm125_vm0, %v959_v22  ;;  %5837 = vmatmul.mubr.msk.f32.gmra.mxu0 %vm125_vm0, %v1106_v24 }
 0x119   :  { %5839 = vmatprep.mubr.msk.f32.mxu0 %vm125_vm0, %v1107_v26  ;;  %v2899_v48 = vadd.f32 %v2891_v17, %v2830_v33 }
 0x11a   :  { %v2863_v16 = vpop.permute.xlu1 %2862  ;;  %v2735_v10 = vpop.permute.xlu0 %2734 }
 0x11b   :  { %5823 = vmatmul.mubr.msk.f32.gmra.mxu1 %vm125_vm0, %v960_v59  ;;  %v2892_v39 = vmul.f32 %v6694_v49, %v2863_v16  ;;  %v2756_v37 = vmul.f32 %v6674_v42, %v2735_v10 }
 0x11c   :  { %5840 = vmatmul.mubr.msk.f32.gmra.mxu0 %vm125_vm0, %v1108_v30 }
 0x11d   :  { %5842 = vmatprep.mubr.msk.f32.mxu0 %vm125_vm0, %v1109_v31  ;;  %v2900_v28 = vadd.f32 %v2892_v39, %v2831_v20  ;;  %v2764_v45 = vadd.f32 %v2756_v37, %v2687_v12 }
 0x11e   :  { %v2927_v35 = vpop.permute.xlu1 %2926  ;;  %v2799_v38 = vpop.permute.xlu0 %2798 }
 0x11f   :  { %v2960_v40 = vmul.f32 %v6702_v57, %v2927_v35  ;;  %v2824_v2 = vmul.f32 %v6684_v44, %v2799_v38 }
 0x120   :  { %5843 = vmatmul.mubr.msk.f32.gmra.mxu0 %vm125_vm0, %v1110_v47 }
 0x121   :  { %v2968_v41 = vadd.f32 %v2960_v40, %v2899_v48  ;;  %v2832_v4 = vadd.f32 %v2824_v2, %v2763_v51 }
 0x122   :  { %v2932_v50 = vpop.permute.xlu1 %2931  ;;  %v2804_v46 = vpop.permute.xlu0 %2803 }
 0x123   :  { %v2983_v52 = vadd.f32 %v6712_v0, %v2968_v41  ;;  %v2961_v29 = vmul.f32 %v6702_v57, %v2932_v50  ;;  %v2825_v13 = vmul.f32 %v6684_v44, %v2804_v46 }
 0x125   :  { %v2991_v53 = vmax.f32 %v2983_v52, 0.0  ;;  %v2969_v55 = vadd.f32 %v2961_v29, %v2900_v28  ;;  %v2833_v18 = vadd.f32 %v2825_v13, %v2764_v45 }
 0x126   :  { %v2740_v56 = vpop.permute.xlu1 %2739  ;;  %v2671_v58 = vpop.permute.xlu0 %2670 }
 0x127   :  { %2999 = vst.msk [vmem:[#allocation2 + $0x11] sm:$0xff] %vm125_vm0, %v2991_v53  ;;  %v2984_v60 = vadd.f32 %v6712_v0, %v2969_v55  ;;  %v2757_v21 = vmul.f32 %v6674_v42, %v2740_v56  ;;  %v2688_v22 = vmul.f32 %v6679_v43, %v2671_v58  ;;  %v86_v53 = vlaneseq }
 0x129   :  { %v2992_v61 = vmax.f32 %v2984_v60, 0.0  ;;  %v2765_v31 = vadd.f32 %v2757_v21, %v2688_v22  ;;  %v6896_v55 = vshrl.u32 %v86_v53, 7  ;;  %v6899_v58 = vand.u32 127, %v86_v53 }
 0x12a   :  { %v2676_v62 = vpop.permute.xlu1 %2675  ;;  %v2868_v63 = vpop.permute.xlu0 %2867 }
 0x12b   :  { %3000 = vst.msk [vmem:[#allocation2 + $0x19] sm:$0xff] %vm125_vm0, %v2992_v61  ;;  %v2893_v6 = vmul.f32 %v6694_v49, %v2868_v63  ;;  %v2689_v59 = vmul.f32 %v6679_v43, %v2676_v62  ;;  %v93_v56 = vmul.u32 2, %v6896_v55 }
 0x12d   :  { %v2901_v9 = vadd.f32 %v2893_v6, %v2832_v4  ;;  %vm97_vm3 = vcmp.eq.s32.totalorder %v6899_v58, %v93_v56 }
 0x12e   :  { %v2873_v3 = vpop.permute.xlu1 %2872  ;;  %v2745_v36 = vpop.permute.xlu0 %2744 }
 0x12f   :  { %v2894_v5 = vmul.f32 %v6694_v49, %v2873_v3  ;;  %v2758_v27 = vmul.f32 %v6674_v42, %v2745_v36 }
 0x131   :  { %v2902_v8 = vadd.f32 %v2894_v5, %v2833_v18  ;;  %v2766_v34 = vadd.f32 %v2758_v27, %v2689_v59 }
 0x132   :  { %v2937_v7 = vpop.permute.xlu1 %2936  ;;  %v2809_v14 = vpop.permute.xlu0 %2808 }
 0x133   :  { %v2962_v15 = vmul.f32 %v6702_v57, %v2937_v7  ;;  %v2826_v11 = vmul.f32 %v6684_v44, %v2809_v14 }
 0x135   :  { %v2970_v19 = vadd.f32 %v2962_v15, %v2901_v9  ;;  %v2834_v25 = vadd.f32 %v2826_v11, %v2765_v31 }
 0x136   :  { %v2942_v24 = vpop.permute.xlu1 %2941  ;;  %v2814_v26 = vpop.permute.xlu0 %2813 }
 0x137   :  { %v2985_v16 = vadd.f32 %v6712_v0, %v2970_v19  ;;  %v2963_v10 = vmul.f32 %v6702_v57, %v2942_v24  ;;  %v2827_v30 = vmul.f32 %v6684_v44, %v2814_v26 }
 0x139   :  { %v2993_v23 = vmax.f32 %v2985_v16, 0.0  ;;  %v2971_v17 = vadd.f32 %v2963_v10, %v2902_v8  ;;  %v2835_v48 = vadd.f32 %v2827_v30, %v2766_v34 }
 0x13a   :  { %v2883_v32 = vpop.permute.xlu1 %2882  ;;  %v2878_v33 = vpop.permute.xlu0 %2877 }
 0x13b   :  { %3001 = vst.msk [vmem:[#allocation2 + $0x21] sm:$0xff] %vm125_vm0, %v2993_v23  ;;  %v2986_v42 = vadd.f32 %v6712_v0, %v2971_v17  ;;  %v2896_v35 = vmul.f32 %v6694_v49, %v2883_v32  ;;  %v2895_v38 = vmul.f32 %v6694_v49, %v2878_v33 }
 0x13d   :  { %v2994_v43 = vmax.f32 %v2986_v42, 0.0  ;;  %v2904_v44 = vadd.f32 %v2896_v35, %v2835_v48  ;;  %v2903_v47 = vadd.f32 %v2895_v38, %v2834_v25 }
 0x13e   :  { %v2952_v39 = vpop.permute.xlu1 %2951  ;;  %v2947_v40 = vpop.permute.xlu0 %2946 }
 0x13f   :  { %3002 = vst.msk [vmem:[#allocation2 + $0x29] sm:$0xff] %vm125_vm0, %v2994_v43  ;;  %v2965_v20 = vmul.f32 %v6702_v57, %v2952_v39  ;;  %v2964_v41 = vmul.f32 %v6702_v57, %v2947_v40  ;;  %v109_v57 = vadd.s32 1, %v93_v56 }
 0x141   :  { %v2973_v50 = vadd.f32 %v2965_v20, %v2904_v44  ;;  %v2972_v46 = vadd.f32 %v2964_v41, %v2903_v47  ;;  %vm113_vm4 = vcmp.eq.s32.totalorder %v6899_v58, %v109_v57  ;;  %v5137_v57 = vld [vmem:[%s7958_s4] ss:$0 sm:$0xff] }
 0x143   :  { %v2988_v28 = vadd.f32 %v6712_v0, %v2973_v50  ;;  %v2987_v52 = vadd.f32 %v6712_v0, %v2972_v46  ;;  %v6903_v0 = vld [vmem:[#allocation4] sm:$0xff] }
 0x144   :  { %v6906_v60 = vsel %vm97_vm3, 1.0, %v6903_v0  ;;  %v6909_v61 = vsel %vm113_vm4, 1.0, %v6903_v0  ;;  %136 = vst.msk [vmem:[#allocation3 + $0x8] sm:$0xff] %vm134_vm12, %v6903_v0  ;;  %137 = vst.msk [vmem:[#allocation3 + $0x10] sm:$0xff] %vm134_vm12, %v6903_v0  ;;  %vm6316_vm3 = vmmov 0  }
 0x145   :  { %v2996_v49 = vmax.f32 %v2988_v28, 0.0  ;;  %v2995_v29 = vmax.f32 %v2987_v52, 0.0  ;;  %5861 = vmatprep.mubr.msk.f32.mxu1 %vm1276_vm2, %v6906_v60  ;;  %5883 = vmatprep.mubr.msk.f32.mxu0 %vm1276_vm2, %v6909_v61  ;;  %135 = vst.msk [vmem:[#allocation3] sm:$0xff] %vm134_vm12, %v6903_v0  ;;  %138 = vst.msk [vmem:[#allocation3 + $0x18] sm:$0xff] %vm134_vm12, %v6903_v0 }
 0x147   :  { %3004 = vst.msk [vmem:[#allocation2 + $0x39] sm:$0x3f] %vm518_vm1, %v2996_v49  ;;  %vm2423_vm1 = vcmask 1046528  }
 0x148   :  { %3003 = vst.msk [vmem:[#allocation2 + $0x31] sm:$0xff] %vm125_vm0, %v2995_v29 }
 0x1a7   :  { %v5761_v62 = vpop.f32.mrf.mxu1 }
 0x1a9   :  { %v655_v63 = vpop.f32.mrf.mxu1 }
 0x1b3   :  { %v5755_v54 = vpop.f32.mrf.mxu0 }
 0x1b5   :  { %v635_v3 = vpop.f32.mrf.mxu0 }
 0x1bb   :  { %v5764_v1 = vpop.f32.mrf.mxu1 }
 0x1bd   :  { %v665_v2 = vpop.f32.mrf.mxu1 }
 0x1bf   :  { %v5775_v36 = vpop.f32.mrf.mxu1 }
 0x1c0   :  { %v5758_v51 = vpop.f32.mrf.mxu0  ;;  %v770_v53 = vadd.f32 %v5775_v36, %v5755_v54 }
 0x1c1   :  { %v764_v37 = vpop.f32.mrf.mxu1 }
 0x1c2   :  { %v645_v6 = vpop.f32.mrf.mxu0 }
 0x1c3   :  { %v5778_v12 = vpop.f32.mrf.mxu1 }
 0x1c4   :  { %v5795_v4 = vpop.f32.mrf.mxu0  ;;  %v780_v43 = vadd.f32 %v5778_v12, %v5758_v51  ;;  %v765_v12 = vadd.f32 %v764_v37, %v635_v3  ;;  %v90_v37 = vadd.s32 24, %v6896_v55 }
 0x1c5   :  { %v774_v13 = vpop.f32.mrf.mxu1 }
 0x1c6   :  { %v906_v7 = vpop.f32.mrf.mxu0  ;;  %v775_v41 = vadd.f32 %v774_v13, %v645_v6  ;;  %v946_v6 = vadd.f32 %v5795_v4, %v770_v53  ;;  %v1502_v53 = vld [vmem:[#allocation8 + $0x48] sm:$0xff] }
 0x1c7   :  { %v5781_v14 = vpop.f32.mrf.mxu1  ;;  %v945_v36 = vadd.f32 %v906_v7, %v765_v12 }
 0x1c8   :  { %v5798_v45 = vpop.f32.mrf.mxu0  ;;  %v790_v31 = vadd.f32 %v5781_v14, %v5761_v62  ;;  %v88_v14 = vadd.s32 8, %v6896_v55 }
 0x1c9   :  { %v784_v9 = vpop.f32.mrf.mxu1  ;;  %v948_v50 = vadd.f32 %v5798_v45, %v780_v43 }
 0x1ca   :  { %v916_v5 = vpop.f32.mrf.mxu0  ;;  %v785_v42 = vadd.f32 %v784_v9, %v655_v63  ;;  %v94_v3 = vmul.u32 2, %v88_v14 }
 0x1cb   :  { %v5784_v15 = vpop.f32.mrf.mxu1  ;;  %v947_v56 = vadd.f32 %v916_v5, %v775_v41  ;;  %v89_v5 = vadd.s32 16, %v6896_v55  ;;  %v1493_v41 = vld [vmem:[#allocation8 + $0x28] sm:$0xff] }
 0x1cc   :  { %v5801_v18 = vpop.f32.mrf.mxu0  ;;  %v800_v32 = vadd.f32 %v5784_v15, %v5764_v1  ;;  %vm98_vm6 = vcmp.eq.s32.totalorder %v6899_v58, %v94_v3 }
 0x1cd   :  { %v794_v19 = vpop.f32.mrf.mxu1  ;;  %v950_v35 = vadd.f32 %v5801_v18, %v790_v31 }
 0x1ce   :  { %v926_v21 = vpop.f32.mrf.mxu0  ;;  %v795_v38 = vadd.f32 %v794_v19, %v665_v2 }
 0x1cf   :  { %v5815_v22 = vpop.f32.mrf.mxu1  ;;  %v949_v40 = vadd.f32 %v926_v21, %v785_v42 }
 0x1d0   :  { %v5804_v24 = vpop.f32.mrf.mxu0  ;;  %v1096_v18 = vadd.f32 %v5815_v22, %v946_v6  ;;  %v95_v22 = vmul.u32 2, %v89_v5 }
 0x1d1   :  { %v1056_v26 = vpop.f32.mrf.mxu1  ;;  %v952_v25 = vadd.f32 %v5804_v24, %v800_v32 }
 0x1d2   :  { %v936_v8 = vpop.f32.mrf.mxu0  ;;  %v1095_v4 = vadd.f32 %v1056_v26, %v945_v36  ;;  %v110_v26 = vadd.s32 1, %v94_v3  ;;  %v111_v31 = vadd.s32 1, %v95_v22  ;;  %vm99_vm8 = vcmp.eq.s32.totalorder %v6899_v58, %v95_v22  ;;  %v1714_v3 = vld [vmem:[#allocation8 + $0xb0] sm:$0xff]  ;;  %v1712_v22 = vld [vmem:[#allocation8 + $0xa0] sm:$0xff] }
 0x1d3   :  { %v5818_v27 = vpop.f32.mrf.mxu1  ;;  %v951_v44 = vadd.f32 %v936_v8, %v795_v38 }
 0x1d4   :  { %v5835_v16 = vpop.f32.mrf.mxu0  ;;  %v1098_v63 = vadd.f32 %v5818_v27, %v948_v50  ;;  %vm114_vm7 = vcmp.eq.s32.totalorder %v6899_v58, %v110_v26  ;;  %vm115_vm9 = vcmp.eq.s32.totalorder %v6899_v58, %v111_v31  ;;  %v1505_v50 = vld [vmem:[#allocation8 + $0x60] sm:$0xff] }
 0x1d5   :  { %v1066_v10 = vpop.f32.mrf.mxu1  ;;  %v1246_v8 = vadd.f32 %v5835_v16, %v1096_v18  ;;  %v96_v16 = vmul.u32 2, %v90_v37  ;;  %v6936_v38 = vsel %vm114_vm7, 1.0, %v6903_v0  ;;  %v6942_v43 = vsel %vm115_vm9, 1.0, %v6903_v0  ;;  %v1713_v37 = vld [vmem:[#allocation8 + $0xa8] sm:$0xff] }
 0x1d6   :  { %v6915_v59 = vpop.f32.mrf.mxu0  ;;  %v1097_v13 = vadd.f32 %v1066_v10, %v947_v56  ;;  %v1489_v56 = vld [vmem:[#allocation8 + $0x8] sm:$0xff] }
 0x1d7   :  { %v5821_v23 = vpop.f32.mrf.mxu1  ;;  %v1245_v10 = vadd.f32 %v6915_v59, %v1095_v4  ;;  %vm100_vm10 = vcmp.eq.s32.totalorder %v6899_v58, %v96_v16 }
 0x1d8   :  { %v5838_v11 = vpop.f32.mrf.mxu0  ;;  %v1100_v47 = vadd.f32 %v5821_v23, %v950_v35  ;;  %v6933_v35 = vsel %vm98_vm6, 1.0, %v6903_v0 }
 0x1d9   :  { %v1076_v17 = vpop.f32.mrf.mxu1  ;;  %v1248_v45 = vadd.f32 %v5838_v11, %v1098_v63  ;;  %v1260_v32 = vadd.f32 %v5137_v57, %v1245_v10  ;;  %v1715_v63 = vld [vmem:[#allocation8 + $0xb8] sm:$0xff] }
 0x1da   :  { %v1216_v30 = vpop.f32.mrf.mxu0  ;;  %v1099_v28 = vadd.f32 %v1076_v17, %v949_v40  ;;  %v1261_v17 = vadd.f32 %v5137_v57, %v1246_v8  ;;  %v6955_v40 = vsel %vm100_vm10, 1.0, %v6903_v0 }
 0x1db   :  { %v5824_v33 = vpop.f32.mrf.mxu1  ;;  %v1247_v19 = vadd.f32 %v1216_v30, %v1097_v13  ;;  %v1263_v7 = vadd.f32 %v5137_v57, %v1248_v45  ;;  %v1268_v42 = vmax.f32 %v1260_v32, 0.0  ;;  %v5191_v32 = vld [vmem:[%s7961_s7 + $0x1f0] sm:$0xff] }
 0x1dc   :  { %v5841_v34 = vpop.f32.mrf.mxu0  ;;  %v1102_v20 = vadd.f32 %v5824_v33, %v952_v25  ;;  %v1269_v59 = vmax.f32 %v1261_v17, 0.0  ;;  %v6939_v25 = vsel %vm99_vm8, 1.0, %v6903_v0  ;;  %v1709_v17 = vld [vmem:[#allocation8 + $0x88] sm:$0xff] }
 0x1dd   :  { %v1086_v48 = vpop.f32.mrf.mxu1  ;;  %v1250_v52 = vadd.f32 %v5841_v34, %v1100_v47  ;;  %v1262_v23 = vadd.f32 %v5137_v57, %v1247_v19  ;;  %v1271_v30 = vmax.f32 %v1263_v7, 0.0  ;;  %v112_v34 = vadd.s32 1, %v96_v16  ;;  %v1494_v47 = vld [vmem:[#allocation8 + $0x30] sm:$0xff] }
 0x1de   :  { %v1226_v39 = vpop.f32.mrf.mxu0  ;;  %v1101_v49 = vadd.f32 %v1086_v48, %v951_v44  ;;  %v1508_v48 = vld [vmem:[#allocation8 + $0x78] sm:$0xff]  ;;  %v1507_v44 = vld [vmem:[#allocation8 + $0x70] sm:$0xff] }
 0x1df   :  { %v1249_v1 = vadd.f32 %v1226_v39, %v1099_v28  ;;  %v1265_v9 = vadd.f32 %v5137_v57, %v1250_v52  ;;  %v1270_v33 = vmax.f32 %v1262_v23, 0.0  ;;  %vm116_vm11 = vcmp.eq.s32.totalorder %v6899_v58, %v112_v34  ;;  %v1495_v39 = vld [vmem:[#allocation8 + $0x38] sm:$0xff] }
 0x1e0   :  { %v5844_v46 = vpop.f32.mrf.mxu0  ;;  %v6958_v58 = vsel %vm116_vm11, 1.0, %v6903_v0  ;;  %v1504_v28 = vld [vmem:[#allocation8 + $0x58] sm:$0xff] }
 0x1e1   :  { %v1252_v29 = vadd.f32 %v5844_v46, %v1102_v20  ;;  %v1264_v21 = vadd.f32 %v5137_v57, %v1249_v1  ;;  %v1273_v27 = vmax.f32 %v1265_v9, 0.0  ;;  %v1506_v20 = vld [vmem:[#allocation8 + $0x68] sm:$0xff]  ;;  %v1492_v46 = vld [vmem:[#allocation8 + $0x20] sm:$0xff]  ;;  %v1491_v52 = vld [vmem:[#allocation8 + $0x18] sm:$0xff] }
 0x1e2   :  { %v1236_v62 = vpop.f32.mrf.mxu0  ;;  %v5192_v1 = vld [vmem:[%s7961_s7 + $0x1f8] sm:$0xff] }
 0x1e3   :  { %v1267_v2 = vadd.f32 %v5137_v57, %v1252_v29  ;;  %v1251_v51 = vadd.f32 %v1236_v62, %v1101_v49  ;;  %v1272_v11 = vmax.f32 %v1264_v21, 0.0  ;;  %v1503_v49 = vld [vmem:[#allocation8 + $0x50] sm:$0xff]  ;;  %v1488_v62 = vld [vmem:[#allocation8] sm:$0xff]  ;;  %v1711_v23 = vld [vmem:[#allocation8 + $0x98] sm:$0xff] }
 0x1e4   :  { %v1490_v29 = vld [vmem:[#allocation8 + $0x10] sm:$0xff]  ;;  %v5188_v34 = vld [vmem:[%s7961_s7 + $0x1d8] sm:$0xff] }
 0x1e5   :  { %v1275_v15 = vmax.f32 %v1267_v2, 0.0  ;;  %v1266_v54 = vadd.f32 %v5137_v57, %v1251_v51  ;;  %v1501_v57 = vld [vmem:[#allocation8 + $0x40] sm:$0xff] }
 0x1e7   :  { %v1274_v24 = vmax.f32 %v1266_v54, 0.0  ;;  %5845 = vmatprep.subr.msk.mxu1 %vm1289_vm5, %v1275_v15  ;;  %5867 = vmatprep.subr.msk.mxu0 %vm1289_vm5, %v1275_v15 }
 0x1e8   :  { %5846 = vmatpush3.msk.msra.mxu1 %vm1289_vm5, %v1275_v15  ;;  %5868 = vmatpush3.msk.msra.mxu0 %vm1289_vm5, %v1275_v15 }
 0x1e9   :  { %5847 = vmatprep.subr.mxu1 %v1274_v24  ;;  %5869 = vmatprep.subr.mxu0 %v1274_v24 }
 0x1ea   :  { %5848 = vmatpush3.msra.mxu1 %v1274_v24  ;;  %5870 = vmatpush3.msra.mxu0 %v1274_v24 }
 0x1eb   :  { %5849 = vmatprep.subr.mxu1 %v1273_v27  ;;  %5871 = vmatprep.subr.mxu0 %v1273_v27 }
 0x1ec   :  { %5850 = vmatpush3.msra.mxu1 %v1273_v27  ;;  %5872 = vmatpush3.msra.mxu0 %v1273_v27 }
 0x1ed   :  { %5851 = vmatprep.subr.mxu1 %v1272_v11  ;;  %5873 = vmatprep.subr.mxu0 %v1272_v11 }
 0x1ee   :  { %5852 = vmatpush3.msra.mxu1 %v1272_v11  ;;  %5874 = vmatpush3.msra.mxu0 %v1272_v11  ;;  %v1710_v11 = vld [vmem:[#allocation8 + $0x90] sm:$0xff] }
 0x1ef   :  { %5853 = vmatprep.subr.mxu1 %v1271_v30  ;;  %5875 = vmatprep.subr.mxu0 %v1271_v30 }
 0x1f0   :  { %5854 = vmatpush3.msra.mxu1 %v1271_v30  ;;  %5876 = vmatpush3.msra.mxu0 %v1271_v30  ;;  %v1708_v30 = vld [vmem:[#allocation8 + $0x80] sm:$0xff] }
 0x1f1   :  { %5855 = vmatprep.subr.mxu1 %v1270_v33  ;;  %5877 = vmatprep.subr.mxu0 %v1270_v33 }
 0x1f2   :  { %5856 = vmatpush3.msra.mxu1 %v1270_v33  ;;  %5878 = vmatpush3.msra.mxu0 %v1270_v33  ;;  %v5190_v33 = vld [vmem:[%s7961_s7 + $0x1e8] sm:$0xff] }
 0x1f3   :  { %5857 = vmatprep.subr.mxu1 %v1269_v59  ;;  %5879 = vmatprep.subr.mxu0 %v1269_v59 }
 0x1f4   :  { %5858 = vmatpush3.msra.mxu1 %v1269_v59  ;;  %5880 = vmatpush3.msra.mxu0 %v1269_v59  ;;  %v5189_v59 = vld [vmem:[%s7961_s7 + $0x1e0] sm:$0xff] }
 0x1f5   :  { %5859 = vmatprep.subr.mxu1 %v1268_v42  ;;  %5881 = vmatprep.subr.mxu0 %v1268_v42 }
 0x1f6   :  { %5860 = vmatpush3.msra.mxu1 %v1268_v42  ;;  %5882 = vmatpush3.msra.mxu0 %v1268_v42  ;;  %v5187_v42 = vld [vmem:[%s7961_s7 + $0x1d0] sm:$0xff] }
 0x1f7   :  { %5862 = vmatmul.mubr.msk.f32.vlgmr.msra.gmra.mxu1 %vm1276_vm2, %v6933_v35  ;;  %5884 = vmatmul.mubr.msk.f32.vlgmr.msra.gmra.mxu0 %vm1276_vm2, %v6936_v38 }
 0x1f8   :  { %5864 = vmatprep.mubr.msk.f32.mxu1 %vm1276_vm2, %v6939_v25  ;;  %5886 = vmatprep.mubr.msk.f32.mxu0 %vm1276_vm2, %v6942_v43 }
 0x1f9   :  { %5889 = vmatprep.subr.mxu1 %v1508_v48  ;;  %5911 = vmatprep.subr.mxu0 %v1495_v39 }
 0x1fa   :  { %5890 = vmatpush3.msra.mxu1 %v1508_v48  ;;  %5912 = vmatpush3.msra.mxu0 %v1495_v39  ;;  %v5186_v48 = vld [vmem:[%s7961_s7 + $0x1c8] sm:$0xff]  ;;  %v1871_v39 = vld [vmem:[%s7961_s7 + $0xf8] sm:$0xff] }
 0x1fb   :  { %5865 = vmatmul.mubr.msk.f32.gmra.mxu1 %vm1276_vm2, %v6955_v40  ;;  %5887 = vmatmul.mubr.msk.f32.gmra.mxu0 %vm1276_vm2, %v6958_v58 }
 0x1fc   :  { %5891 = vmatprep.subr.mxu1 %v1507_v44  ;;  %5913 = vmatprep.subr.mxu0 %v1494_v47 }
 0x1fd   :  { %5892 = vmatpush3.msra.mxu1 %v1507_v44  ;;  %5914 = vmatpush3.msra.mxu0 %v1494_v47  ;;  %v1870_v44 = vld [vmem:[%s7961_s7 + $0xf0] sm:$0xff]  ;;  %v5185_v47 = vld [vmem:[%s7961_s7 + $0x1c0] sm:$0xff] }
 0x1fe   :  { %5893 = vmatprep.subr.mxu1 %v1506_v20  ;;  %5915 = vmatprep.subr.mxu0 %v1493_v41 }
 0x1ff   :  { %5894 = vmatpush3.msra.mxu1 %v1506_v20  ;;  %5916 = vmatpush3.msra.mxu0 %v1493_v41  ;;  %v5184_v20 = vld [vmem:[%s7961_s7 + $0x1b8] sm:$0xff]  ;;  %v1869_v41 = vld [vmem:[%s7961_s7 + $0xe8] sm:$0xff] }
 0x200   :  { %5895 = vmatprep.subr.mxu1 %v1505_v50  ;;  %5917 = vmatprep.subr.mxu0 %v1492_v46 }
 0x201   :  { %5896 = vmatpush3.msra.mxu1 %v1505_v50  ;;  %5918 = vmatpush3.msra.mxu0 %v1492_v46  ;;  %v1868_v50 = vld [vmem:[%s7961_s7 + $0xe0] sm:$0xff]  ;;  %v1867_v46 = vld [vmem:[%s7961_s7 + $0xd8] sm:$0xff] }
 0x202   :  { %5897 = vmatprep.subr.mxu1 %v1504_v28  ;;  %5919 = vmatprep.subr.mxu0 %v1491_v52 }
 0x203   :  { %5898 = vmatpush3.msra.mxu1 %v1504_v28  ;;  %5920 = vmatpush3.msra.mxu0 %v1491_v52  ;;  %v1866_v28 = vld [vmem:[%s7961_s7 + $0xd0] sm:$0xff] }
 0x204   :  { %5899 = vmatprep.subr.mxu1 %v1503_v49  ;;  %5921 = vmatprep.subr.mxu0 %v1490_v29  ;;  %v5183_v52 = vld [vmem:[%s7961_s7 + $0x1b0] sm:$0xff] }
 0x205   :  { %5900 = vmatpush3.msra.mxu1 %v1503_v49  ;;  %5922 = vmatpush3.msra.mxu0 %v1490_v29  ;;  %v5182_v49 = vld [vmem:[%s7961_s7 + $0x1a8] sm:$0xff]  ;;  %v5181_v29 = vld [vmem:[%s7961_s7 + $0x1a0] sm:$0xff] }
 0x206   :  { %5901 = vmatprep.subr.mxu1 %v1502_v53  ;;  %5923 = vmatprep.subr.mxu0 %v1489_v56 }
 0x207   :  { %5902 = vmatpush3.msra.mxu1 %v1502_v53  ;;  %5924 = vmatpush3.msra.mxu0 %v1489_v56  ;;  %v1865_v53 = vld [vmem:[%s7961_s7 + $0xc8] sm:$0xff]  ;;  %v1864_v56 = vld [vmem:[%s7961_s7 + $0xc0] sm:$0xff] }
 0x208   :  { %5903 = vmatprep.subr.mxu1 %v1501_v57  ;;  %5925 = vmatprep.subr.mxu0 %v1488_v62 }
 0x209   :  { %5904 = vmatpush3.msra.mxu1 %v1501_v57  ;;  %5926 = vmatpush3.msra.mxu0 %v1488_v62  ;;  %v5180_v57 = vld [vmem:[%s7961_s7 + $0x198] sm:$0xff]  ;;  %v5179_v62 = vld [vmem:[%s7961_s7 + $0x190] sm:$0xff] }
 0x20a   :  { %5933 = vmatprep.subr.mxu1 %v1715_v63  ;;  %1909 = vmatprep.subr.mxu0 %v5192_v1  ;;  %v1862_v1 = vld [vmem:[%s7961_s7 + $0xb0] sm:$0xff] }
 0x2b7   :  { %v5863_v2 = vpop.f32.mrf.mxu1  ;;  %v5885_v51 = vpop.f32.mrf.mxu0 }
 0x2b8   :  { %v1476_v12 = vmax.f32 %v5863_v2, %v5885_v51  ;;  %v1861_v2 = vld [vmem:[%s7961_s7 + $0xa8] sm:$0xff] }
 0x2b9   :  { %v1359_v6 = vpop.f32.mrf.mxu1  ;;  %v1456_v13 = vpop.f32.mrf.mxu0  ;;  %v5178_v51 = vld [vmem:[%s7961_s7 + $0x188] sm:$0xff] }
 0x2ba   :  { %1480 = vst.msk [vmem:[#allocation3 + $0x9] sm:$0xff] %vm134_vm12, %v1476_v12  ;;  %v1475_v14 = vmax.f32 %v1359_v6, %v1456_v13  ;;  %v1860_v12 = vld [vmem:[%s7961_s7 + $0xa0] sm:$0xff]  ;;  %v1859_v13 = vld [vmem:[%s7961_s7 + $0x98] sm:$0xff] }
 0x2bb   :  { %v5866_v45 = vpop.f32.mrf.mxu1  ;;  %v5888_v9 = vpop.f32.mrf.mxu0  ;;  %v5177_v6 = vld [vmem:[%s7961_s7 + $0x180] sm:$0xff] }
 0x2bc   :  { %1479 = vst.msk [vmem:[#allocation3 + $0x1] sm:$0xff] %vm134_vm12, %v1475_v14  ;;  %v1478_v15 = vmax.f32 %v5866_v45, %v5888_v9  ;;  %v5176_v14 = vld [vmem:[%s7961_s7 + $0x178] sm:$0xff]  ;;  %v5175_v45 = vld [vmem:[%s7961_s7 + $0x170] sm:$0xff] }
 0x2bd   :  { %v1369_v54 = vpop.f32.mrf.mxu1  ;;  %v1466_v36 = vpop.f32.mrf.mxu0  ;;  %v1858_v9 = vld [vmem:[%s7961_s7 + $0x90] sm:$0xff] }
 0x2be   :  { %1483 = vst.msk [vmem:[#allocation3 + $0x19] sm:$0x3f] %vm1482_vm13, %v1478_v15  ;;  %v1477_v5 = vmax.f32 %v1369_v54, %v1466_v36  ;;  %v5174_v15 = vld [vmem:[%s7961_s7 + $0x168] sm:$0xff]  ;;  %v5173_v36 = vld [vmem:[%s7961_s7 + $0x160] sm:$0xff] }
 0x2bf   :  { %v1857_v54 = vld [vmem:[%s7961_s7 + $0x88] sm:$0xff] }
 0x2c0   :  { %1481 = vst.msk [vmem:[#allocation3 + $0x11] sm:$0xff] %vm134_vm12, %v1477_v5  ;;  %v5172_v5 = vld [vmem:[%s7961_s7 + $0x158] sm:$0xff] }
 0x2c1   :  { %v1497_v24 = vld [vmem:[#allocation3 + $0x9] sm:$0xff] }
 0x2c3   :  { %v1496_v18 = vld [vmem:[#allocation3 + $0x1] sm:$0xff] }
 0x2c4   :  { %v1484_v19 = vld [vmem:[#allocation3] sm:$0xff]  ;;  %v1485_v21 = vld [vmem:[#allocation3 + $0x8] sm:$0xff]  ;;  %5905 = vmatprep.mubr.msk.f32.mxu1 %vm134_vm12, %v1496_v18  ;;  %v5171_v18 = vld [vmem:[%s7961_s7 + $0x150] sm:$0xff] }
 0x2c5   :  { %5927 = vmatprep.mubr.msk.f32.mxu0 %vm134_vm12, %v1484_v19  ;;  %5906 = vmatmul.mubr.msk.f32.vlgmr.msra.gmra.mxu1 %vm134_vm12, %v1497_v24  ;;  %v1499_v4 = vld [vmem:[#allocation3 + $0x19] sm:$0x3f]  ;;  %v1703_v10 = vld [vmem:[#allocation3 + $0x2] sm:$0xff] }
 0x2c6   :  { %5928 = vmatmul.mubr.msk.f32.vlgmr.msra.gmra.mxu0 %vm134_vm12, %v1485_v21  ;;  %5934 = vmatpush3.msra.mxu1 %v1715_v63  ;;  %v1706_v31 = vld [vmem:[#allocation3 + $0x1a] sm:$0x3f]  ;;  %v5170_v19 = vld [vmem:[%s7961_s7 + $0x148] sm:$0xff]  ;;  %v5169_v21 = vld [vmem:[%s7961_s7 + $0x140] sm:$0xff] }
 0x2c7   :  { %5935 = vmatprep.subr.mxu1 %v1714_v3  ;;  %v1498_v8 = vld [vmem:[#allocation3 + $0x11] sm:$0xff]  ;;  %1910 = vmatpush1.msra.mxu0 %v5191_v32  ;;  %v1856_v24 = vld [vmem:[%s7961_s7 + $0x80] sm:$0xff] }
 0x2c8   :  { %v1486_v7 = vld [vmem:[#allocation3 + $0x10] sm:$0xff]  ;;  %v1487_v27 = vld [vmem:[#allocation3 + $0x18] sm:$0x3f]  ;;  %5936 = vmatpush3.msra.mxu1 %v1714_v3  ;;  %5908 = vmatprep.mubr.msk.f32.mxu1 %vm134_vm12, %v1498_v8  ;;  %v1848_v32 = vld [vmem:[%s7961_s7 + $0x40] sm:$0xff] }
 0x2c9   :  { %5930 = vmatprep.mubr.msk.f32.mxu0 %vm134_vm12, %v1486_v7  ;;  %5937 = vmatprep.subr.mxu1 %v1713_v37  ;;  %v1704_v26 = vld [vmem:[#allocation3 + $0xa] sm:$0xff]  ;;  %v1705_v16 = vld [vmem:[#allocation3 + $0x12] sm:$0xff] }
 0x2ca   :  { %5909 = vmatmul.mubr.msk.f32.gmra.mxu1 %vm134_vm12, %v1499_v4  ;;  %5931 = vmatmul.mubr.msk.f32.gmra.mxu0 %vm134_vm12, %v1487_v27  ;;  %v1863_v63 = vld [vmem:[%s7961_s7 + $0xb8] sm:$0xff]  ;;  %v5167_v4 = vld [vmem:[%s7961_s7 + $0x130] sm:$0xff]  ;;  %v5166_v7 = vld [vmem:[%s7961_s7 + $0x128] sm:$0xff] }
 0x2cb   :  { %5938 = vmatpush3.msra.mxu1 %v1713_v37  ;;  %5949 = vmatprep.mubr.msk.f32.mxu1 %vm134_vm12, %v1703_v10  ;;  %v5168_v3 = vld [vmem:[%s7961_s7 + $0x138] sm:$0xff]  ;;  %v1854_v8 = vld [vmem:[%s7961_s7 + $0x70] sm:$0xff]  ;;  %v1853_v27 = vld [vmem:[%s7961_s7 + $0x68] sm:$0xff] }
 0x2cc   :  { %5939 = vmatprep.subr.mxu1 %v1712_v22  ;;  %1973 = vmatprep.mubr.f32.mxu0 %v6903_v0  ;;  %v1855_v37 = vld [vmem:[%s7961_s7 + $0x78] sm:$0xff]  ;;  %v1852_v10 = vld [vmem:[%s7961_s7 + $0x60] sm:$0xff] }
 0x2cd   :  { %5940 = vmatpush3.msra.mxu1 %v1712_v22  ;;  %1911 = vmatprep.subr.mxu0 %v5190_v33  ;;  %v5165_v22 = vld [vmem:[%s7961_s7 + $0x120] sm:$0xff]  ;;  %v5224_v33 = vld [vmem:[%s7961_s7 + $0x2f8] sm:$0xff] }
 0x2ce   :  { %5941 = vmatprep.subr.mxu1 %v1711_v23  ;;  %1912 = vmatpush1.msra.mxu0 %v5189_v59  ;;  %v1847_v59 = vld [vmem:[%s7961_s7 + $0x38] sm:$0xff] }
 0x2cf   :  { %5942 = vmatpush3.msra.mxu1 %v1711_v23  ;;  %1913 = vmatprep.subr.mxu0 %v5188_v34  ;;  %v5164_v23 = vld [vmem:[%s7961_s7 + $0x118] sm:$0xff]  ;;  %v1846_v34 = vld [vmem:[%s7961_s7 + $0x30] sm:$0xff] }
 0x2d0   :  { %5943 = vmatprep.subr.mxu1 %v1710_v11  ;;  %1914 = vmatpush1.msra.mxu0 %v5187_v42  ;;  %v1845_v42 = vld [vmem:[%s7961_s7 + $0x28] sm:$0xff] }
 0x2d1   :  { %5944 = vmatpush3.msra.mxu1 %v1710_v11  ;;  %1915 = vmatprep.subr.mxu0 %v5186_v48  ;;  %v1851_v11 = vld [vmem:[%s7961_s7 + $0x58] sm:$0xff]  ;;  %v1844_v48 = vld [vmem:[%s7961_s7 + $0x20] sm:$0xff] }
 0x2d2   :  { %5945 = vmatprep.subr.mxu1 %v1709_v17  ;;  %1916 = vmatpush1.msra.mxu0 %v5185_v47  ;;  %v1841_v47 = vld [vmem:[%s7961_s7 + $0x8] sm:$0xff] }
 0x2d3   :  { %5946 = vmatpush3.msra.mxu1 %v1709_v17  ;;  %1917 = vmatprep.subr.mxu0 %v5184_v20  ;;  %v5163_v17 = vld [vmem:[%s7961_s7 + $0x110] sm:$0xff]  ;;  %v1840_v20 = vld [vmem:[%s7961_s7] sm:$0xff] }
 0x2d4   :  { %5947 = vmatprep.subr.mxu1 %v1708_v30  ;;  %1918 = vmatpush1.msra.mxu0 %v5183_v52 }
 0x2d5   :  { %5948 = vmatpush3.msra.mxu1 %v1708_v30  ;;  %1919 = vmatprep.subr.mxu0 %v5182_v49  ;;  %v1850_v30 = vld [vmem:[%s7961_s7 + $0x50] sm:$0xff] }
 0x2d6   :  { %5950 = vmatmul.mubr.msk.f32.vlgmr.msra.gmra.mxu1 %vm134_vm12, %v1704_v26  ;;  %1998 = vmatprep.subr.mxu1 %v1871_v39  ;;  %v5162_v26 = vld [vmem:[%s7961_s7 + $0x108] sm:$0xff]  ;;  %v1843_v39 = vld [vmem:[%s7961_s7 + $0x18] sm:$0xff] }
 0x2d7   :  { %5952 = vmatprep.mubr.msk.f32.mxu1 %vm134_vm12, %v1705_v16  ;;  %1999 = vmatpush1.msra.mxu1 %v1870_v44  ;;  %v1849_v16 = vld [vmem:[%s7961_s7 + $0x48] sm:$0xff]  ;;  %v1842_v44 = vld [vmem:[%s7961_s7 + $0x10] sm:$0xff] }
 0x2d8   :  { %2000 = vmatprep.subr.mxu1 %v1869_v41  ;;  %1920 = vmatpush1.msra.mxu0 %v5181_v29 }
 0x2d9   :  { %2001 = vmatpush1.msra.mxu1 %v1868_v50  ;;  %1921 = vmatprep.subr.mxu0 %v5180_v57  ;;  %v5160_v57 = vld [vmem:[%s7960_s6] ss:$0 sm:$0xff] }
 0x2da   :  { %5953 = vmatmul.mubr.msk.f32.gmra.mxu1 %vm134_vm12, %v1706_v31  ;;  %2002 = vmatprep.subr.mxu1 %v1867_v46  ;;  %v5161_v31 = vld [vmem:[%s7961_s7 + $0x100] sm:$0xff] }
 0x2db   :  { %2062 = vmatprep.mubr.f32.mxu1 %v6903_v0  ;;  %2003 = vmatpush1.msra.mxu1 %v1866_v28 }
 0x2dc   :  { %2004 = vmatprep.subr.mxu1 %v1865_v53  ;;  %1922 = vmatpush1.msra.mxu0 %v5179_v62 }
 0x2dd   :  { %2005 = vmatpush1.msra.mxu1 %v1864_v56  ;;  %1923 = vmatprep.subr.mxu0 %v5178_v51 }
 0x2de   :  { %2006 = vmatprep.subr.mxu1 %v1863_v63  ;;  %1924 = vmatpush1.msra.mxu0 %v5177_v6 }
 0x2df   :  { %2007 = vmatpush1.msra.mxu1 %v1862_v1  ;;  %1925 = vmatprep.subr.mxu0 %v5176_v14 }
 0x2e0   :  { %2008 = vmatprep.subr.mxu1 %v1861_v2  ;;  %1926 = vmatpush1.msra.mxu0 %v5175_v45 }
 0x2e1   :  { %2009 = vmatpush1.msra.mxu1 %v1860_v12  ;;  %1927 = vmatprep.subr.mxu0 %v5174_v15 }
 0x2e2   :  { %2010 = vmatprep.subr.mxu1 %v1859_v13  ;;  %1928 = vmatpush1.msra.mxu0 %v5173_v36 }
 0x2e3   :  { %2011 = vmatpush1.msra.mxu1 %v1858_v9  ;;  %1929 = vmatprep.subr.mxu0 %v5172_v5 }
 0x2e4   :  { %2012 = vmatprep.subr.mxu1 %v1857_v54  ;;  %1930 = vmatpush1.msra.mxu0 %v5171_v18 }
 0x2e5   :  { %1931 = vmatprep.subr.mxu0 %v5170_v19  ;;  %2013 = vmatpush1.msra.mxu1 %v1856_v24  ;;  %v5223_v19 = vld [vmem:[%s7961_s7 + $0x2f0] sm:$0xff] }
 0x2e6   :  { %1932 = vmatpush1.msra.mxu0 %v5169_v21  ;;  %2014 = vmatprep.subr.mxu1 %v1855_v37  ;;  %v5222_v21 = vld [vmem:[%s7961_s7 + $0x2e8] sm:$0xff]  ;;  %v5221_v37 = vld [vmem:[%s7961_s7 + $0x2e0] sm:$0xff] }
 0x2e7   :  { %1933 = vmatprep.subr.mxu0 %v5168_v3  ;;  %2015 = vmatpush1.msra.mxu1 %v1854_v8 }
 0x2e8   :  { %1934 = vmatpush1.msra.mxu0 %v5167_v4  ;;  %2016 = vmatprep.subr.mxu1 %v1853_v27  ;;  %v5220_v4 = vld [vmem:[%s7961_s7 + $0x2d8] sm:$0xff]  ;;  %v5218_v27 = vld [vmem:[%s7961_s7 + $0x2c8] sm:$0xff] }
 0x2e9   :  { %1935 = vmatprep.subr.mxu0 %v5166_v7  ;;  %2017 = vmatpush1.msra.mxu1 %v1852_v10  ;;  %v5219_v7 = vld [vmem:[%s7961_s7 + $0x2d0] sm:$0xff]  ;;  %v5216_v10 = vld [vmem:[%s7961_s7 + $0x2b8] sm:$0xff] }
 0x2ea   :  { %1936 = vmatpush1.msra.mxu0 %v5165_v22  ;;  %2018 = vmatprep.subr.mxu1 %v1851_v11  ;;  %v5217_v22 = vld [vmem:[%s7961_s7 + $0x2c0] sm:$0xff]  ;;  %v5215_v11 = vld [vmem:[%s7961_s7 + $0x2b0] sm:$0xff] }
 0x2eb   :  { %1937 = vmatprep.subr.mxu0 %v5164_v23  ;;  %2019 = vmatpush1.msra.mxu1 %v1850_v30  ;;  %v5213_v30 = vld [vmem:[%s7961_s7 + $0x2a0] sm:$0xff] }
 0x2ec   :  { %1938 = vmatpush1.msra.mxu0 %v5163_v17  ;;  %2020 = vmatprep.subr.mxu1 %v1849_v16  ;;  %v5214_v17 = vld [vmem:[%s7961_s7 + $0x2a8] sm:$0xff] }
 0x2ed   :  { %1939 = vmatprep.subr.mxu0 %v5162_v26  ;;  %2021 = vmatpush1.msra.mxu1 %v1848_v32  ;;  %v5212_v26 = vld [vmem:[%s7961_s7 + $0x298] sm:$0xff] }
 0x2ee   :  { %1940 = vmatpush1.msra.mxu0 %v5161_v31  ;;  %2022 = vmatprep.subr.mxu1 %v1847_v59  ;;  %v5211_v31 = vld [vmem:[%s7961_s7 + $0x290] sm:$0xff]  ;;  %v5209_v59 = vld [vmem:[%s7961_s7 + $0x280] sm:$0xff] }
 0x2ef   :  { %2124 = vmatprep.subr.mxu0 %v5224_v33  ;;  %2023 = vmatpush1.msra.mxu1 %v1846_v34  ;;  %v5210_v33 = vld [vmem:[%s7961_s7 + $0x288] sm:$0xff] }
 0x2f0   :  { %2024 = vmatprep.subr.mxu1 %v1845_v42  ;;  %v5208_v42 = vld [vmem:[%s7961_s7 + $0x278] sm:$0xff] }
 0x2f1   :  { %2025 = vmatpush1.msra.mxu1 %v1844_v48  ;;  %v5207_v48 = vld [vmem:[%s7961_s7 + $0x270] sm:$0xff] }
 0x2f2   :  { %2026 = vmatprep.subr.mxu1 %v1843_v39  ;;  %v5206_v39 = vld [vmem:[%s7961_s7 + $0x268] sm:$0xff] }
 0x2f3   :  { %2027 = vmatpush1.msra.mxu1 %v1842_v44  ;;  %v5205_v44 = vld [vmem:[%s7961_s7 + $0x260] sm:$0xff] }
 0x2f4   :  { %2028 = vmatprep.subr.mxu1 %v1841_v47 }
 0x2f5   :  { %2029 = vmatpush1.msra.mxu1 %v1840_v20  ;;  %v5204_v20 = vld [vmem:[%s7961_s7 + $0x258] sm:$0xff] }
 0x385   :  { %v5907_v41 = vpop.f32.mrf.mxu1 }
 0x386   :  { %v5929_v50 = vpop.f32.mrf.mxu0 }
 0x387   :  { %v1587_v46 = vpop.f32.mrf.mxu1  ;;  %v1690_v53 = vadd.f32 %v5929_v50, %v5907_v41  ;;  %v5203_v41 = vld [vmem:[%s7961_s7 + $0x250] sm:$0xff]  ;;  %v5202_v50 = vld [vmem:[%s7961_s7 + $0x248] sm:$0xff] }
 0x388   :  { %v1684_v52 = vpop.f32.mrf.mxu0 }
 0x389   :  { %v1685_v62 = vadd.f32 %v1684_v52, %v1587_v46  ;;  %v5201_v46 = vld [vmem:[%s7961_s7 + $0x240] sm:$0xff]  ;;  %v5199_v52 = vld [vmem:[%s7961_s7 + $0x230] sm:$0xff] }
 0x38a   :  { %v5910_v28 = vpop.f32.mrf.mxu1  ;;  %v5932_v49 = vpop.f32.mrf.mxu0 }
 0x38b   :  { %v1700_v51 = vadd.f32 %v5932_v49, %v5910_v28  ;;  %v5200_v28 = vld [vmem:[%s7961_s7 + $0x238] sm:$0xff]  ;;  %v5198_v49 = vld [vmem:[%s7961_s7 + $0x228] sm:$0xff] }
 0x38c   :  { %v1597_v29 = vpop.f32.mrf.mxu1  ;;  %v1694_v1 = vpop.f32.mrf.mxu0 }
 0x38d   :  { %v1695_v14 = vadd.f32 %v1694_v1, %v1597_v29  ;;  %v5197_v29 = vld [vmem:[%s7961_s7 + $0x220] sm:$0xff] }
 0x396   :  { %v5951_v56 = vpop.f32.mrf.mxu1 }
 0x397   :  { %v1814_v63 = vadd.f32 %v5951_v56, %v1690_v53  ;;  %v5196_v53 = vld [vmem:[%s7961_s7 + $0x218] sm:$0xff]  ;;  %v5195_v56 = vld [vmem:[%s7961_s7 + $0x210] sm:$0xff] }
 0x398   :  { %v1794_v2 = vpop.f32.mrf.mxu1 }
 0x399   :  { %v1825_v12 = vadd.f32 %v5160_v57, %v1814_v63  ;;  %v1813_v6 = vadd.f32 %v1794_v2, %v1685_v62  ;;  %v5193_v62 = vld [vmem:[%s7961_s7 + $0x200] sm:$0xff] }
 0x39a   :  { %v5954_v13 = vpop.f32.mrf.mxu1 }
 0x39b   :  { %v1829_v45 = vmax.f32 %v1825_v12, 0.0  ;;  %v1824_v9 = vadd.f32 %v5160_v57, %v1813_v6  ;;  %v1816_v15 = vadd.f32 %v5954_v13, %v1700_v51 }
 0x39c   :  { %v1804_v54 = vpop.f32.mrf.mxu1 }
 0x39d   :  { %1833 = vst [vmem:[#allocation4 + $0x9] sm:$0xff] %v1829_v45  ;;  %v1828_v36 = vmax.f32 %v1824_v9, 0.0  ;;  %v1827_v5 = vadd.f32 %v5160_v57, %v1816_v15  ;;  %v1815_v18 = vadd.f32 %v1804_v54, %v1695_v14 }
 0x39f   :  { %1832 = vst [vmem:[#allocation4 + $0x1] sm:$0xff] %v1828_v36  ;;  %v1831_v24 = vmax.f32 %v1827_v5, 0.0  ;;  %v1826_v3 = vadd.f32 %v5160_v57, %v1815_v18  ;;  %1974 = vmatmul.mubr.f32.vlgmr.msra.gmra.mxu0 %v1828_v36  ;;  %v5194_v57 = vld [vmem:[%s7961_s7 + $0x208] sm:$0xff] }
 0x3a0   :  { %2125 = vmatpush1.msra.mxu0 %v5223_v19  ;;  %1979 = vmatprep.mubr.f32.mxu0 %v6903_v0 }
 0x3a1   :  { %1835 = vst [vmem:[#allocation4 + $0x19] sm:$0x3f] %v1831_v24  ;;  %v1830_v8 = vmax.f32 %v1826_v3, 0.0  ;;  %2126 = vmatprep.subr.mxu0 %v5222_v21 }
 0x3a2   :  { %2127 = vmatpush1.msra.mxu0 %v5221_v37 }
 0x3a3   :  { %1834 = vst [vmem:[#allocation4 + $0x11] sm:$0xff] %v1830_v8  ;;  %2128 = vmatprep.subr.mxu0 %v5220_v4  ;;  %1980 = vmatmul.mubr.f32.gmra.mxu0 %v1829_v45 }
 0x3a4   :  { %2129 = vmatpush1.msra.mxu0 %v5219_v7  ;;  %1985 = vmatprep.mubr.f32.mxu0 %v6903_v0 }
 0x3a5   :  { %2130 = vmatprep.subr.mxu0 %v5218_v27 }
 0x3a6   :  { %v1836_v23 = vld [vmem:[#allocation4] sm:$0xff]  ;;  %2131 = vmatpush1.msra.mxu0 %v5217_v22  ;;  %v1837_v16 = vld [vmem:[#allocation4 + $0x8] sm:$0xff] }
 0x3a7   :  { %2063 = vmatmul.mubr.f32.vlgmr.msra.gmra.mxu1 %v1836_v23  ;;  %2132 = vmatprep.subr.mxu0 %v5216_v10  ;;  %v2087_v63 = vld [vmem:[#allocation4 + $0x2] sm:$0xff]  ;;  %v2225_v10 = vsub.s32 0, %v6896_v55 }
 0x3a8   :  { %2068 = vmatprep.mubr.f32.mxu1 %v6903_v0  ;;  %1986 = vmatmul.mubr.f32.gmra.mxu0 %v1830_v8  ;;  %v1875_v32 = vld [vmem:[#allocation4 + $0x19] sm:$0x3f] }
 0x3a9   :  { %2133 = vmatpush1.msra.mxu0 %v5215_v11  ;;  %1991 = vmatprep.mubr.f32.mxu0 %v6903_v0  ;;  %v2090_v51 = vld [vmem:[#allocation4 + $0x1a] sm:$0x3f] }
 0x3aa   :  { %2134 = vmatprep.subr.mxu0 %v5214_v17  ;;  %v1838_v34 = vld [vmem:[#allocation4 + $0x10] sm:$0xff]  ;;  %v1839_v47 = vld [vmem:[#allocation4 + $0x18] sm:$0x3f] }
 0x3ab   :  { %2069 = vmatmul.mubr.f32.gmra.mxu1 %v1837_v16  ;;  %2135 = vmatpush1.msra.mxu0 %v5213_v30  ;;  %v2088_v1 = vld [vmem:[#allocation4 + $0xa] sm:$0xff]  ;;  %v2089_v2 = vld [vmem:[#allocation4 + $0x12] sm:$0xff]  ;;  %v2221_v30 = vld [vmem:[%s7962_s8] sm:$0x3] }
 0x3ac   :  { %2074 = vmatprep.mubr.f32.mxu1 %v6903_v0  ;;  %2136 = vmatprep.subr.mxu0 %v5212_v26  ;;  %v7968_v26 = vsub.s32 1, %v6896_v55 }
 0x3ad   :  { %1992 = vmatmul.mubr.f32.gmra.mxu0 %v1875_v32 }
 0x3ae   :  { %2137 = vmatpush1.msra.mxu0 %v5211_v31  ;;  %2188 = vmatprep.mubr.f32.mxu0 %v6903_v0 }
 0x3af   :  { %2075 = vmatmul.mubr.f32.gmra.mxu1 %v1838_v34  ;;  %2138 = vmatprep.subr.mxu0 %v5210_v33 }
 0x3b0   :  { %2080 = vmatprep.mubr.f32.mxu1 %v6903_v0  ;;  %2139 = vmatpush1.msra.mxu0 %v5209_v59 }
 0x3b1   :  { %2140 = vmatprep.subr.mxu0 %v5208_v42 }
 0x3b2   :  { %2141 = vmatpush1.msra.mxu0 %v5207_v48  ;;  %v2226_v48 = vrot.slane %v2221_v30, %v2225_v10 }
 0x3b3   :  { %2081 = vmatmul.mubr.f32.gmra.mxu1 %v1839_v47  ;;  %2142 = vmatprep.subr.mxu0 %v5206_v39 }
 0x3b4   :  { %2143 = vmatpush1.msra.mxu0 %v5205_v44  ;;  %2325 = vmatprep.mubr.f32.mxu1 %v6903_v0 }
 0x3b5   :  { %2144 = vmatprep.subr.mxu0 %v5204_v20  ;;  %v2230_v20 = vrot.slane %v2221_v30, %v7968_v26  ;;  %v2449_v30 = vld [vmem:[%s7963_s9 + $0x38] sm:$0xff] }
 0x3b6   :  { %2145 = vmatpush1.msra.mxu0 %v5203_v41 }
 0x3b7   :  { %2146 = vmatprep.subr.mxu0 %v5202_v50 }
 0x3b8   :  { %2147 = vmatpush1.msra.mxu0 %v5201_v46 }
 0x3b9   :  { %2148 = vmatprep.subr.mxu0 %v5200_v28 }
 0x3ba   :  { %2149 = vmatpush1.msra.mxu0 %v5199_v52 }
 0x3bb   :  { %2150 = vmatprep.subr.mxu0 %v5198_v49 }
 0x3bc   :  { %2151 = vmatpush1.msra.mxu0 %v5197_v29 }
 0x3bd   :  { %2152 = vmatprep.subr.mxu0 %v5196_v53 }
 0x3be   :  { %2153 = vmatpush1.msra.mxu0 %v5195_v56 }
 0x3bf   :  { %2154 = vmatprep.subr.mxu0 %v5194_v57 }
 0x3c0   :  { %2155 = vmatpush1.msra.mxu0 %v5193_v62 }
 0x3c1   :  { %2189 = vmatmul.mubr.f32.vlgmr.msra.gmra.mxu0 %v2087_v63  ;;  %5955 = vmatprep.subr.mxu0 %v6903_v0 }
 0x3c2   :  { %2194 = vmatprep.mubr.f32.mxu0 %v6903_v0 }
 0x3c5   :  { %2195 = vmatmul.mubr.f32.gmra.mxu0 %v2088_v1 }
 0x3c6   :  { %2200 = vmatprep.mubr.f32.mxu0 %v6903_v0 }
 0x3c9   :  { %2201 = vmatmul.mubr.f32.gmra.mxu0 %v2089_v2 }
 0x3ca   :  { %2206 = vmatprep.mubr.f32.mxu0 %v6903_v0 }
 0x3cd   :  { %2207 = vmatmul.mubr.f32.gmra.mxu0 %v2090_v51 }
 0x3ce   :  { %5971 = vmatprep.mubr.msk.f32.mxu0 %vm6316_vm3, %v6903_v0 }
 0x45f   :  { %v1975_v12 = vpop.f32.mrf.mxu0 }
 0x461   :  { %v1977_v6 = vpop.f32.mrf.mxu0 }
 0x463   :  { %v1981_v13 = vpop.f32.mrf.mxu0 }
 0x465   :  { %v1983_v45 = vpop.f32.mrf.mxu0 }
 0x467   :  { %v2064_v14 = vpop.f32.mrf.mxu1 }
 0x468   :  { %v1987_v15 = vpop.f32.mrf.mxu0  ;;  %v2065_v46 = vadd.f32 %v2064_v14, %v1975_v12 }
 0x469   :  { %v2066_v9 = vpop.f32.mrf.mxu1 }
 0x46a   :  { %v1989_v36 = vpop.f32.mrf.mxu0  ;;  %v2067_v47 = vadd.f32 %v2066_v9, %v1977_v6 }
 0x46b   :  { %v2070_v54 = vpop.f32.mrf.mxu1 }
 0x46c   :  { %v2071_v42 = vadd.f32 %v2070_v54, %v1981_v13  ;;  %v2473_v54 = vld [vmem:[%s7963_s9 + $0xf8] sm:$0xff] }
 0x46d   :  { %v2072_v5 = vpop.f32.mrf.mxu1  ;;  %v1993_v18 = vpop.f32.mrf.mxu0 }
 0x46e   :  { %v2073_v32 = vadd.f32 %v2072_v5, %v1983_v45  ;;  %v2472_v5 = vld [vmem:[%s7963_s9 + $0xf0] sm:$0xff] }
 0x46f   :  { %v2076_v19 = vpop.f32.mrf.mxu1  ;;  %v1995_v21 = vpop.f32.mrf.mxu0 }
 0x470   :  { %v2077_v16 = vadd.f32 %v2076_v19, %v1987_v15  ;;  %v2471_v19 = vld [vmem:[%s7963_s9 + $0xe8] sm:$0xff] }
 0x471   :  { %v2078_v3 = vpop.f32.mrf.mxu1 }
 0x472   :  { %v2079_v11 = vadd.f32 %v2078_v3, %v1989_v36  ;;  %v2457_v36 = vld [vmem:[%s7963_s9 + $0x78] sm:$0xff]  ;;  %v2454_v3 = vld [vmem:[%s7963_s9 + $0x60] sm:$0xff] }
 0x473   :  { %v2082_v8 = vpop.f32.mrf.mxu1 }
 0x474   :  { %v2083_v17 = vadd.f32 %v2082_v8, %v1993_v18  ;;  %v2456_v18 = vld [vmem:[%s7963_s9 + $0x70] sm:$0xff] }
 0x475   :  { %v2084_v22 = vpop.f32.mrf.mxu1  ;;  %v2468_v8 = vld [vmem:[%s7963_s9 + $0xd0] sm:$0xff] }
 0x476   :  { %v2085_v33 = vadd.f32 %v2084_v22, %v1995_v21  ;;  %v2455_v21 = vld [vmem:[%s7963_s9 + $0x68] sm:$0xff] }
 0x477   :  { %v2451_v22 = vld [vmem:[%s7963_s9 + $0x48] sm:$0xff] }
 0x481   :  { %v2190_v24 = vpop.f32.mrf.mxu0 }
 0x482   :  { %v2213_v56 = vadd.f32 %v2190_v24, %v2065_v46  ;;  %v2470_v24 = vld [vmem:[%s7963_s9 + $0xe0] sm:$0xff]  ;;  %v3016_v46 = vld [vmem:[#allocation5 + $0x18] sm:$0xff] }
 0x483   :  { %v2192_v37 = vpop.f32.mrf.mxu0 }
 0x484   :  { %v2214_v49 = vadd.f32 %v2192_v37, %v2067_v47  ;;  %v2233_v13 = vadd.f32 %v2226_v48, %v2213_v56  ;;  %v2469_v37 = vld [vmem:[%s7963_s9 + $0xd8] sm:$0xff]  ;;  %v2459_v47 = vld [vmem:[%s7963_s9 + $0x88] sm:$0xff] }
 0x485   :  { %v2196_v4 = vpop.f32.mrf.mxu0 }
 0x486   :  { %v2215_v28 = vadd.f32 %v2196_v4, %v2071_v42  ;;  %v2234_v51 = vadd.f32 %v2230_v20, %v2214_v49  ;;  %v2241_v15 = vmax.f32 %v2233_v13, 0.0  ;;  %v2453_v4 = vld [vmem:[%s7963_s9 + $0x58] sm:$0xff]  ;;  %v2550_v49 = vld [vmem:[#allocation10 + $0x28] sm:$0xff] }
 0x487   :  { %v2198_v7 = vpop.f32.mrf.mxu0  ;;  %v2461_v42 = vld [vmem:[%s7963_s9 + $0x98] sm:$0xff] }
 0x488   :  { %v2216_v41 = vadd.f32 %v2198_v7, %v2073_v32  ;;  %v2235_v1 = vadd.f32 %v2226_v48, %v2215_v28  ;;  %v2242_v9 = vmax.f32 %v2234_v51, 0.0  ;;  %v2452_v7 = vld [vmem:[%s7963_s9 + $0x50] sm:$0xff]  ;;  %v2463_v32 = vld [vmem:[%s7963_s9 + $0xa8] sm:$0xff]  ;;  %v2552_v28 = vld [vmem:[#allocation10 + $0x38] sm:$0xff] }
 0x489   :  { %v2202_v27 = vpop.f32.mrf.mxu0  ;;  %5956 = vmatpush3.msra.mxu0 %v2552_v28  ;;  %v3438_v28 = vld [vmem:[#allocation2 + $0x13] sm:$0xff] }
 0x48a   :  { %v2217_v39 = vadd.f32 %v2202_v27, %v2077_v16  ;;  %v2236_v62 = vadd.f32 %v2230_v20, %v2216_v41  ;;  %v2243_v14 = vmax.f32 %v2235_v1, 0.0  ;;  %v2467_v27 = vld [vmem:[%s7963_s9 + $0xc8] sm:$0xff]  ;;  %v2464_v16 = vld [vmem:[%s7963_s9 + $0xb0] sm:$0xff]  ;;  %v2458_v41 = vld [vmem:[%s7963_s9 + $0x80] sm:$0xff]  ;;  %5957 = vmatprep.subr.mxu0 %v6903_v0 }
 0x48b   :  { %v2204_v23 = vpop.f32.mrf.mxu0 }
 0x48c   :  { %v2218_v59 = vadd.f32 %v2204_v23, %v2079_v11  ;;  %v2237_v57 = vadd.f32 %v2226_v48, %v2217_v39  ;;  %v2244_v12 = vmax.f32 %v2236_v62, 0.0  ;;  %v2466_v23 = vld [vmem:[%s7963_s9 + $0xc0] sm:$0xff]  ;;  %v2460_v39 = vld [vmem:[%s7963_s9 + $0x90] sm:$0xff] }
 0x48d   :  { %v2208_v31 = vpop.f32.mrf.mxu0  ;;  %v2450_v11 = vld [vmem:[%s7963_s9 + $0x40] sm:$0xff] }
 0x48e   :  { %v2219_v34 = vadd.f32 %v2208_v31, %v2083_v17  ;;  %v2238_v29 = vadd.f32 %v2230_v20, %v2218_v59  ;;  %v2245_v45 = vmax.f32 %v2237_v57, 0.0  ;;  %v2465_v17 = vld [vmem:[%s7963_s9 + $0xb8] sm:$0xff]  ;;  %v2448_v31 = vld [vmem:[%s7963_s9 + $0x30] sm:$0xff]  ;;  %v2462_v59 = vld [vmem:[%s7963_s9 + $0xa0] sm:$0xff] }
 0x48f   :  { %v2210_v44 = vpop.f32.mrf.mxu0 }
 0x490   :  { %v2220_v50 = vadd.f32 %v2210_v44, %v2085_v33  ;;  %v2239_v52 = vadd.f32 %v2226_v48, %v2219_v34  ;;  %v2246_v6 = vmax.f32 %v2238_v29, 0.0  ;;  %v2447_v33 = vld [vmem:[%s7963_s9 + $0x28] sm:$0xff]  ;;  %v2446_v34 = vld [vmem:[%s7963_s9 + $0x20] sm:$0xff]  ;;  %v2445_v48 = vld [vmem:[%s7963_s9 + $0x18] sm:$0xff] }
 0x491   :  { %v2444_v44 = vld [vmem:[%s7963_s9 + $0x10] sm:$0xff]  ;;  %v2549_v29 = vld [vmem:[#allocation10 + $0x20] sm:$0xff] }
 0x492   :  { %v2240_v53 = vadd.f32 %v2230_v20, %v2220_v50  ;;  %v2247_v2 = vmax.f32 %v2239_v52, 0.0  ;;  %v2443_v20 = vld [vmem:[%s7963_s9 + $0x8] sm:$0xff]  ;;  %v2442_v50 = vld [vmem:[%s7963_s9] sm:$0xff]  ;;  %v2551_v52 = vld [vmem:[#allocation10 + $0x30] sm:$0xff] }
 0x493   :  { %5958 = vmatpush3.msra.mxu0 %v2551_v52  ;;  %v3439_v52 = vld [vmem:[#allocation2 + $0x1b] sm:$0xff] }
 0x494   :  { %v2248_v63 = vmax.f32 %v2240_v53, 0.0  ;;  %5959 = vmatprep.subr.mxu0 %v6903_v0  ;;  %v2548_v53 = vld [vmem:[#allocation10 + $0x18] sm:$0xff] }
 0x495   :  { %5960 = vmatpush3.msra.mxu0 %v2550_v49  ;;  %v3440_v49 = vld [vmem:[#allocation2 + $0x23] sm:$0xff] }
 0x496   :  { %5225 = vmatprep.subr.msk.mxu1 %vm2254_vm14, %v2248_v63  ;;  %5961 = vmatprep.subr.mxu0 %v6903_v0 }
 0x497   :  { %5226 = vmatpush1.msk.msra.mxu1 %vm2254_vm14, %v2247_v2  ;;  %5962 = vmatpush3.msra.mxu0 %v2549_v29  ;;  %v3441_v29 = vld [vmem:[#allocation2 + $0x2b] sm:$0xff] }
 0x498   :  { %2287 = vmatprep.subr.mxu1 %v2246_v6  ;;  %5963 = vmatprep.subr.mxu0 %v6903_v0 }
 0x499   :  { %2288 = vmatpush1.msra.mxu1 %v2245_v45  ;;  %5964 = vmatpush3.msra.mxu0 %v2548_v53  ;;  %v3442_v53 = vld [vmem:[#allocation2 + $0x33] sm:$0xff] }
 0x49a   :  { %2289 = vmatprep.subr.mxu1 %v2244_v12  ;;  %5965 = vmatprep.subr.mxu0 %v6903_v0 }
 0x49b   :  { %2290 = vmatpush1.msra.mxu1 %v2243_v14 }
 0x49c   :  { %2291 = vmatprep.subr.mxu1 %v2242_v9 }
 0x49d   :  { %2292 = vmatpush1.msra.mxu1 %v2241_v15 }
 0x49e   :  { %5227 = vmatmul.mubr.msk.f32.vlgmr.msra.gmra.mxu1 %vm2249_vm15, %v6906_v60  ;;  %5229 = vmatprep.subr.msk.mxu1 %vm2254_vm14, %v2248_v63 }
 0x49f   :  { %5230 = vmatpush1.msk.msra.mxu1 %vm2254_vm14, %v2247_v2  ;;  %2331 = vmatprep.mubr.f32.mxu1 %v6903_v0 }
 0x4a0   :  { %2368 = vmatprep.subr.mxu1 %v2246_v6 }
 0x4a1   :  { %2369 = vmatpush1.msra.mxu1 %v2245_v45 }
 0x4a2   :  { %5228 = vmatmul.mubr.msk.f32.gmra.mxu1 %vm2249_vm15, %v6933_v35  ;;  %2370 = vmatprep.subr.mxu1 %v2244_v12 }
 0x4a3   :  { %2371 = vmatpush1.msra.mxu1 %v2243_v14  ;;  %2406 = vmatprep.mubr.f32.mxu1 %v6903_v0 }
 0x4a4   :  { %2372 = vmatprep.subr.mxu1 %v2242_v9 }
 0x4a5   :  { %2373 = vmatpush1.msra.mxu1 %v2241_v15 }
 0x4a6   :  { %5231 = vmatmul.mubr.msk.f32.vlgmr.msra.gmra.mxu1 %vm2249_vm15, %v6909_v61  ;;  %5537 = vmatprep.subr.mxu1 %v2473_v54 }
 0x4a7   :  { %2412 = vmatprep.mubr.f32.mxu1 %v6903_v0  ;;  %5538 = vmatpush3.msra.mxu1 %v2457_v36 }
 0x4a8   :  { %5539 = vmatprep.subr.mxu1 %v2472_v5 }
 0x4a9   :  { %5540 = vmatpush3.msra.mxu1 %v2456_v18 }
 0x4aa   :  { %5232 = vmatmul.mubr.msk.f32.gmra.mxu1 %vm2249_vm15, %v6936_v38  ;;  %5541 = vmatprep.subr.mxu1 %v2471_v19 }
 0x4ab   :  { %5542 = vmatpush3.msra.mxu1 %v2455_v21 }
 0x4ac   :  { %5543 = vmatprep.subr.mxu1 %v2470_v24 }
 0x4ad   :  { %5544 = vmatpush3.msra.mxu1 %v2454_v3 }
 0x4ae   :  { %5545 = vmatprep.subr.mxu1 %v2469_v37 }
 0x4af   :  { %5546 = vmatpush3.msra.mxu1 %v2453_v4 }
 0x4b0   :  { %5547 = vmatprep.subr.mxu1 %v2468_v8 }
 0x4b1   :  { %5548 = vmatpush3.msra.mxu1 %v2452_v7 }
 0x4b2   :  { %5549 = vmatprep.subr.mxu1 %v2467_v27 }
 0x4b3   :  { %5550 = vmatpush3.msra.mxu1 %v2451_v22 }
 0x4b4   :  { %5551 = vmatprep.subr.mxu1 %v2466_v23 }
 0x4b5   :  { %5552 = vmatpush3.msra.mxu1 %v2450_v11 }
 0x4b6   :  { %5553 = vmatprep.subr.mxu1 %v2465_v17  ;;  %v3015_v17 = vld [vmem:[#allocation5 + $0x10] sm:$0xff] }
 0x4b7   :  { %5554 = vmatpush3.msra.mxu1 %v2449_v30  ;;  %v3005_v30 = vld [vmem:[#allocation2] sm:$0xff] }
 0x4b8   :  { %5555 = vmatprep.subr.mxu1 %v2464_v16  ;;  %v3014_v16 = vld [vmem:[#allocation5 + $0x8] sm:$0xff] }
 0x4b9   :  { %5556 = vmatpush3.msra.mxu1 %v2448_v31  ;;  %v3013_v31 = vld [vmem:[#allocation5] sm:$0xff] }
 0x4ba   :  { %5557 = vmatprep.subr.mxu1 %v2463_v32  ;;  %v3447_v32 = vld [vmem:[#allocation5 + $0x78] sm:$0xff] }
 0x4bb   :  { %5558 = vmatpush3.msra.mxu1 %v2447_v33  ;;  %v3006_v33 = vld [vmem:[#allocation2 + $0x8] sm:$0xff] }
 0x4bc   :  { %5559 = vmatprep.subr.mxu1 %v2462_v59  ;;  %v3446_v59 = vld [vmem:[#allocation5 + $0x70] sm:$0xff] }
 0x4bd   :  { %5560 = vmatpush3.msra.mxu1 %v2446_v34  ;;  %v3007_v34 = vld [vmem:[#allocation2 + $0x10] sm:$0xff] }
 0x4be   :  { %5561 = vmatprep.subr.mxu1 %v2461_v42  ;;  %v3445_v42 = vld [vmem:[#allocation5 + $0x68] sm:$0xff] }
 0x4bf   :  { %5562 = vmatpush3.msra.mxu1 %v2445_v48  ;;  %v3008_v48 = vld [vmem:[#allocation2 + $0x18] sm:$0xff] }
 0x4c0   :  { %5563 = vmatprep.subr.mxu1 %v2460_v39  ;;  %v3444_v39 = vld [vmem:[#allocation5 + $0x60] sm:$0xff] }
 0x4c1   :  { %5564 = vmatpush3.msra.mxu1 %v2444_v44  ;;  %v3009_v44 = vld [vmem:[#allocation2 + $0x20] sm:$0xff] }
 0x4c2   :  { %5565 = vmatprep.subr.mxu1 %v2459_v47  ;;  %v3010_v47 = vld [vmem:[#allocation2 + $0x28] sm:$0xff] }
 0x4c3   :  { %5566 = vmatpush3.msra.mxu1 %v2443_v20  ;;  %v3011_v20 = vld [vmem:[#allocation2 + $0x30] sm:$0xff] }
 0x4c4   :  { %5567 = vmatprep.subr.mxu1 %v2458_v41  ;;  %v3012_v41 = vld [vmem:[#allocation2 + $0x38] sm:$0xf] }
 0x4c5   :  { %5568 = vmatpush3.msra.mxu1 %v2442_v50  ;;  %v3436_v50 = vld [vmem:[#allocation2 + $0x3] sm:$0xff] }
 0x4c6   :  { %5994 = vmatprep.subr.mxu1 %v3016_v46 }
 0x55e   :  { %v2327_v56 = vpop.f32.mrf.mxu1 }
 0x560   :  { %v2329_v57 = vpop.f32.mrf.mxu1 }
 0x562   :  { %v2333_v62 = vpop.f32.mrf.mxu1 }
 0x564   :  { %v2335_v63 = vpop.f32.mrf.mxu1 }
 0x566   :  { %v2408_v1 = vpop.f32.mrf.mxu1 }
 0x567   :  { %v2419_v13 = vmax.f32 %v2327_v56, %v2408_v1  ;;  %v3443_v56 = vld [vmem:[#allocation2 + $0x3b] sm:$0xf] }
 0x568   :  { %v2410_v2 = vpop.f32.mrf.mxu1  ;;  %v3028_v1 = vld [vmem:[#allocation5 + $0x38] sm:$0xff] }
 0x569   :  { %v2420_v9 = vmax.f32 %v2329_v57, %v2410_v2  ;;  %v2547_v57 = vld [vmem:[#allocation10 + $0x10] sm:$0xff] }
 0x56a   :  { %v2414_v51 = vpop.f32.mrf.mxu1  ;;  %5966 = vmatpush3.msra.mxu0 %v2547_v57 }
 0x56b   :  { %v2421_v6 = vmax.f32 %v2333_v62, %v2414_v51  ;;  %5967 = vmatprep.subr.mxu0 %v6903_v0  ;;  %v2546_v62 = vld [vmem:[#allocation10 + $0x8] sm:$0xff]  ;;  %v2474_v51 = vld [vmem:[%s7964_s10] sm:$0x1] }
 0x56c   :  { %v2416_v45 = vpop.f32.mrf.mxu1  ;;  %5968 = vmatpush3.msra.mxu0 %v2546_v62 }
 0x56d   :  { %v2424_v12 = vsel %vm2423_vm1, %v2421_v6, 0.0  ;;  %v2422_v14 = vmax.f32 %v2335_v63, %v2416_v45  ;;  %5969 = vmatprep.subr.mxu0 %v6903_v0  ;;  %v2545_v63 = vld [vmem:[#allocation10] sm:$0xff] }
 0x56e   :  { %v2425_v15 = vadd.f32 %v2424_v12, %v2419_v13  ;;  %5970 = vmatpush3.msra.mxu0 %v2545_v63  ;;  %v3027_v12 = vld [vmem:[#allocation5 + $0x30] sm:$0xff] }
 0x56f   :  { %v2432_v54 = vsel %vm2423_vm1, %v2422_v14, 0.0  ;;  %5974 = vmatprep.subr.mxu0 %v3028_v1  ;;  %v3017_v14 = vld [vmem:[#allocation2 + $0x1] sm:$0xff] }
 0x570   :  { %v2426_v36 = vrot.slane %v2425_v15, 4  ;;  %v2433_v5 = vadd.f32 %v2432_v54, %v2420_v9  ;;  %v3026_v9 = vld [vmem:[#allocation5 + $0x28] sm:$0xff]  ;;  %v3298_v54 = vld [vmem:[#allocation5 + $0x58] sm:$0xff] }
 0x572   :  { %v2427_v18 = vadd.f32 %v2426_v36, %v2425_v15  ;;  %v2434_v19 = vrot.slane %v2433_v5, 4  ;;  %v3025_v15 = vld [vmem:[#allocation5 + $0x20] sm:$0xff]  ;;  %v3018_v36 = vld [vmem:[#allocation2 + $0x9] sm:$0xff] }
 0x574   :  { %v2428_v21 = vrot.slane %v2427_v18, 2  ;;  %v2435_v24 = vadd.f32 %v2434_v19, %v2433_v5  ;;  %v3297_v5 = vld [vmem:[#allocation5 + $0x50] sm:$0xff]  ;;  %v3296_v19 = vld [vmem:[#allocation5 + $0x48] sm:$0xff] }
 0x576   :  { %v2429_v3 = vadd.f32 %v2428_v21, %v2427_v18  ;;  %v2436_v37 = vrot.slane %v2435_v24, 2  ;;  %v3019_v18 = vld [vmem:[#allocation2 + $0x11] sm:$0xff]  ;;  %v3020_v21 = vld [vmem:[#allocation2 + $0x19] sm:$0xff] }
 0x578   :  { %v2430_v4 = vrot.slane %v2429_v3, 1  ;;  %v2437_v8 = vadd.f32 %v2436_v37, %v2435_v24  ;;  %v3295_v24 = vld [vmem:[#allocation5 + $0x40] sm:$0xff]  ;;  %v3596_v37 = vld [vmem:[#allocation5 + $0x98] sm:$0xff] }
 0x57a   :  { %v2438_v7 = vrot.slane %v2437_v8, 1  ;;  %v2431_v27 = vadd.f32 %v2430_v4, %v2429_v3  ;;  %v3021_v3 = vld [vmem:[#allocation2 + $0x21] sm:$0xff]  ;;  %v3022_v4 = vld [vmem:[#allocation2 + $0x29] sm:$0xff] }
 0x57c   :  { %v2439_v22 = vadd.f32 %v2438_v7, %v2437_v8  ;;  %v2440_v11 = vmul.f32 0.06666667, %v2431_v27  ;;  %v3023_v8 = vld [vmem:[#allocation2 + $0x31] sm:$0xff]  ;;  %v3024_v7 = vld [vmem:[#allocation2 + $0x39] sm:$0xf]  ;;  %v3287_v27 = vld [vmem:[#allocation2 + $0x2] sm:$0xff] }
 0x57e   :  { %v2441_v23 = vmul.f32 0.06666667, %v2439_v22  ;;  %v3288_v22 = vld [vmem:[#allocation2 + $0xa] sm:$0xff] }
 0x580   :  { %2539 = vmatprep.mubr.f32.mxu1 %v2441_v23  ;;  %v3595_v23 = vld [vmem:[#allocation5 + $0x90] sm:$0xff] }
 0x581   :  { %2540 = vmatmul.mubr.f32.vlgmr.msra.gmra.mxu1 %v2440_v11  ;;  %v3289_v11 = vld [vmem:[#allocation2 + $0x12] sm:$0xff] }
 0x582   :  { %5995 = vmatpush3.msra.mxu1 %v3016_v46  ;;  %6002 = vmatprep.mubr.msk.f32.mxu1 %vm125_vm0, %v3005_v30  ;;  %v3437_v46 = vld [vmem:[#allocation2 + $0xb] sm:$0xff]  ;;  %v3290_v30 = vld [vmem:[#allocation2 + $0x1a] sm:$0xff] }
 0x583   :  { %5996 = vmatprep.subr.mxu1 %v3015_v17 }
 0x584   :  { %5997 = vmatpush3.msra.mxu1 %v3015_v17  ;;  %v3594_v17 = vld [vmem:[#allocation5 + $0x88] sm:$0xff] }
 0x585   :  { %5998 = vmatprep.subr.mxu1 %v3014_v16 }
 0x586   :  { %5999 = vmatpush3.msra.mxu1 %v3014_v16  ;;  %v3593_v16 = vld [vmem:[#allocation5 + $0x80] sm:$0xff] }
 0x587   :  { %6000 = vmatprep.subr.mxu1 %v3013_v31 }
 0x588   :  { %6001 = vmatpush3.msra.mxu1 %v3013_v31  ;;  %v3291_v31 = vld [vmem:[#allocation2 + $0x22] sm:$0xff] }
 0x589   :  { %6003 = vmatmul.mubr.msk.f32.vlgmr.msra.gmra.mxu1 %vm125_vm0, %v3006_v33  ;;  %6034 = vmatprep.subr.mxu1 %v3447_v32  ;;  %v3293_v33 = vld [vmem:[#allocation2 + $0x32] sm:$0xff] }
 0x58a   :  { %6005 = vmatprep.mubr.msk.f32.mxu1 %vm125_vm0, %v3007_v34  ;;  %6035 = vmatpush3.msra.mxu1 %v3447_v32  ;;  %v3292_v32 = vld [vmem:[#allocation2 + $0x2a] sm:$0xff] }
 0x58b   :  { %6036 = vmatprep.subr.mxu1 %v3446_v59  ;;  %v3585_v34 = vld [vmem:[#allocation2 + $0x4] sm:$0xff] }
 0x58c   :  { %6037 = vmatpush3.msra.mxu1 %v3446_v59  ;;  %v3294_v59 = vld [vmem:[#allocation2 + $0x3a] sm:$0xf] }
 0x58d   :  { %6006 = vmatmul.mubr.msk.f32.gmra.mxu1 %vm125_vm0, %v3008_v48  ;;  %6038 = vmatprep.subr.mxu1 %v3445_v42  ;;  %v3587_v48 = vld [vmem:[#allocation2 + $0x14] sm:$0xff] }
 0x58e   :  { %6008 = vmatprep.mubr.msk.f32.mxu1 %vm125_vm0, %v3009_v44  ;;  %6039 = vmatpush3.msra.mxu1 %v3445_v42  ;;  %v3586_v42 = vld [vmem:[#allocation2 + $0xc] sm:$0xff]  ;;  %v3589_v44 = vld [vmem:[#allocation2 + $0x24] sm:$0xff] }
 0x58f   :  { %6040 = vmatprep.subr.mxu1 %v3444_v39 }
 0x590   :  { %6041 = vmatpush3.msra.mxu1 %v3444_v39  ;;  %v3588_v39 = vld [vmem:[#allocation2 + $0x1c] sm:$0xff] }
 0x591   :  { %6009 = vmatmul.mubr.msk.f32.gmra.mxu1 %vm125_vm0, %v3010_v47  ;;  %v3590_v47 = vld [vmem:[#allocation2 + $0x2c] sm:$0xff] }
 0x592   :  { %6011 = vmatprep.mubr.msk.f32.mxu1 %vm125_vm0, %v3011_v20  ;;  %v3591_v20 = vld [vmem:[#allocation2 + $0x34] sm:$0xff] }
 0x595   :  { %6012 = vmatmul.mubr.msk.f32.gmra.mxu1 %vm125_vm0, %v3012_v41  ;;  %v3592_v41 = vld [vmem:[#allocation2 + $0x3c] sm:$0xf] }
 0x596   :  { %6042 = vmatprep.mubr.msk.f32.mxu1 %vm125_vm0, %v3436_v50 }
 0x599   :  { %6043 = vmatmul.mubr.msk.f32.vlgmr.msra.gmra.mxu1 %vm125_vm0, %v3437_v46 }
 0x59a   :  { %6045 = vmatprep.mubr.msk.f32.mxu1 %vm125_vm0, %v3438_v28  ;;  %v2553_v28 = vld [vmem:[%s7966_s12] sm:$0x1] }
 0x59d   :  { %6046 = vmatmul.mubr.msk.f32.gmra.mxu1 %vm125_vm0, %v3439_v52 }
 0x59e   :  { %6048 = vmatprep.mubr.msk.f32.mxu1 %vm125_vm0, %v3440_v49 }
 0x5a1   :  { %6049 = vmatmul.mubr.msk.f32.gmra.mxu1 %vm125_vm0, %v3441_v29 }
 0x5a2   :  { %6051 = vmatprep.mubr.msk.f32.mxu1 %vm125_vm0, %v3442_v53 }
 0x5a5   :  { %6052 = vmatmul.mubr.msk.f32.gmra.mxu1 %vm125_vm0, %v3443_v56 }
 0x5a6   :  { %6090 = vmatprep.mubr.msk.f32.mxu1 %vm1276_vm2, %v6906_v60 }
 0x641   :  { %v5569_v2 = vpop.f32.mrf.mxu1 }
 0x643   :  { %v5570_v6 = vpop.f32.mrf.mxu1 }
 0x644   :  { %v5571_v13 = vadd.f32 %v5570_v6, %v5569_v2 }
 0x646   :  { %v2542_v45 = vadd.f32 %v5571_v13, %v2474_v51 }
 0x648   :  { %5972 = vmatmul.mubr.msk.f32.vlgmr.msra.gmra.mxu0 %vm134_vm12, %v2542_v45 }
 0x649   :  { %5975 = vmatpush3.msra.mxu0 %v3028_v1  ;;  %5982 = vmatprep.mubr.msk.f32.mxu0 %vm125_vm0, %v3017_v14  ;;  %v6004_v50 = vpop.f32.mrf.mxu1 }
 0x64a   :  { %5976 = vmatprep.subr.mxu0 %v3027_v12 }
 0x64b   :  { %5977 = vmatpush3.msra.mxu0 %v3027_v12  ;;  %v3248_v46 = vpop.f32.mrf.mxu1 }
 0x64c   :  { %5978 = vmatprep.subr.mxu0 %v3026_v9 }
 0x64d   :  { %5979 = vmatpush3.msra.mxu0 %v3026_v9  ;;  %v6007_v52 = vpop.f32.mrf.mxu1 }
 0x64e   :  { %5980 = vmatprep.subr.mxu0 %v3025_v15 }
 0x64f   :  { %5981 = vmatpush3.msra.mxu0 %v3025_v15  ;;  %v3258_v56 = vpop.f32.mrf.mxu1 }
 0x650   :  { %5983 = vmatmul.mubr.msk.f32.vlgmr.msra.gmra.mxu0 %vm125_vm0, %v3018_v36  ;;  %6014 = vmatprep.subr.mxu0 %v3298_v54 }
 0x651   :  { %5985 = vmatprep.mubr.msk.f32.mxu0 %vm125_vm0, %v3019_v18  ;;  %6015 = vmatpush3.msra.mxu0 %v3298_v54  ;;  %v6010_v57 = vpop.f32.mrf.mxu1 }
 0x652   :  { %6016 = vmatprep.subr.mxu0 %v3297_v5 }
 0x653   :  { %6017 = vmatpush3.msra.mxu0 %v3297_v5  ;;  %v3268_v1 = vpop.f32.mrf.mxu1 }
 0x654   :  { %5986 = vmatmul.mubr.msk.f32.gmra.mxu0 %vm125_vm0, %v3020_v21  ;;  %6018 = vmatprep.subr.mxu0 %v3296_v19 }
 0x655   :  { %5988 = vmatprep.mubr.msk.f32.mxu0 %vm125_vm0, %v3021_v3  ;;  %6019 = vmatpush3.msra.mxu0 %v3296_v19  ;;  %v6013_v6 = vpop.f32.mrf.mxu1 }
 0x656   :  { %6020 = vmatprep.subr.mxu0 %v3295_v24 }
 0x657   :  { %6021 = vmatpush3.msra.mxu0 %v3295_v24  ;;  %v3278_v12 = vpop.f32.mrf.mxu1 }
 0x658   :  { %5989 = vmatmul.mubr.msk.f32.gmra.mxu0 %vm125_vm0, %v3022_v4  ;;  %6054 = vmatprep.subr.mxu0 %v3596_v37 }
 0x659   :  { %5991 = vmatprep.mubr.msk.f32.mxu0 %vm125_vm0, %v3023_v8  ;;  %v6044_v15 = vpop.f32.mrf.mxu1 }
 0x65b   :  { %v3538_v5 = vpop.f32.mrf.mxu1 }
 0x65c   :  { %5992 = vmatmul.mubr.msk.f32.gmra.mxu0 %vm125_vm0, %v3024_v7 }
 0x65d   :  { %6022 = vmatprep.mubr.msk.f32.mxu0 %vm125_vm0, %v3287_v27  ;;  %v6047_v21 = vpop.f32.mrf.mxu1 }
 0x660   :  { %6023 = vmatmul.mubr.msk.f32.vlgmr.msra.gmra.mxu0 %vm125_vm0, %v3288_v22 }
 0x661   :  { %6025 = vmatprep.mubr.msk.f32.mxu0 %vm125_vm0, %v3289_v11  ;;  %6055 = vmatpush3.msra.mxu0 %v3596_v37  ;;  %v3548_v37 = vpop.f32.mrf.mxu1 }
 0x662   :  { %6056 = vmatprep.subr.mxu0 %v3595_v23 }
 0x663   :  { %6057 = vmatpush3.msra.mxu0 %v3595_v23  ;;  %v6050_v7 = vpop.f32.mrf.mxu1 }
 0x664   :  { %6026 = vmatmul.mubr.msk.f32.gmra.mxu0 %vm125_vm0, %v3290_v30  ;;  %6058 = vmatprep.subr.mxu0 %v3594_v17 }
 0x665   :  { %6028 = vmatprep.mubr.msk.f32.mxu0 %vm125_vm0, %v3291_v31  ;;  %6059 = vmatpush3.msra.mxu0 %v3594_v17  ;;  %v3558_v23 = vpop.f32.mrf.mxu1 }
 0x666   :  { %6060 = vmatprep.subr.mxu0 %v3593_v16 }
 0x667   :  { %6061 = vmatpush3.msra.mxu0 %v3593_v16 }
 0x668   :  { %6029 = vmatmul.mubr.msk.f32.gmra.mxu0 %vm125_vm0, %v3292_v32 }
 0x669   :  { %6031 = vmatprep.mubr.msk.f32.mxu0 %vm125_vm0, %v3293_v33 }
 0x66c   :  { %6032 = vmatmul.mubr.msk.f32.gmra.mxu0 %vm125_vm0, %v3294_v59 }
 0x66d   :  { %6062 = vmatprep.mubr.msk.f32.mxu0 %vm125_vm0, %v3585_v34  ;;  %v6053_v34 = vpop.f32.mrf.mxu1 }
 0x670   :  { %6063 = vmatmul.mubr.msk.f32.vlgmr.msra.gmra.mxu0 %vm125_vm0, %v3586_v42 }
 0x671   :  { %6065 = vmatprep.mubr.msk.f32.mxu0 %vm125_vm0, %v3587_v48 }
 0x674   :  { %6066 = vmatmul.mubr.msk.f32.gmra.mxu0 %vm125_vm0, %v3588_v39 }
 0x675   :  { %6068 = vmatprep.mubr.msk.f32.mxu0 %vm125_vm0, %v3589_v44 }
 0x678   :  { %6069 = vmatmul.mubr.msk.f32.gmra.mxu0 %vm125_vm0, %v3590_v47 }
 0x679   :  { %6071 = vmatprep.mubr.msk.f32.mxu0 %vm125_vm0, %v3591_v20 }
 0x67c   :  { %6072 = vmatmul.mubr.msk.f32.gmra.mxu0 %vm125_vm0, %v3592_v41 }
 0x67d   :  { %6112 = vmatprep.mubr.msk.f32.mxu0 %vm1276_vm2, %v6909_v61 }
 0x708   :  { %v2623_v49 = vpop.f32.mrf.mxu0 }
 0x709   :  { %v2624_v29 = vadd.f32 %v2623_v49, %v2553_v28 }
 0x70a   :  { %v5973_v53 = vpop.f32.mrf.mxu0 }
 0x70b   :  { %2627 = vst [vmem:[#allocation11] sm:$0x1] %v2624_v29  ;;  %v3568_v29 = vpop.f32.mrf.mxu1 }
 0x710   :  { %v5984_v62 = vpop.f32.mrf.mxu0 }
 0x711   :  { %v3254_v53 = vadd.f32 %v6004_v50, %v5984_v62 }
 0x712   :  { %v3119_v63 = vpop.f32.mrf.mxu0 }
 0x714   :  { %v5987_v2 = vpop.f32.mrf.mxu0 }
 0x715   :  { %v3264_v48 = vadd.f32 %v6007_v52, %v5987_v2  ;;  %v5320_v52 = vld [vmem:[%s7958_s4] ss:$0 sm:$0xff] }
 0x716   :  { %v3129_v51 = vpop.f32.mrf.mxu0 }
 0x717   :  { %v3259_v47 = vadd.f32 %v3258_v56, %v3129_v51 }
 0x718   :  { %v5990_v13 = vpop.f32.mrf.mxu0 }
 0x719   :  { %v3274_v17 = vadd.f32 %v6010_v57, %v5990_v13 }
 0x71a   :  { %v3139_v45 = vpop.f32.mrf.mxu0 }
 0x71b   :  { %v3269_v31 = vadd.f32 %v3268_v1, %v3139_v45 }
 0x71c   :  { %v5993_v14 = vpop.f32.mrf.mxu0 }
 0x71d   :  { %v3284_v30 = vadd.f32 %v6013_v6, %v5993_v14 }
 0x71e   :  { %v3149_v9 = vpop.f32.mrf.mxu0 }
 0x71f   :  { %v3279_v32 = vadd.f32 %v3278_v12, %v3149_v9  ;;  %v3249_v12 = vadd.f32 %v3248_v46, %v3119_v63 }
 0x720   :  { %v6024_v54 = vpop.f32.mrf.mxu0 }
 0x721   :  { %v3429_v14 = vadd.f32 %v6024_v54, %v3254_v53 }
 0x722   :  { %v3389_v36 = vpop.f32.mrf.mxu0 }
 0x724   :  { %v6027_v18 = vpop.f32.mrf.mxu0 }
 0x725   :  { %v3431_v41 = vadd.f32 %v6027_v18, %v3264_v48  ;;  %v3944_v48 = vld [vmem:[#allocation8 + $0x10] sm:$0xff] }
 0x726   :  { %v3399_v19 = vpop.f32.mrf.mxu0 }
 0x727   :  { %v3430_v26 = vadd.f32 %v3399_v19, %v3259_v47  ;;  %v3580_v56 = vadd.f32 %v6047_v21, %v3431_v41  ;;  %v3954_v47 = vld [vmem:[#allocation8 + $0x40] sm:$0xff]  ;;  %v4167_v41 = vld [vmem:[#allocation8 + $0xb8] sm:$0xff] }
 0x728   :  { %v6030_v24 = vpop.f32.mrf.mxu0 }
 0x729   :  { %v3433_v33 = vadd.f32 %v6030_v24, %v3274_v17  ;;  %v3428_v24 = vadd.f32 %v3389_v36, %v3249_v12 }
 0x72a   :  { %v3409_v3 = vpop.f32.mrf.mxu0 }
 0x72b   :  { %v3432_v39 = vadd.f32 %v3409_v3, %v3269_v31  ;;  %v3582_v28 = vadd.f32 %v6050_v7, %v3433_v33  ;;  %v3579_v3 = vadd.f32 %v3548_v37, %v3430_v26  ;;  %v3577_v54 = vadd.f32 %v3538_v5, %v3428_v24  ;;  %v3949_v31 = vld [vmem:[#allocation8 + $0x38] sm:$0xff]  ;;  %v3948_v33 = vld [vmem:[#allocation8 + $0x30] sm:$0xff] }
 0x72c   :  { %v6033_v4 = vpop.f32.mrf.mxu0  ;;  %v4166_v24 = vld [vmem:[#allocation8 + $0xb0] sm:$0xff] }
 0x72d   :  { %v3435_v59 = vadd.f32 %v6033_v4, %v3284_v30  ;;  %v3581_v13 = vadd.f32 %v3558_v23, %v3432_v39  ;;  %v3955_v39 = vld [vmem:[#allocation8 + $0x48] sm:$0xff] }
 0x72e   :  { %v3419_v8 = vpop.f32.mrf.mxu0 }
 0x72f   :  { %v3434_v44 = vadd.f32 %v3419_v8, %v3279_v32  ;;  %v3584_v49 = vadd.f32 %v6053_v34, %v3435_v59  ;;  %v3578_v8 = vadd.f32 %v6044_v15, %v3429_v14  ;;  %v3960_v32 = vld [vmem:[#allocation8 + $0x70] sm:$0xff]  ;;  %v3959_v59 = vld [vmem:[#allocation8 + $0x68] sm:$0xff]  ;;  %v3946_v34 = vld [vmem:[#allocation8 + $0x20] sm:$0xff] }
 0x730   :  { %v6064_v27 = vpop.f32.mrf.mxu0 }
 0x731   :  { %v3583_v45 = vadd.f32 %v3568_v29, %v3434_v44  ;;  %v3727_v63 = vadd.f32 %v6064_v27, %v3578_v8  ;;  %v3943_v44 = vld [vmem:[#allocation8 + $0x8] sm:$0xff]  ;;  %v4164_v8 = vld [vmem:[#allocation8 + $0xa0] sm:$0xff] }
 0x732   :  { %v3687_v22 = vpop.f32.mrf.mxu0 }
 0x733   :  { %v3726_v15 = vadd.f32 %v3687_v22, %v3577_v54  ;;  %v4160_v54 = vld [vmem:[#allocation8 + $0x80] sm:$0xff] }
 0x734   :  { %v6067_v11 = vpop.f32.mrf.mxu0 }
 0x735   :  { %v3729_v50 = vadd.f32 %v6067_v11, %v3580_v56  ;;  %v3742_v11 = vadd.f32 %v5320_v52, %v3727_v63  ;;  %v3741_v5 = vadd.f32 %v5320_v52, %v3726_v15  ;;  %v4161_v63 = vld [vmem:[#allocation8 + $0x88] sm:$0xff] }
 0x736   :  { %v3697_v16 = vpop.f32.mrf.mxu0 }
 0x737   :  { %v3728_v7 = vadd.f32 %v3697_v16, %v3579_v3  ;;  %v3744_v36 = vadd.f32 %v5320_v52, %v3729_v50  ;;  %v3750_v30 = vmax.f32 %v3742_v11, 0.0  ;;  %v3749_v22 = vmax.f32 %v3741_v5, 0.0  ;;  %v3961_v16 = vld [vmem:[#allocation8 + $0x78] sm:$0xff]  ;;  %v4165_v3 = vld [vmem:[#allocation8 + $0xa8] sm:$0xff]  ;;  %v5372_v11 = vld [vmem:[%s7961_s7 + $0x1e0] sm:$0xff] }
 0x738   :  { %v6070_v42 = vpop.f32.mrf.mxu0  ;;  %v5370_v5 = vld [vmem:[%s7961_s7 + $0x1d0] sm:$0xff] }
 0x739   :  { %v3731_v6 = vadd.f32 %v6070_v42, %v3582_v28  ;;  %v3743_v21 = vadd.f32 %v5320_v52, %v3728_v7  ;;  %v3752_v17 = vmax.f32 %v3744_v36, 0.0  ;;  %v3956_v42 = vld [vmem:[#allocation8 + $0x50] sm:$0xff]  ;;  %v5375_v28 = vld [vmem:[%s7961_s7 + $0x1f8] sm:$0xff] }
 0x73a   :  { %v3707_v20 = vpop.f32.mrf.mxu0 }
 0x73b   :  { %v3730_v51 = vadd.f32 %v3707_v20, %v3581_v13  ;;  %v3746_v62 = vadd.f32 %v5320_v52, %v3731_v6  ;;  %v3751_v27 = vmax.f32 %v3743_v21, 0.0  ;;  %v3942_v20 = vld [vmem:[#allocation8] sm:$0xff]  ;;  %v5374_v21 = vld [vmem:[%s7961_s7 + $0x1f0] sm:$0xff] }
 0x73c   :  { %v6073_v57 = vpop.f32.mrf.mxu0 }
 0x73d   :  { %v3733_v1 = vadd.f32 %v6073_v57, %v3584_v49  ;;  %v3745_v23 = vadd.f32 %v5320_v52, %v3730_v51  ;;  %v3754_v26 = vmax.f32 %v3746_v62, 0.0 }
 0x73e   :  { %v3717_v2 = vpop.f32.mrf.mxu0 }
 0x73f   :  { %v3748_v9 = vadd.f32 %v5320_v52, %v3733_v1  ;;  %v3732_v18 = vadd.f32 %v3717_v2, %v3583_v45  ;;  %v3753_v37 = vmax.f32 %v3745_v23, 0.0  ;;  %v4163_v23 = vld [vmem:[#allocation8 + $0x98] sm:$0xff] }
 0x741   :  { %v3756_v19 = vmax.f32 %v3748_v9, 0.0  ;;  %v3747_v4 = vadd.f32 %v5320_v52, %v3732_v18 }
 0x743   :  { %v3755_v46 = vmax.f32 %v3747_v4, 0.0  ;;  %6074 = vmatprep.subr.msk.mxu1 %vm1289_vm5, %v3756_v19  ;;  %6096 = vmatprep.subr.msk.mxu0 %vm1289_vm5, %v3756_v19 }
 0x744   :  { %6075 = vmatpush3.msk.msra.mxu1 %vm1289_vm5, %v3756_v19  ;;  %6097 = vmatpush3.msk.msra.mxu0 %vm1289_vm5, %v3756_v19 }
 0x745   :  { %6076 = vmatprep.subr.mxu1 %v3755_v46  ;;  %6098 = vmatprep.subr.mxu0 %v3755_v46 }
 0x746   :  { %6077 = vmatpush3.msra.mxu1 %v3755_v46  ;;  %6099 = vmatpush3.msra.mxu0 %v3755_v46  ;;  %v4162_v46 = vld [vmem:[#allocation8 + $0x90] sm:$0xff] }
 0x747   :  { %6078 = vmatprep.subr.mxu1 %v3754_v26  ;;  %6100 = vmatprep.subr.mxu0 %v3754_v26 }
 0x748   :  { %6079 = vmatpush3.msra.mxu1 %v3754_v26  ;;  %6101 = vmatpush3.msra.mxu0 %v3754_v26 }
 0x749   :  { %6080 = vmatprep.subr.mxu1 %v3753_v37  ;;  %6102 = vmatprep.subr.mxu0 %v3753_v37 }
 0x74a   :  { %6081 = vmatpush3.msra.mxu1 %v3753_v37  ;;  %6103 = vmatpush3.msra.mxu0 %v3753_v37  ;;  %v5373_v37 = vld [vmem:[%s7961_s7 + $0x1e8] sm:$0xff] }
 0x74b   :  { %6082 = vmatprep.subr.mxu1 %v3752_v17  ;;  %6104 = vmatprep.subr.mxu0 %v3752_v17 }
 0x74c   :  { %6083 = vmatpush3.msra.mxu1 %v3752_v17  ;;  %6105 = vmatpush3.msra.mxu0 %v3752_v17  ;;  %v5371_v17 = vld [vmem:[%s7961_s7 + $0x1d8] sm:$0xff] }
 0x74d   :  { %6084 = vmatprep.subr.mxu1 %v3751_v27  ;;  %6106 = vmatprep.subr.mxu0 %v3751_v27 }
 0x74e   :  { %6085 = vmatpush3.msra.mxu1 %v3751_v27  ;;  %6107 = vmatpush3.msra.mxu0 %v3751_v27  ;;  %v5369_v27 = vld [vmem:[%s7961_s7 + $0x1c8] sm:$0xff] }
 0x74f   :  { %6086 = vmatprep.subr.mxu1 %v3750_v30  ;;  %6108 = vmatprep.subr.mxu0 %v3750_v30 }
 0x750   :  { %6087 = vmatpush3.msra.mxu1 %v3750_v30  ;;  %6109 = vmatpush3.msra.mxu0 %v3750_v30  ;;  %v5368_v30 = vld [vmem:[%s7961_s7 + $0x1c0] sm:$0xff] }
 0x751   :  { %6088 = vmatprep.subr.mxu1 %v3749_v22  ;;  %6110 = vmatprep.subr.mxu0 %v3749_v22 }
 0x752   :  { %6089 = vmatpush3.msra.mxu1 %v3749_v22  ;;  %6111 = vmatpush3.msra.mxu0 %v3749_v22  ;;  %v5367_v22 = vld [vmem:[%s7961_s7 + $0x1b8] sm:$0xff] }
 0x753   :  { %6091 = vmatmul.mubr.msk.f32.vlgmr.msra.gmra.mxu1 %vm1276_vm2, %v6933_v35  ;;  %6113 = vmatmul.mubr.msk.f32.vlgmr.msra.gmra.mxu0 %vm1276_vm2, %v6936_v38 }
 0x754   :  { %6093 = vmatprep.mubr.msk.f32.mxu1 %vm1276_vm2, %v6939_v25  ;;  %6115 = vmatprep.mubr.msk.f32.mxu0 %vm1276_vm2, %v6942_v43  ;;  %v3947_v25 = vld [vmem:[#allocation8 + $0x28] sm:$0xff]  ;;  %v3958_v43 = vld [vmem:[#allocation8 + $0x60] sm:$0xff] }
 0x755   :  { %6118 = vmatprep.subr.mxu1 %v3961_v16  ;;  %6140 = vmatprep.subr.mxu0 %v3949_v31 }
 0x756   :  { %6119 = vmatpush3.msra.mxu1 %v3961_v16  ;;  %6141 = vmatpush3.msra.mxu0 %v3949_v31  ;;  %v4323_v16 = vld [vmem:[%s7961_s7 + $0xf8] sm:$0xff]  ;;  %v4322_v31 = vld [vmem:[%s7961_s7 + $0xf0] sm:$0xff] }
 0x757   :  { %6094 = vmatmul.mubr.msk.f32.gmra.mxu1 %vm1276_vm2, %v6955_v40  ;;  %6116 = vmatmul.mubr.msk.f32.gmra.mxu0 %vm1276_vm2, %v6958_v58  ;;  %v3957_v40 = vld [vmem:[#allocation8 + $0x58] sm:$0xff] }
 0x758   :  { %6120 = vmatprep.subr.mxu1 %v3960_v32  ;;  %6142 = vmatprep.subr.mxu0 %v3948_v33  ;;  %v3945_v58 = vld [vmem:[#allocation8 + $0x18] sm:$0xff] }
 0x759   :  { %6121 = vmatpush3.msra.mxu1 %v3960_v32  ;;  %6143 = vmatpush3.msra.mxu0 %v3948_v33  ;;  %v5366_v32 = vld [vmem:[%s7961_s7 + $0x1b0] sm:$0xff]  ;;  %v5365_v33 = vld [vmem:[%s7961_s7 + $0x1a8] sm:$0xff] }
 0x75a   :  { %6122 = vmatprep.subr.mxu1 %v3959_v59  ;;  %6144 = vmatprep.subr.mxu0 %v3947_v25 }
 0x75b   :  { %6123 = vmatpush3.msra.mxu1 %v3959_v59  ;;  %6145 = vmatpush3.msra.mxu0 %v3947_v25  ;;  %v4321_v59 = vld [vmem:[%s7961_s7 + $0xe8] sm:$0xff]  ;;  %v4320_v25 = vld [vmem:[%s7961_s7 + $0xe0] sm:$0xff] }
 0x75c   :  { %6124 = vmatprep.subr.mxu1 %v3958_v43  ;;  %6146 = vmatprep.subr.mxu0 %v3946_v34 }
 0x75d   :  { %6125 = vmatpush3.msra.mxu1 %v3958_v43  ;;  %6147 = vmatpush3.msra.mxu0 %v3946_v34  ;;  %v4319_v43 = vld [vmem:[%s7961_s7 + $0xd8] sm:$0xff]  ;;  %v4318_v34 = vld [vmem:[%s7961_s7 + $0xd0] sm:$0xff] }
 0x75e   :  { %6126 = vmatprep.subr.mxu1 %v3957_v40  ;;  %6148 = vmatprep.subr.mxu0 %v3945_v58 }
 0x75f   :  { %6127 = vmatpush3.msra.mxu1 %v3957_v40  ;;  %6149 = vmatpush3.msra.mxu0 %v3945_v58  ;;  %v5364_v40 = vld [vmem:[%s7961_s7 + $0x1a0] sm:$0xff]  ;;  %v5363_v58 = vld [vmem:[%s7961_s7 + $0x198] sm:$0xff] }
 0x760   :  { %6128 = vmatprep.subr.mxu1 %v3956_v42  ;;  %6150 = vmatprep.subr.mxu0 %v3944_v48 }
 0x761   :  { %6129 = vmatpush3.msra.mxu1 %v3956_v42  ;;  %6151 = vmatpush3.msra.mxu0 %v3944_v48  ;;  %v5362_v42 = vld [vmem:[%s7961_s7 + $0x190] sm:$0xff]  ;;  %v4317_v48 = vld [vmem:[%s7961_s7 + $0xc8] sm:$0xff] }
 0x762   :  { %6130 = vmatprep.subr.mxu1 %v3955_v39  ;;  %6152 = vmatprep.subr.mxu0 %v3943_v44 }
 0x763   :  { %6131 = vmatpush3.msra.mxu1 %v3955_v39  ;;  %6153 = vmatpush3.msra.mxu0 %v3943_v44  ;;  %v4316_v39 = vld [vmem:[%s7961_s7 + $0xc0] sm:$0xff]  ;;  %v5361_v44 = vld [vmem:[%s7961_s7 + $0x188] sm:$0xff] }
 0x764   :  { %6132 = vmatprep.subr.mxu1 %v3954_v47  ;;  %6154 = vmatprep.subr.mxu0 %v3942_v20 }
 0x765   :  { %6133 = vmatpush3.msra.mxu1 %v3954_v47  ;;  %6155 = vmatpush3.msra.mxu0 %v3942_v20  ;;  %v5360_v47 = vld [vmem:[%s7961_s7 + $0x180] sm:$0xff]  ;;  %v4315_v20 = vld [vmem:[%s7961_s7 + $0xb8] sm:$0xff] }
 0x766   :  { %6162 = vmatprep.subr.mxu1 %v4167_v41  ;;  %4360 = vmatprep.subr.mxu0 %v5375_v28  ;;  %v4313_v28 = vld [vmem:[%s7961_s7 + $0xa8] sm:$0xff] }
 0x813   :  { %v6092_v49 = vpop.f32.mrf.mxu1  ;;  %v6114_v29 = vpop.f32.mrf.mxu0 }
 0x814   :  { %v3931_v53 = vmax.f32 %v6092_v49, %v6114_v29  ;;  %v4312_v49 = vld [vmem:[%s7961_s7 + $0xa0] sm:$0xff]  ;;  %v5359_v29 = vld [vmem:[%s7961_s7 + $0x178] sm:$0xff] }
 0x815   :  { %v3826_v57 = vpop.f32.mrf.mxu1  ;;  %v3911_v6 = vpop.f32.mrf.mxu0 }
 0x816   :  { %3935 = vst.msk [vmem:[#allocation3 + $0x9] sm:$0xff] %vm134_vm12, %v3931_v53  ;;  %v3930_v13 = vmax.f32 %v3826_v57, %v3911_v6  ;;  %v5358_v53 = vld [vmem:[%s7961_s7 + $0x170] sm:$0xff]  ;;  %v4311_v57 = vld [vmem:[%s7961_s7 + $0x98] sm:$0xff]  ;;  %v5357_v6 = vld [vmem:[%s7961_s7 + $0x168] sm:$0xff] }
 0x817   :  { %v6095_v1 = vpop.f32.mrf.mxu1  ;;  %v6117_v45 = vpop.f32.mrf.mxu0 }
 0x818   :  { %3934 = vst.msk [vmem:[#allocation3 + $0x1] sm:$0xff] %vm134_vm12, %v3930_v13  ;;  %v3933_v12 = vmax.f32 %v6095_v1, %v6117_v45  ;;  %v5356_v13 = vld [vmem:[%s7961_s7 + $0x160] sm:$0xff]  ;;  %v4310_v1 = vld [vmem:[%s7961_s7 + $0x90] sm:$0xff]  ;;  %v5355_v45 = vld [vmem:[%s7961_s7 + $0x158] sm:$0xff] }
 0x819   :  { %v3836_v14 = vpop.f32.mrf.mxu1  ;;  %v3921_v52 = vpop.f32.mrf.mxu0 }
 0x81a   :  { %3937 = vst.msk [vmem:[#allocation3 + $0x19] sm:$0x3f] %vm1482_vm13, %v3933_v12  ;;  %v3932_v2 = vmax.f32 %v3836_v14, %v3921_v52  ;;  %v4309_v12 = vld [vmem:[%s7961_s7 + $0x88] sm:$0xff]  ;;  %v5354_v14 = vld [vmem:[%s7961_s7 + $0x150] sm:$0xff] }
 0x81b   :  { %v5353_v52 = vld [vmem:[%s7961_s7 + $0x148] sm:$0xff] }
 0x81c   :  { %3936 = vst.msk [vmem:[#allocation3 + $0x11] sm:$0xff] %vm134_vm12, %v3932_v2  ;;  %v5352_v2 = vld [vmem:[%s7961_s7 + $0x140] sm:$0xff] }
 0x81d   :  { %v3951_v18 = vld [vmem:[#allocation3 + $0x9] sm:$0xff] }
 0x81f   :  { %v3950_v56 = vld [vmem:[#allocation3 + $0x1] sm:$0xff] }
 0x820   :  { %v3938_v51 = vld [vmem:[#allocation3] sm:$0xff]  ;;  %v3939_v9 = vld [vmem:[#allocation3 + $0x8] sm:$0xff]  ;;  %6134 = vmatprep.mubr.msk.f32.mxu1 %vm134_vm12, %v3950_v56 }
 0x821   :  { %6156 = vmatprep.mubr.msk.f32.mxu0 %vm134_vm12, %v3938_v51  ;;  %6135 = vmatmul.mubr.msk.f32.vlgmr.msra.gmra.mxu1 %vm134_vm12, %v3951_v18  ;;  %v3953_v50 = vld [vmem:[#allocation3 + $0x19] sm:$0x3f]  ;;  %v4156_v7 = vld [vmem:[#allocation3 + $0x2] sm:$0xff]  ;;  %v5350_v18 = vld [vmem:[%s7961_s7 + $0x130] sm:$0xff] }
 0x822   :  { %6157 = vmatmul.mubr.msk.f32.vlgmr.msra.gmra.mxu0 %vm134_vm12, %v3939_v9  ;;  %6163 = vmatpush3.msra.mxu1 %v4167_v41  ;;  %v4159_v15 = vld [vmem:[#allocation3 + $0x1a] sm:$0x3f]  ;;  %v4314_v41 = vld [vmem:[%s7961_s7 + $0xb0] sm:$0xff]  ;;  %v4308_v56 = vld [vmem:[%s7961_s7 + $0x80] sm:$0xff] }
 0x823   :  { %6164 = vmatprep.subr.mxu1 %v4166_v24  ;;  %v3952_v62 = vld [vmem:[#allocation3 + $0x11] sm:$0xff]  ;;  %4361 = vmatpush1.msra.mxu0 %v5374_v21 }
 0x824   :  { %v3940_v19 = vld [vmem:[#allocation3 + $0x10] sm:$0xff]  ;;  %v3941_v4 = vld [vmem:[#allocation3 + $0x18] sm:$0x3f]  ;;  %6165 = vmatpush3.msra.mxu1 %v4166_v24  ;;  %6137 = vmatprep.mubr.msk.f32.mxu1 %vm134_vm12, %v3952_v62  ;;  %v5348_v62 = vld [vmem:[%s7961_s7 + $0x120] sm:$0xff] }
 0x825   :  { %6159 = vmatprep.mubr.msk.f32.mxu0 %vm134_vm12, %v3940_v19  ;;  %6166 = vmatprep.subr.mxu1 %v4165_v3  ;;  %v4157_v36 = vld [vmem:[#allocation3 + $0xa] sm:$0xff]  ;;  %v4158_v26 = vld [vmem:[#allocation3 + $0x12] sm:$0xff]  ;;  %v4304_v19 = vld [vmem:[%s7961_s7 + $0x60] sm:$0xff] }
 0x826   :  { %6138 = vmatmul.mubr.msk.f32.gmra.mxu1 %vm134_vm12, %v3953_v50  ;;  %6160 = vmatmul.mubr.msk.f32.gmra.mxu0 %vm134_vm12, %v3941_v4  ;;  %v5351_v51 = vld [vmem:[%s7961_s7 + $0x138] sm:$0xff]  ;;  %v4306_v24 = vld [vmem:[%s7961_s7 + $0x70] sm:$0xff]  ;;  %v4305_v50 = vld [vmem:[%s7961_s7 + $0x68] sm:$0xff] }
 0x827   :  { %6167 = vmatpush3.msra.mxu1 %v4165_v3  ;;  %6178 = vmatprep.mubr.msk.f32.mxu1 %vm134_vm12, %v4156_v7  ;;  %v4307_v9 = vld [vmem:[%s7961_s7 + $0x78] sm:$0xff]  ;;  %v5349_v3 = vld [vmem:[%s7961_s7 + $0x128] sm:$0xff]  ;;  %v5346_v7 = vld [vmem:[%s7961_s7 + $0x110] sm:$0xff] }
 0x828   :  { %6168 = vmatprep.subr.mxu1 %v4164_v8  ;;  %4424 = vmatprep.mubr.f32.mxu0 %v6903_v0  ;;  %v5347_v4 = vld [vmem:[%s7961_s7 + $0x118] sm:$0xff]  ;;  %v4298_v21 = vld [vmem:[%s7961_s7 + $0x30] sm:$0xff] }
 0x829   :  { %6169 = vmatpush3.msra.mxu1 %v4164_v8  ;;  %4362 = vmatprep.subr.mxu0 %v5373_v37  ;;  %v4303_v8 = vld [vmem:[%s7961_s7 + $0x58] sm:$0xff]  ;;  %v4297_v37 = vld [vmem:[%s7961_s7 + $0x28] sm:$0xff] }
 0x82a   :  { %6170 = vmatprep.subr.mxu1 %v4163_v23  ;;  %4363 = vmatpush1.msra.mxu0 %v5372_v11  ;;  %v4296_v11 = vld [vmem:[%s7961_s7 + $0x20] sm:$0xff] }
 0x82b   :  { %6171 = vmatpush3.msra.mxu1 %v4163_v23  ;;  %4364 = vmatprep.subr.mxu0 %v5371_v17  ;;  %v4302_v23 = vld [vmem:[%s7961_s7 + $0x50] sm:$0xff]  ;;  %v4295_v17 = vld [vmem:[%s7961_s7 + $0x18] sm:$0xff] }
 0x82c   :  { %6172 = vmatprep.subr.mxu1 %v4162_v46  ;;  %4365 = vmatpush1.msra.mxu0 %v5370_v5  ;;  %v4294_v5 = vld [vmem:[%s7961_s7 + $0x10] sm:$0xff] }
 0x82d   :  { %6173 = vmatpush3.msra.mxu1 %v4162_v46  ;;  %4366 = vmatprep.subr.mxu0 %v5369_v27  ;;  %v5345_v46 = vld [vmem:[%s7961_s7 + $0x108] sm:$0xff] }
 0x82e   :  { %6174 = vmatprep.subr.mxu1 %v4161_v63  ;;  %4367 = vmatpush1.msra.mxu0 %v5368_v30  ;;  %v4293_v27 = vld [vmem:[%s7961_s7 + $0x8] sm:$0xff]  ;;  %v4292_v30 = vld [vmem:[%s7961_s7] sm:$0xff] }
 0x82f   :  { %6175 = vmatpush3.msra.mxu1 %v4161_v63  ;;  %4368 = vmatprep.subr.mxu0 %v5367_v22  ;;  %v4301_v63 = vld [vmem:[%s7961_s7 + $0x48] sm:$0xff] }
 0x830   :  { %6176 = vmatprep.subr.mxu1 %v4160_v54  ;;  %4369 = vmatpush1.msra.mxu0 %v5366_v32 }
 0x831   :  { %6177 = vmatpush3.msra.mxu1 %v4160_v54  ;;  %4370 = vmatprep.subr.mxu0 %v5365_v33  ;;  %v5344_v54 = vld [vmem:[%s7961_s7 + $0x100] sm:$0xff] }
 0x832   :  { %6179 = vmatmul.mubr.msk.f32.vlgmr.msra.gmra.mxu1 %vm134_vm12, %v4157_v36  ;;  %4449 = vmatprep.subr.mxu1 %v4323_v16  ;;  %v4300_v36 = vld [vmem:[%s7961_s7 + $0x40] sm:$0xff] }
 0x833   :  { %6181 = vmatprep.mubr.msk.f32.mxu1 %vm134_vm12, %v4158_v26  ;;  %4450 = vmatpush1.msra.mxu1 %v4322_v31  ;;  %v5407_v26 = vld [vmem:[%s7961_s7 + $0x2f8] sm:$0xff] }
 0x834   :  { %4451 = vmatprep.subr.mxu1 %v4321_v59  ;;  %4371 = vmatpush1.msra.mxu0 %v5364_v40  ;;  %v5343_v40 = vld [vmem:[%s7960_s6] ss:$0 sm:$0xff]  ;;  %s6283_s6 = scalar_lea.vmem %s5074_s18, 32 }
 0x835   :  { %4452 = vmatpush1.msra.mxu1 %v4320_v25  ;;  %4372 = vmatprep.subr.mxu0 %v5363_v58  ;;  %p6284_p1 = scmp.ne.s32.totalorder %s5074_s18, %s6283_s6  ;;  %p6289_p3 = scmp.lt.s32.totalorder %s6283_s6, %s6283_s6 }
 0x836   :  { %6182 = vmatmul.mubr.msk.f32.gmra.mxu1 %vm134_vm12, %v4159_v15  ;;  %4453 = vmatprep.subr.mxu1 %v4319_v43  ;;  %v4299_v15 = vld [vmem:[%s7961_s7 + $0x38] sm:$0xff] }
 0x837   :  { %4513 = vmatprep.mubr.f32.mxu1 %v6903_v0  ;;  %4454 = vmatpush1.msra.mxu1 %v4318_v34  ;;  %p6290_p4 = por %p6289_p3, %p6288_p2 }
 0x838   :  { %4373 = vmatpush1.msra.mxu0 %v5362_v42  ;;  %4455 = vmatprep.subr.mxu1 %v4317_v48 }
 0x839   :  { %4374 = vmatprep.subr.mxu0 %v5361_v44  ;;  %4456 = vmatpush1.msra.mxu1 %v4316_v39  ;;  %p6291_p5 = pnand %p6290_p4, %p6284_p1 }
 0x83a   :  { %4375 = vmatpush1.msra.mxu0 %v5360_v47  ;;  %4457 = vmatprep.subr.mxu1 %v4315_v20 }
 0x83b   :  { %4458 = vmatpush1.msra.mxu1 %v4314_v41  ;;  %4376 = vmatprep.subr.mxu0 %v5359_v29 }
 0x83c   :  { %4459 = vmatprep.subr.mxu1 %v4313_v28  ;;  %4377 = vmatpush1.msra.mxu0 %v5358_v53 }
 0x83d   :  { %4460 = vmatpush1.msra.mxu1 %v4312_v49  ;;  %4378 = vmatprep.subr.mxu0 %v5357_v6 }
 0x83e   :  { %4461 = vmatprep.subr.mxu1 %v4311_v57  ;;  %4379 = vmatpush1.msra.mxu0 %v5356_v13 }
 0x83f   :  { %4462 = vmatpush1.msra.mxu1 %v4310_v1  ;;  %4380 = vmatprep.subr.mxu0 %v5355_v45  ;;  %v5406_v45 = vld [vmem:[%s7961_s7 + $0x2f0] sm:$0xff] }
 0x840   :  { %4463 = vmatprep.subr.mxu1 %v4309_v12  ;;  %4381 = vmatpush1.msra.mxu0 %v5354_v14  ;;  %v5405_v12 = vld [vmem:[%s7961_s7 + $0x2e8] sm:$0xff] }
 0x841   :  { %4464 = vmatpush1.msra.mxu1 %v4308_v56  ;;  %4382 = vmatprep.subr.mxu0 %v5353_v52  ;;  %v5403_v56 = vld [vmem:[%s7961_s7 + $0x2d8] sm:$0xff] }
 0x842   :  { %4465 = vmatprep.subr.mxu1 %v4307_v9  ;;  %4383 = vmatpush1.msra.mxu0 %v5352_v2  ;;  %v5404_v2 = vld [vmem:[%s7961_s7 + $0x2e0] sm:$0xff]  ;;  %v5402_v9 = vld [vmem:[%s7961_s7 + $0x2d0] sm:$0xff] }
 0x843   :  { %4466 = vmatpush1.msra.mxu1 %v4306_v24  ;;  %4384 = vmatprep.subr.mxu0 %v5351_v51  ;;  %v5400_v24 = vld [vmem:[%s7961_s7 + $0x2c0] sm:$0xff] }
 0x844   :  { %4467 = vmatprep.subr.mxu1 %v4305_v50  ;;  %4385 = vmatpush1.msra.mxu0 %v5350_v18  ;;  %v5401_v18 = vld [vmem:[%s7961_s7 + $0x2c8] sm:$0xff] }
 0x845   :  { %4468 = vmatpush1.msra.mxu1 %v4304_v19  ;;  %4386 = vmatprep.subr.mxu0 %v5349_v3  ;;  %v5399_v3 = vld [vmem:[%s7961_s7 + $0x2b8] sm:$0xff]  ;;  %v5397_v19 = vld [vmem:[%s7961_s7 + $0x2a8] sm:$0xff] }
 0x846   :  { %4469 = vmatprep.subr.mxu1 %v4303_v8  ;;  %4387 = vmatpush1.msra.mxu0 %v5348_v62  ;;  %v5398_v62 = vld [vmem:[%s7961_s7 + $0x2b0] sm:$0xff]  ;;  %v5395_v8 = vld [vmem:[%s7961_s7 + $0x298] sm:$0xff] }
 0x847   :  { %4470 = vmatpush1.msra.mxu1 %v4302_v23  ;;  %4388 = vmatprep.subr.mxu0 %v5347_v4  ;;  %v5396_v4 = vld [vmem:[%s7961_s7 + $0x2a0] sm:$0xff]  ;;  %v5394_v23 = vld [vmem:[%s7961_s7 + $0x290] sm:$0xff] }
 0x848   :  { %4471 = vmatprep.subr.mxu1 %v4301_v63  ;;  %4389 = vmatpush1.msra.mxu0 %v5346_v7  ;;  %v5393_v63 = vld [vmem:[%s7961_s7 + $0x288] sm:$0xff] }
 0x849   :  { %4472 = vmatpush1.msra.mxu1 %v4300_v36  ;;  %4390 = vmatprep.subr.mxu0 %v5345_v46 }
 0x84a   :  { %4473 = vmatprep.subr.mxu1 %v4299_v15  ;;  %4391 = vmatpush1.msra.mxu0 %v5344_v54  ;;  %v5392_v54 = vld [vmem:[%s7961_s7 + $0x280] sm:$0xff]  ;;  %v5390_v15 = vld [vmem:[%s7961_s7 + $0x270] sm:$0xff] }
 0x84b   :  { %4474 = vmatpush1.msra.mxu1 %v4298_v21  ;;  %4574 = vmatprep.subr.mxu0 %v5407_v26  ;;  %v5391_v26 = vld [vmem:[%s7961_s7 + $0x278] sm:$0xff]  ;;  %v5389_v21 = vld [vmem:[%s7961_s7 + $0x268] sm:$0xff] }
 0x84c   :  { %4475 = vmatprep.subr.mxu1 %v4297_v37  ;;  %v5388_v37 = vld [vmem:[%s7961_s7 + $0x260] sm:$0xff] }
 0x84d   :  { %4476 = vmatpush1.msra.mxu1 %v4296_v11 }
 0x84e   :  { %4477 = vmatprep.subr.mxu1 %v4295_v17  ;;  %v5387_v17 = vld [vmem:[%s7961_s7 + $0x258] sm:$0xff] }
 0x84f   :  { %4478 = vmatpush1.msra.mxu1 %v4294_v5  ;;  %v5386_v5 = vld [vmem:[%s7961_s7 + $0x250] sm:$0xff] }
 0x850   :  { %4479 = vmatprep.subr.mxu1 %v4293_v27  ;;  %v5385_v27 = vld [vmem:[%s7961_s7 + $0x248] sm:$0xff] }
 0x851   :  { %4480 = vmatpush1.msra.mxu1 %v4292_v30  ;;  %v5384_v30 = vld [vmem:[%s7961_s7 + $0x240] sm:$0xff] }
 0x8e1   :  { %v6136_v22 = vpop.f32.mrf.mxu1 }
 0x8e2   :  { %v6158_v16 = vpop.f32.mrf.mxu0 }
 0x8e3   :  { %v4040_v31 = vpop.f32.mrf.mxu1  ;;  %v4143_v43 = vadd.f32 %v6158_v16, %v6136_v22  ;;  %v5383_v22 = vld [vmem:[%s7961_s7 + $0x238] sm:$0xff]  ;;  %v5382_v16 = vld [vmem:[%s7961_s7 + $0x230] sm:$0xff] }
 0x8e4   :  { %v4137_v33 = vpop.f32.mrf.mxu0 }
 0x8e5   :  { %v4138_v58 = vadd.f32 %v4137_v33, %v4040_v31  ;;  %v5381_v31 = vld [vmem:[%s7961_s7 + $0x228] sm:$0xff]  ;;  %v5379_v33 = vld [vmem:[%s7961_s7 + $0x218] sm:$0xff] }
 0x8e6   :  { %v6139_v32 = vpop.f32.mrf.mxu1  ;;  %v6161_v59 = vpop.f32.mrf.mxu0 }
 0x8e7   :  { %v4153_v44 = vadd.f32 %v6161_v59, %v6139_v32  ;;  %v5380_v32 = vld [vmem:[%s7961_s7 + $0x220] sm:$0xff]  ;;  %v5378_v59 = vld [vmem:[%s7961_s7 + $0x210] sm:$0xff] }
 0x8e8   :  { %v4050_v25 = vpop.f32.mrf.mxu1  ;;  %v4147_v48 = vpop.f32.mrf.mxu0 }
 0x8e9   :  { %v4148_v28 = vadd.f32 %v4147_v48, %v4050_v25  ;;  %v5377_v25 = vld [vmem:[%s7961_s7 + $0x208] sm:$0xff] }
 0x8f2   :  { %v6180_v34 = vpop.f32.mrf.mxu1 }
 0x8f3   :  { %v4266_v42 = vadd.f32 %v6180_v34, %v4143_v43  ;;  %v5376_v43 = vld [vmem:[%s7961_s7 + $0x200] sm:$0xff] }
 0x8f4   :  { %v4246_v39 = vpop.f32.mrf.mxu1 }
 0x8f5   :  { %v4277_v47 = vadd.f32 %v5343_v40, %v4266_v42  ;;  %v4265_v20 = vadd.f32 %v4246_v39, %v4138_v58 }
 0x8f6   :  { %v6183_v41 = vpop.f32.mrf.mxu1 }
 0x8f7   :  { %v4281_v49 = vmax.f32 %v4277_v47, 0.0  ;;  %v4276_v29 = vadd.f32 %v5343_v40, %v4265_v20  ;;  %v4268_v53 = vadd.f32 %v6183_v41, %v4153_v44 }
 0x8f8   :  { %v4256_v57 = vpop.f32.mrf.mxu1 }
 0x8f9   :  { %4285 = vst [vmem:[#allocation4 + $0x9] sm:$0xff] %v4281_v49  ;;  %v4280_v6 = vmax.f32 %v4276_v29, 0.0  ;;  %v4279_v13 = vadd.f32 %v5343_v40, %v4268_v53  ;;  %v4267_v1 = vadd.f32 %v4256_v57, %v4148_v28 }
 0x8fb   :  { %4284 = vst [vmem:[#allocation4 + $0x1] sm:$0xff] %v4280_v6  ;;  %v4283_v14 = vmax.f32 %v4279_v13, 0.0  ;;  %v4278_v52 = vadd.f32 %v5343_v40, %v4267_v1  ;;  %4425 = vmatmul.mubr.f32.vlgmr.msra.gmra.mxu0 %v4280_v6 }
 0x8fc   :  { %4575 = vmatpush1.msra.mxu0 %v5406_v45  ;;  %4430 = vmatprep.mubr.f32.mxu0 %v6903_v0 }
 0x8fd   :  { %4287 = vst [vmem:[#allocation4 + $0x19] sm:$0x3f] %v4283_v14  ;;  %v4282_v51 = vmax.f32 %v4278_v52, 0.0  ;;  %4576 = vmatprep.subr.mxu0 %v5405_v12 }
 0x8fe   :  { %4577 = vmatpush1.msra.mxu0 %v5404_v2 }
 0x8ff   :  { %4286 = vst [vmem:[#allocation4 + $0x11] sm:$0xff] %v4282_v51  ;;  %4578 = vmatprep.subr.mxu0 %v5403_v56  ;;  %4431 = vmatmul.mubr.f32.gmra.mxu0 %v4281_v49 }
 0x900   :  { %4579 = vmatpush1.msra.mxu0 %v5402_v9  ;;  %4436 = vmatprep.mubr.f32.mxu0 %v6903_v0 }
 0x901   :  { %4580 = vmatprep.subr.mxu0 %v5401_v18 }
 0x902   :  { %v4288_v50 = vld [vmem:[#allocation4] sm:$0xff]  ;;  %4581 = vmatpush1.msra.mxu0 %v5400_v24  ;;  %v4289_v7 = vld [vmem:[#allocation4 + $0x8] sm:$0xff] }
 0x903   :  { %4514 = vmatmul.mubr.f32.vlgmr.msra.gmra.mxu1 %v4288_v50  ;;  %4582 = vmatprep.subr.mxu0 %v5399_v3  ;;  %v4538_v34 = vld [vmem:[#allocation4 + $0x2] sm:$0xff]  ;;  %v4671_v3 = vld [vmem:[%s7962_s8] sm:$0x3] }
 0x904   :  { %4519 = vmatprep.mubr.f32.mxu1 %v6903_v0  ;;  %4437 = vmatmul.mubr.f32.gmra.mxu0 %v4282_v51  ;;  %v4327_v46 = vld [vmem:[#allocation4 + $0x19] sm:$0x3f] }
 0x905   :  { %4583 = vmatpush1.msra.mxu0 %v5398_v62  ;;  %4442 = vmatprep.mubr.f32.mxu0 %v6903_v0  ;;  %v4541_v42 = vld [vmem:[#allocation4 + $0x1a] sm:$0x3f] }
 0x906   :  { %4584 = vmatprep.subr.mxu0 %v5397_v19  ;;  %v4290_v36 = vld [vmem:[#allocation4 + $0x10] sm:$0xff]  ;;  %v4291_v11 = vld [vmem:[#allocation4 + $0x18] sm:$0x3f] }
 0x907   :  { %4520 = vmatmul.mubr.f32.gmra.mxu1 %v4289_v7  ;;  %4585 = vmatpush1.msra.mxu0 %v5396_v4  ;;  %v4539_v40 = vld [vmem:[#allocation4 + $0xa] sm:$0xff]  ;;  %v4540_v58 = vld [vmem:[#allocation4 + $0x12] sm:$0xff] }
 0x908   :  { %4525 = vmatprep.mubr.f32.mxu1 %v6903_v0  ;;  %4586 = vmatprep.subr.mxu0 %v5395_v8 }
 0x909   :  { %4443 = vmatmul.mubr.f32.gmra.mxu0 %v4327_v46  ;;  %v4676_v46 = vrot.slane %v4671_v3, %v2225_v10 }
 0x90a   :  { %4587 = vmatpush1.msra.mxu0 %v5394_v23  ;;  %4638 = vmatprep.mubr.f32.mxu0 %v6903_v0 }
 0x90b   :  { %4526 = vmatmul.mubr.f32.gmra.mxu1 %v4290_v36  ;;  %4588 = vmatprep.subr.mxu0 %v5393_v63 }
 0x90c   :  { %4531 = vmatprep.mubr.f32.mxu1 %v6903_v0  ;;  %4589 = vmatpush1.msra.mxu0 %v5392_v54 }
 0x90d   :  { %4590 = vmatprep.subr.mxu0 %v5391_v26  ;;  %v7969_v26 = vsub.s32 1, %v6896_v55 }
 0x90e   :  { %4591 = vmatpush1.msra.mxu0 %v5390_v15 }
 0x90f   :  { %4532 = vmatmul.mubr.f32.gmra.mxu1 %v4291_v11  ;;  %4592 = vmatprep.subr.mxu0 %v5389_v21  ;;  %v4680_v15 = vrot.slane %v4671_v3, %v7969_v26  ;;  %v4883_v3 = vld [vmem:[%s7963_s9 + $0x10] sm:$0xff] }
 0x910   :  { %4593 = vmatpush1.msra.mxu0 %v5388_v37  ;;  %4769 = vmatprep.mubr.f32.mxu1 %v6903_v0 }
 0x911   :  { %4594 = vmatprep.subr.mxu0 %v5387_v17 }
 0x912   :  { %4595 = vmatpush1.msra.mxu0 %v5386_v5 }
 0x913   :  { %4596 = vmatprep.subr.mxu0 %v5385_v27 }
 0x914   :  { %4597 = vmatpush1.msra.mxu0 %v5384_v30 }
 0x915   :  { %4598 = vmatprep.subr.mxu0 %v5383_v22 }
 0x916   :  { %4599 = vmatpush1.msra.mxu0 %v5382_v16 }
 0x917   :  { %4600 = vmatprep.subr.mxu0 %v5381_v31 }
 0x918   :  { %4601 = vmatpush1.msra.mxu0 %v5380_v32 }
 0x919   :  { %4602 = vmatprep.subr.mxu0 %v5379_v33 }
 0x91a   :  { %4603 = vmatpush1.msra.mxu0 %v5378_v59 }
 0x91b   :  { %4604 = vmatprep.subr.mxu0 %v5377_v25 }
 0x91c   :  { %4605 = vmatpush1.msra.mxu0 %v5376_v43 }
 0x91d   :  { %4639 = vmatmul.mubr.f32.vlgmr.msra.gmra.mxu0 %v4538_v34 }
 0x91e   :  { %4644 = vmatprep.mubr.f32.mxu0 %v6903_v0 }
 0x921   :  { %4645 = vmatmul.mubr.f32.gmra.mxu0 %v4539_v40 }
 0x922   :  { %4650 = vmatprep.mubr.f32.mxu0 %v6903_v0 }
 0x925   :  { %4651 = vmatmul.mubr.f32.gmra.mxu0 %v4540_v58 }
 0x926   :  { %4656 = vmatprep.mubr.f32.mxu0 %v6903_v0 }
 0x929   :  { %4657 = vmatmul.mubr.f32.gmra.mxu0 %v4541_v42 }
 0x9bb   :  { %v4426_v48 = vpop.f32.mrf.mxu0 }
 0x9bd   :  { %v4428_v39 = vpop.f32.mrf.mxu0 }
 0x9bf   :  { %v4432_v44 = vpop.f32.mrf.mxu0 }
 0x9c1   :  { %v4434_v20 = vpop.f32.mrf.mxu0 }
 0x9c3   :  { %v4515_v47 = vpop.f32.mrf.mxu1 }
 0x9c4   :  { %v4438_v28 = vpop.f32.mrf.mxu0  ;;  %v4516_v11 = vadd.f32 %v4515_v47, %v4426_v48  ;;  %v4909_v47 = vld [vmem:[%s7963_s9 + $0xe0] sm:$0xff] }
 0x9c5   :  { %v4517_v41 = vpop.f32.mrf.mxu1 }
 0x9c6   :  { %v4440_v29 = vpop.f32.mrf.mxu0  ;;  %v4518_v36 = vadd.f32 %v4517_v41, %v4428_v39  ;;  %v4910_v39 = vld [vmem:[%s7963_s9 + $0xe8] sm:$0xff]  ;;  %v4908_v41 = vld [vmem:[%s7963_s9 + $0xd8] sm:$0xff] }
 0x9c7   :  { %v4521_v49 = vpop.f32.mrf.mxu1 }
 0x9c8   :  { %v4522_v23 = vadd.f32 %v4521_v49, %v4432_v44  ;;  %v4894_v44 = vld [vmem:[%s7963_s9 + $0x68] sm:$0xff]  ;;  %v4907_v49 = vld [vmem:[%s7963_s9 + $0xd0] sm:$0xff] }
 0x9c9   :  { %v4523_v53 = vpop.f32.mrf.mxu1  ;;  %v4444_v57 = vpop.f32.mrf.mxu0 }
 0x9ca   :  { %v4524_v19 = vadd.f32 %v4523_v53, %v4434_v20  ;;  %v4893_v20 = vld [vmem:[%s7963_s9 + $0x60] sm:$0xff]  ;;  %v4906_v53 = vld [vmem:[%s7963_s9 + $0xc8] sm:$0xff] }
 0x9cb   :  { %v4527_v6 = vpop.f32.mrf.mxu1  ;;  %v4446_v13 = vpop.f32.mrf.mxu0 }
 0x9cc   :  { %v4528_v50 = vadd.f32 %v4527_v6, %v4438_v28  ;;  %v4892_v28 = vld [vmem:[%s7963_s9 + $0x58] sm:$0xff]  ;;  %v4905_v6 = vld [vmem:[%s7963_s9 + $0xc0] sm:$0xff] }
 0x9cd   :  { %v4529_v45 = vpop.f32.mrf.mxu1 }
 0x9ce   :  { %v4530_v18 = vadd.f32 %v4529_v45, %v4440_v29  ;;  %v4891_v29 = vld [vmem:[%s7963_s9 + $0x50] sm:$0xff]  ;;  %v4888_v45 = vld [vmem:[%s7963_s9 + $0x38] sm:$0xff] }
 0x9cf   :  { %v4533_v52 = vpop.f32.mrf.mxu1 }
 0x9d0   :  { %v4534_v24 = vadd.f32 %v4533_v52, %v4444_v57  ;;  %v4890_v57 = vld [vmem:[%s7963_s9 + $0x48] sm:$0xff] }
 0x9d1   :  { %v4535_v51 = vpop.f32.mrf.mxu1  ;;  %v4902_v52 = vld [vmem:[%s7963_s9 + $0xa8] sm:$0xff] }
 0x9d2   :  { %v4536_v4 = vadd.f32 %v4535_v51, %v4446_v13  ;;  %v4889_v13 = vld [vmem:[%s7963_s9 + $0x40] sm:$0xff] }
 0x9d3   :  { %v4885_v51 = vld [vmem:[%s7963_s9 + $0x20] sm:$0xff] }
 0x9dd   :  { %v4640_v1 = vpop.f32.mrf.mxu0 }
 0x9de   :  { %v4663_v16 = vadd.f32 %v4640_v1, %v4516_v11  ;;  %v4904_v1 = vld [vmem:[%s7963_s9 + $0xb8] sm:$0xff] }
 0x9df   :  { %v4642_v12 = vpop.f32.mrf.mxu0 }
 0x9e0   :  { %v4664_v27 = vadd.f32 %v4642_v12, %v4518_v36  ;;  %v4683_v55 = vadd.f32 %v4676_v46, %v4663_v16  ;;  %v4903_v12 = vld [vmem:[%s7963_s9 + $0xb0] sm:$0xff] }
 0x9e1   :  { %v4646_v14 = vpop.f32.mrf.mxu0 }
 0x9e2   :  { %v4665_v17 = vadd.f32 %v4646_v14, %v4522_v23  ;;  %v4684_v25 = vadd.f32 %v4680_v15, %v4664_v27  ;;  %v4691_v48 = vmax.f32 %v4683_v55, 0.0  ;;  %v4887_v14 = vld [vmem:[%s7963_s9 + $0x30] sm:$0xff]  ;;  %v4989_v23 = vld [vmem:[#allocation10 + $0x28] sm:$0xff] }
 0x9e3   :  { %v4648_v2 = vpop.f32.mrf.mxu0 }
 0x9e4   :  { %v4666_v21 = vadd.f32 %v4648_v2, %v4524_v19  ;;  %v4685_v59 = vadd.f32 %v4676_v46, %v4665_v17  ;;  %v4692_v42 = vmax.f32 %v4684_v25, 0.0  ;;  %v4886_v2 = vld [vmem:[%s7963_s9 + $0x28] sm:$0xff]  ;;  %v4897_v19 = vld [vmem:[%s7963_s9 + $0x80] sm:$0xff] }
 0x9e5   :  { %v4652_v56 = vpop.f32.mrf.mxu0 }
 0x9e6   :  { %v4667_v63 = vadd.f32 %v4652_v56, %v4528_v50  ;;  %v4686_v32 = vadd.f32 %v4680_v15, %v4666_v21  ;;  %v4693_v58 = vmax.f32 %v4685_v59, 0.0  ;;  %v4901_v56 = vld [vmem:[%s7963_s9 + $0xa0] sm:$0xff]  ;;  %v4898_v50 = vld [vmem:[%s7963_s9 + $0x88] sm:$0xff] }
 0x9e7   :  { %v4654_v9 = vpop.f32.mrf.mxu0 }
 0x9e8   :  { %v4668_v8 = vadd.f32 %v4654_v9, %v4530_v18  ;;  %v4687_v31 = vadd.f32 %v4676_v46, %v4667_v63  ;;  %v4694_v40 = vmax.f32 %v4686_v32, 0.0  ;;  %v4900_v9 = vld [vmem:[%s7963_s9 + $0x98] sm:$0xff] }
 0x9e9   :  { %v4658_v62 = vpop.f32.mrf.mxu0  ;;  %v4884_v18 = vld [vmem:[%s7963_s9 + $0x18] sm:$0xff] }
 0x9ea   :  { %v4669_v7 = vadd.f32 %v4658_v62, %v4534_v24  ;;  %v4688_v30 = vadd.f32 %v4680_v15, %v4668_v8  ;;  %v4695_v34 = vmax.f32 %v4687_v31, 0.0  ;;  %v4899_v24 = vld [vmem:[%s7963_s9 + $0x90] sm:$0xff]  ;;  %v4882_v62 = vld [vmem:[%s7963_s9 + $0x8] sm:$0xff]  ;;  %v4991_v8 = vld [vmem:[#allocation10 + $0x38] sm:$0xff] }
 0x9eb   :  { %v4660_v54 = vpop.f32.mrf.mxu0 }
 0x9ec   :  { %v4670_v37 = vadd.f32 %v4660_v54, %v4536_v4  ;;  %v4689_v5 = vadd.f32 %v4676_v46, %v4669_v7  ;;  %v4696_v43 = vmax.f32 %v4688_v30, 0.0  ;;  %v4881_v4 = vld [vmem:[%s7963_s9] sm:$0xff]  ;;  %v4990_v7 = vld [vmem:[#allocation10 + $0x30] sm:$0xff] }
 0x9ed   :  { %v4988_v46 = vld [vmem:[#allocation10 + $0x20] sm:$0xff] }
 0x9ee   :  { %v4690_v22 = vadd.f32 %v4680_v15, %v4670_v37  ;;  %v4697_v10 = vmax.f32 %v4689_v5, 0.0 }
 0x9f0   :  { %v4698_v33 = vmax.f32 %v4690_v22, 0.0 }
 0x9f2   :  { %5408 = vmatprep.subr.msk.mxu1 %vm2254_vm14, %v4698_v33 }
 0x9f3   :  { %5409 = vmatpush1.msk.msra.mxu1 %vm2254_vm14, %v4697_v10 }
 0x9f4   :  { %4731 = vmatprep.subr.mxu1 %v4696_v43 }
 0x9f5   :  { %4732 = vmatpush1.msra.mxu1 %v4695_v34 }
 0x9f6   :  { %4733 = vmatprep.subr.mxu1 %v4694_v40 }
 0x9f7   :  { %4734 = vmatpush1.msra.mxu1 %v4693_v58 }
 0x9f8   :  { %4735 = vmatprep.subr.mxu1 %v4692_v42 }
 0x9f9   :  { %4736 = vmatpush1.msra.mxu1 %v4691_v48 }
 0x9fa   :  { %5410 = vmatmul.mubr.msk.f32.vlgmr.msra.gmra.mxu1 %vm2249_vm15, %v6906_v60  ;;  %5412 = vmatprep.subr.msk.mxu1 %vm2254_vm14, %v4698_v33  ;;  %v4912_v60 = vld [vmem:[%s7963_s9 + $0xf8] sm:$0xff] }
 0x9fb   :  { %5413 = vmatpush1.msk.msra.mxu1 %vm2254_vm14, %v4697_v10  ;;  %4775 = vmatprep.mubr.f32.mxu1 %v6903_v0 }
 0x9fc   :  { %4808 = vmatprep.subr.mxu1 %v4696_v43  ;;  %5701 = vmatprep.subr.mxu0 %v4912_v60 }
 0x9fd   :  { %4809 = vmatpush1.msra.mxu1 %v4695_v34 }
 0x9fe   :  { %5411 = vmatmul.mubr.msk.f32.gmra.mxu1 %vm2249_vm15, %v6933_v35  ;;  %4810 = vmatprep.subr.mxu1 %v4694_v40  ;;  %v4896_v35 = vld [vmem:[%s7963_s9 + $0x78] sm:$0xff] }
 0x9ff   :  { %4811 = vmatpush1.msra.mxu1 %v4693_v58  ;;  %4846 = vmatprep.mubr.f32.mxu1 %v6903_v0 }
 0xa00   :  { %4812 = vmatprep.subr.mxu1 %v4692_v42  ;;  %5702 = vmatpush3.msra.mxu0 %v4896_v35 }
 0xa01   :  { %4813 = vmatpush1.msra.mxu1 %v4691_v48 }
 0xa02   :  { %5414 = vmatmul.mubr.msk.f32.vlgmr.msra.gmra.mxu1 %vm2249_vm15, %v6909_v61  ;;  %6184 = vmatprep.subr.mxu1 %v6903_v0  ;;  %v4911_v61 = vld [vmem:[%s7963_s9 + $0xf0] sm:$0xff] }
 0xa03   :  { %4852 = vmatprep.mubr.f32.mxu1 %v6903_v0  ;;  %5703 = vmatprep.subr.mxu0 %v4911_v61 }
 0xa04   :  { %6185 = vmatpush3.msra.mxu1 %v4991_v8 }
 0xa05   :  { %6186 = vmatprep.subr.mxu1 %v6903_v0 }
 0xa06   :  { %5415 = vmatmul.mubr.msk.f32.gmra.mxu1 %vm2249_vm15, %v6936_v38  ;;  %v4895_v38 = vld [vmem:[%s7963_s9 + $0x70] sm:$0xff] }
 0xa07   :  { %6200 = vmatprep.mubr.msk.f32.mxu1 %vm6316_vm3, %v6903_v0  ;;  %5704 = vmatpush3.msra.mxu0 %v4895_v38  ;;  %v4987_v38 = vld [vmem:[#allocation10 + $0x18] sm:$0xff] }
 0xa08   :  { %5705 = vmatprep.subr.mxu0 %v4910_v39  ;;  %6187 = vmatpush3.msra.mxu1 %v4990_v7  ;;  %v4986_v39 = vld [vmem:[#allocation10 + $0x10] sm:$0xff] }
 0xa09   :  { %5706 = vmatpush3.msra.mxu0 %v4894_v44  ;;  %6188 = vmatprep.subr.mxu1 %v6903_v0  ;;  %v4985_v44 = vld [vmem:[#allocation10 + $0x8] sm:$0xff] }
 0xa0a   :  { %5707 = vmatprep.subr.mxu0 %v4909_v47  ;;  %6189 = vmatpush3.msra.mxu1 %v4989_v23  ;;  %v4984_v47 = vld [vmem:[#allocation10] sm:$0xff] }
 0xa0b   :  { %5708 = vmatpush3.msra.mxu0 %v4893_v20  ;;  %6190 = vmatprep.subr.mxu1 %v6903_v0 }
 0xa0c   :  { %5709 = vmatprep.subr.mxu0 %v4908_v41  ;;  %6191 = vmatpush3.msra.mxu1 %v4988_v46  ;;  %v4913_v41 = vld [vmem:[%s7964_s10] sm:$0x1] }
 0xa0d   :  { %5710 = vmatpush3.msra.mxu0 %v4892_v28  ;;  %6192 = vmatprep.subr.mxu1 %v6903_v0 }
 0xa0e   :  { %5711 = vmatprep.subr.mxu0 %v4907_v49  ;;  %6193 = vmatpush3.msra.mxu1 %v4987_v38 }
 0xa0f   :  { %5712 = vmatpush3.msra.mxu0 %v4891_v29  ;;  %6194 = vmatprep.subr.mxu1 %v6903_v0 }
 0xa10   :  { %5713 = vmatprep.subr.mxu0 %v4906_v53  ;;  %6195 = vmatpush3.msra.mxu1 %v4986_v39  ;;  %v4992_v53 = vld [vmem:[%s7966_s12] sm:$0x1] }
 0xa11   :  { %5714 = vmatpush3.msra.mxu0 %v4890_v57  ;;  %6196 = vmatprep.subr.mxu1 %v6903_v0 }
 0xa12   :  { %5715 = vmatprep.subr.mxu0 %v4905_v6  ;;  %6197 = vmatpush3.msra.mxu1 %v4985_v44 }
 0xa13   :  { %5716 = vmatpush3.msra.mxu0 %v4889_v13  ;;  %6198 = vmatprep.subr.mxu1 %v6903_v0 }
 0xa14   :  { %5717 = vmatprep.subr.mxu0 %v4904_v1  ;;  %6199 = vmatpush3.msra.mxu1 %v4984_v47 }
 0xa15   :  { %5718 = vmatpush3.msra.mxu0 %v4888_v45 }
 0xa16   :  { %5719 = vmatprep.subr.mxu0 %v4903_v12 }
 0xa17   :  { %5720 = vmatpush3.msra.mxu0 %v4887_v14 }
 0xa18   :  { %5721 = vmatprep.subr.mxu0 %v4902_v52 }
 0xa19   :  { %5722 = vmatpush3.msra.mxu0 %v4886_v2 }
 0xa1a   :  { %5723 = vmatprep.subr.mxu0 %v4901_v56 }
 0xa1b   :  { %5724 = vmatpush3.msra.mxu0 %v4885_v51 }
 0xa1c   :  { %5725 = vmatprep.subr.mxu0 %v4900_v9 }
 0xa1d   :  { %5726 = vmatpush3.msra.mxu0 %v4884_v18 }
 0xa1e   :  { %5727 = vmatprep.subr.mxu0 %v4899_v24 }
 0xa1f   :  { %5728 = vmatpush3.msra.mxu0 %v4883_v3 }
 0xa20   :  { %5729 = vmatprep.subr.mxu0 %v4898_v50 }
 0xa21   :  { %5730 = vmatpush3.msra.mxu0 %v4882_v62 }
 0xa22   :  { %5731 = vmatprep.subr.mxu0 %v4897_v19 }
 0xa23   :  { %5732 = vmatpush3.msra.mxu0 %v4881_v4 }
 0xaba   :  { %v4771_v63 = vpop.f32.mrf.mxu1 }
 0xabc   :  { %v4773_v54 = vpop.f32.mrf.mxu1 }
 0xabe   :  { %v4777_v36 = vpop.f32.mrf.mxu1 }
 0xac0   :  { %v4779_v26 = vpop.f32.mrf.mxu1 }
 0xac2   :  { %v4848_v15 = vpop.f32.mrf.mxu1 }
 0xac3   :  { %v4859_v17 = vmax.f32 %v4771_v63, %v4848_v15 }
 0xac4   :  { %v4850_v21 = vpop.f32.mrf.mxu1 }
 0xac5   :  { %v4860_v22 = vmax.f32 %v4773_v54, %v4850_v21 }
 0xac6   :  { %v4854_v37 = vpop.f32.mrf.mxu1 }
 0xac7   :  { %v4861_v11 = vmax.f32 %v4777_v36, %v4854_v37 }
 0xac8   :  { %v4856_v5 = vpop.f32.mrf.mxu1 }
 0xac9   :  { %v4863_v27 = vsel %vm2423_vm1, %v4861_v11, 0.0  ;;  %v4862_v30 = vmax.f32 %v4779_v26, %v4856_v5 }
 0xaca   :  { %v4864_v16 = vadd.f32 %v4863_v27, %v4859_v17 }
 0xacb   :  { %v4871_v31 = vsel %vm2423_vm1, %v4862_v30, 0.0 }
 0xacc   :  { %v4865_v32 = vrot.slane %v4864_v16, 4  ;;  %v4872_v33 = vadd.f32 %v4871_v31, %v4860_v22 }
 0xace   :  { %v4866_v59 = vadd.f32 %v4865_v32, %v4864_v16  ;;  %v4873_v10 = vrot.slane %v4872_v33, 4 }
 0xad0   :  { %v4867_v25 = vrot.slane %v4866_v59, 2  ;;  %v4874_v43 = vadd.f32 %v4873_v10, %v4872_v33 }
 0xad2   :  { %v4868_v55 = vadd.f32 %v4867_v25, %v4866_v59  ;;  %v4875_v34 = vrot.slane %v4874_v43, 2 }
 0xad4   :  { %v4869_v40 = vrot.slane %v4868_v55, 1  ;;  %v4876_v58 = vadd.f32 %v4875_v34, %v4874_v43 }
 0xad6   :  { %v4877_v42 = vrot.slane %v4876_v58, 1  ;;  %v4870_v48 = vadd.f32 %v4869_v40, %v4868_v55 }
 0xad8   :  { %v4878_v60 = vadd.f32 %v4877_v42, %v4876_v58  ;;  %v4879_v61 = vmul.f32 0.06666667, %v4870_v48 }
 0xada   :  { %v4880_v35 = vmul.f32 0.06666667, %v4878_v60 }
 0xadc   :  { %4978 = vmatprep.mubr.f32.mxu0 %v4880_v35 }
 0xadd   :  { %4979 = vmatmul.mubr.f32.vlgmr.msra.gmra.mxu0 %v4879_v61 }
 0xb9d   :  { %v5733_v20 = vpop.f32.mrf.mxu0 }
 0xb9f   :  { %v5734_v28 = vpop.f32.mrf.mxu0 }
 0xba0   :  { %v5735_v49 = vadd.f32 %v5734_v28, %v5733_v20 }
 0xba2   :  { %v4981_v29 = vadd.f32 %v5735_v49, %v4913_v41 }
 0xba4   :  { %6201 = vmatmul.mubr.msk.f32.vlgmr.msra.gmra.mxu1 %vm134_vm12, %v4981_v29 }
 0xc64   :  { %v5062_v57 = vpop.f32.mrf.mxu1 }
 0xc65   :  { %v5063_v0 = vadd.f32 %v5062_v57, %v4992_v53 }
 0xc66   :  { %v6202_v6 = vpop.f32.mrf.mxu1 }
 0xc67   :  { %5066 = vst [vmem:[#allocation11 + $0x1] sm:$0x1] %v5063_v0 }
 0xc68   :  { %6294 = shalt.err (!%p6291_p5)
}
 0xc69   :  { %5076 = dma.vmem_to_hbm [thread:$0]  %s5074_s18, 32, %s7967_s13, [#allocation7]  }
 0xc6a   :  { %6307 = dma.done.wait [#allocation7], 32  }
 0xc6b   :  { %6308 = vsyncadd [#allocation7], 4294967264 }
 0xc6c   :  { %5080 = vsyncpa [#allocation6], 1 }
 0xc6d   :  { %5081 = vsyncpa [#allocation9], 1 }
 0xc6e   :  { %5082 = vsyncpa [#allocation7], 1 }

</bundles_post_ra>
